<compile_context>
chip_gen: v7x
topology: tpu7x:2x2x1
jax: 0.10.0
libtpu: 0.0.40
codegen_flags: <defaults>
</compile_context>

<pallas_src>
import jax
import jax.numpy as jnp
import numpy as np
from jax import lax
from jax.experimental import pallas as pl
from jax.experimental.pallas import tpu as pltpu

# ----------------------------- model config (synthetic, small) -----------------------------
B = 2              # batch
S = 6              # sequence length (before BOS/EOS)
T = S + 2          # sequence length with BOS/EOS
MAX_CHARS = 8      # max characters per token
CHAR_DIM = 8       # char embedding dim
CHAR_VOCAB = 64    # char vocab size (padding id 0 -> row 0 of embedding is zero)
FILTERS = ((1, 4), (2, 8), (3, 4))   # (width, num_filters) like ELMo's char_cnn filters
N_FILTERS = sum(n for _, n in FILTERS)   # 16
N_HIGHWAY = 1
PROJ = 16          # lstm projection_dim == token-embedding output dim
CELL = 32          # lstm cell ("dim")
N_LAYERS = 2       # lstm n_layers
CELL_CLIP = 3.0
PROJ_CLIP = 3.0

CHAR_FLAT = MAX_CHARS * CHAR_DIM        # 64
CONV_COLS = MAX_CHARS * N_FILTERS       # 128 -> exactly one vreg lane extent

VMEM_SPEC = pl.BlockSpec(memory_space=pltpu.MemorySpace.VMEM)


# ----------------------------- Pallas kernel #1: char-CNN encoder -----------------------------
def char_encoder_kernel(x_ref, wband_ref, colneg_ref, cbias_ref,
                        hww_ref, hwb_ref, pw_ref, pb_ref, out_ref):
    """x_ref: (N, MAX_CHARS*CHAR_DIM) flattened char embeddings for N tokens.

    The per-filter conv1d's are collapsed into a single banded matmul:
      (N, 64) @ (64, 128) where column p*N_FILTERS+c is "filter channel c applied
      at char position p".  Invalid (out-of-range) positions carry a -1e30 column
      offset so they never win the max-over-time.  Channel bias is added after the
      max (max(w·x+b) == max(w·x)+b), then relu, highway, and projection.
    """
    x = x_ref[...]                                                     # (N, 64)
    conv = jnp.dot(x, wband_ref[...],
                   preferred_element_type=jnp.float32) + colneg_ref[...]   # (N, 128)

    # max over character positions (8 static lane slices of the single vreg row).
    acc = conv[:, 0:N_FILTERS]
    for p in range(1, MAX_CHARS):
        acc = jnp.maximum(acc, conv[:, p * N_FILTERS:(p + 1) * N_FILTERS])
    h = jax.nn.relu(acc + cbias_ref[...])                              # (N, N_FILTERS)

    # Highway layers (AllenNLP Highway with relu activation)
    for hi in range(N_HIGHWAY):
        proj = jnp.dot(h, hww_ref[hi], preferred_element_type=jnp.float32) + hwb_ref[hi]
        nonlinear = jax.nn.relu(proj[:, :N_FILTERS])
        gate = jax.nn.sigmoid(proj[:, N_FILTERS:])
        h = gate * h + (1.0 - gate) * nonlinear

    out = jnp.dot(h, pw_ref[...], preferred_element_type=jnp.float32) + pb_ref[...]
    out_ref[...] = out.astype(out_ref.dtype)


def char_encoder(x_flat, params):
    """x_flat: (N, MAX_CHARS*CHAR_DIM) -> (N, PROJ)."""
    n = x_flat.shape[0]
    return pl.pallas_call(
        char_encoder_kernel,
        out_shape=jax.ShapeDtypeStruct((n, PROJ), jnp.float32),
        in_specs=[VMEM_SPEC] * 8,
        out_specs=VMEM_SPEC,
    )(x_flat, params["conv_wband"], params["conv_colneg"], params["conv_bias"],
      params["hw_w"], params["hw_b"], params["proj_w"], params["proj_b"])


# ----------------------------- Pallas kernel #2: fused stacked biLSTM -----------------------------
def bilstm_kernel(x_ref, m_ref, wih_ref, whh_ref, b_ref, wp_ref, out_ref):
    """One grid point = one direction (0: forward, 1: backward).  All N_LAYERS
    layers are chained in-kernel with weights resident in VMEM.

    x_ref:   (T*B, PROJ)   time-major flattened token representation (row = t*B + b)
    m_ref:   (B, T)        float mask
    wih_ref: (1, N_LAYERS, PROJ, 4*CELL)   (direction block selected by BlockSpec)
    whh_ref: (1, N_LAYERS, PROJ, 4*CELL)
    b_ref:   (1, N_LAYERS, 1, 4*CELL)
    wp_ref:  (1, N_LAYERS, CELL, PROJ)
    out_ref: (N_LAYERS+1, B, T, PROJ)      this direction's half of the activations
             (row 0 = token rep * mask; rows 1.. = per-layer LSTM outputs, masked,
              post-residual, batch-major, true time order).

    Masked (padded) timesteps produce zero output and leave the state unchanged,
    matching pack_padded_sequence semantics of the PyTorch reference.
    """
    is_bwd = pl.program_id(0) == 1

    x = x_ref[...].astype(jnp.float32)          # (T*B, PROJ)
    m = m_ref[...]                              # (B, T)

    # layer-0 activation (this direction's PROJ half of cat([rep, rep], -1) * mask).
    rep_bt = jnp.stack([x[s * B:(s + 1) * B] for s in range(T)], axis=1)   # (B, T, PROJ)
    out_ref[0] = (rep_bt * m[:, :, None]).astype(out_ref.dtype)

    # Processing order: the backward direction runs over reversed time IN-KERNEL
    # (no wrapper-side reversed HBM copies).  Indices below are all static.
    x_rev = jnp.concatenate([x[(T - 1 - s) * B:(T - s) * B] for s in range(T)], axis=0)
    seq_flat = jnp.where(is_bwd, x_rev, x)                                   # (T*B, PROJ)
    m_proc = [jnp.where(is_bwd, m[:, T - 1 - s:T - s], m[:, s:s + 1])        # list of (B, 1)
              for s in range(T)]

    # Gate activations computed on the full 128-lane vreg, g-gate selected by lane mask.
    lane = lax.broadcasted_iota(jnp.int32, (B, 4 * CELL), 1)
    is_g_lane = (lane >= 2 * CELL) & (lane < 3 * CELL)

    prev_outs = None
    for l in range(N_LAYERS):
        # weight / bias loads hoisted out of the recurrence.
        w_ih = wih_ref[0, l]        # (PROJ, 4*CELL)
        w_hh = whh_ref[0, l]        # (PROJ, 4*CELL)
        bias = b_ref[0, l]          # (1, 4*CELL)
        w_p = wp_ref[0, l]          # (CELL, PROJ)

        # Hoisted input projection: one (T*B, PROJ) @ (PROJ, 4*CELL) matmul per layer.
        gx = jnp.dot(seq_flat, w_ih, preferred_element_type=jnp.float32) + bias  # (T*B, 4C)

        h = jnp.zeros((B, PROJ), jnp.float32)
        c = jnp.zeros((B, CELL), jnp.float32)
        outs = []
        for s in range(T):          # fully unrolled recurrence (T is static)
            gates = gx[s * B:(s + 1) * B] + jnp.dot(
                h, w_hh, preferred_element_type=jnp.float32)                  # (B, 4*CELL)
            act = jnp.where(is_g_lane, jnp.tanh(gates), jax.nn.sigmoid(gates))
            i_g = act[:, 0 * CELL:1 * CELL]
            f_g = act[:, 1 * CELL:2 * CELL]
            g_g = act[:, 2 * CELL:3 * CELL]
            o_g = act[:, 3 * CELL:4 * CELL]

            c_new = jnp.clip(i_g * g_g + f_g * c, -CELL_CLIP, CELL_CLIP)      # cell clip
            pre = o_g * jnp.tanh(c_new)
            h_new = jnp.clip(jnp.dot(pre, w_p, preferred_element_type=jnp.float32),
                             -PROJ_CLIP, PROJ_CLIP)                           # proj clip

            mt = m_proc[s]
            h = mt * h_new + (1.0 - mt) * h
            c = mt * c_new + (1.0 - mt) * c
            outs.append(h_new * mt)

        if l > 0:   # residual / skip connections between layers (not on layer 0)
            outs = [o + r for o, r in zip(outs, prev_outs)]

        # Write this layer's activation, batch-major and in true time order.
        tile_fwd = jnp.stack(outs, axis=1)                 # (B, T, PROJ) if forward
        tile_bwd = jnp.stack(outs[::-1], axis=1)           # (B, T, PROJ) if backward
        out_ref[1 + l] = jnp.where(is_bwd, tile_bwd, tile_fwd).astype(out_ref.dtype)

        prev_outs = outs
        seq_flat = jnp.concatenate(outs, axis=0)           # next layer's input (T*B, PROJ)


def bilstm_stack(tok_tm, mask_f, params):
    """tok_tm: (T*B, PROJ) time-major token reps, mask_f: (B, T) float mask.

    Returns (2*(N_LAYERS+1), B, T, PROJ): rows [0 .. N_LAYERS] are the forward
    halves, rows [N_LAYERS+1 .. 2*N_LAYERS+1] the backward halves.
    """
    n_tok = tok_tm.shape[0]
    out_shape = jax.ShapeDtypeStruct((2 * (N_LAYERS + 1), B, T, PROJ), jnp.float32)
    return pl.pallas_call(
        bilstm_kernel,
        out_shape=out_shape,
        grid=(2,),   # direction axis; independent -> "parallel" (uses both TCs on v7x)
        in_specs=[
            pl.BlockSpec((n_tok, PROJ), lambda d: (0, 0)),
            pl.BlockSpec((B, T), lambda d: (0, 0)),
            pl.BlockSpec((1, N_LAYERS, PROJ, 4 * CELL), lambda d: (d, 0, 0, 0)),
            pl.BlockSpec((1, N_LAYERS, PROJ, 4 * CELL), lambda d: (d, 0, 0, 0)),
            pl.BlockSpec((1, N_LAYERS, 1, 4 * CELL), lambda d: (d, 0, 0, 0)),
            pl.BlockSpec((1, N_LAYERS, CELL, PROJ), lambda d: (d, 0, 0, 0)),
        ],
        out_specs=pl.BlockSpec((N_LAYERS + 1, B, T, PROJ), lambda d: (d, 0, 0, 0)),
        compiler_params=pltpu.CompilerParams(
            dimension_semantics=("parallel",),
            vmem_limit_bytes=32 * 1024 * 1024),
    )(tok_tm, mask_f, params["lstm_w_ih"], params["lstm_w_hh"],
      params["lstm_b"], params["lstm_w_p"])


# ----------------------------- JAX glue: boundaries, embedding, orchestration -----------------------------
def add_sentence_boundaries(char_ids, mask, bos, eos):
    """Replicates allennlp add_sentence_boundary_token_ids for char-id tensors."""
    b, s, c = char_ids.shape
    lens = mask.sum(-1).astype(jnp.int32)                        # (B,)
    shifted = jnp.pad(char_ids, ((0, 0), (1, 1), (0, 0)))        # (B, S+2, C)
    j = jnp.arange(s + 2)[None, :, None]
    l = lens[:, None, None]
    out = jnp.where(j == 0, bos[None, None, :],
          jnp.where(j == l + 1, eos[None, None, :],
          jnp.where((j >= 1) & (j <= l), shifted, 0)))
    new_mask = (out > 0).sum(-1) > 0
    return out.astype(jnp.int32), new_mask


def elmo_bilm_forward(char_ids, params):
    """char_ids: (B, S, MAX_CHARS) int32 -> {'activations': [L+1 x (B, T, 2*PROJ)], 'mask': (B, T)}."""
    mask = (char_ids > 0).sum(-1) > 0
    char_ids_b, mask_b = add_sentence_boundaries(char_ids, mask, params["bos"], params["eos"])
    b, t, c = char_ids_b.shape

    # char embedding lookup (gather on the tiny char-id tensor, already time-major so
    # downstream kernels never need a transpose of the token representation).
    # TODO(synk): the gather itself is left to XLA rather than fused into the kernel
    #             (table is ~2 KB; negligible at these sizes).
    ids_tm = jnp.transpose(char_ids_b, (1, 0, 2)).reshape(t * b, c)      # (T*B, C)
    emb = params["char_emb"][ids_tm]                                     # (T*B, C, D)
    x_flat = emb.reshape(t * b, c * CHAR_DIM)                            # (T*B, 64)

    tok_tm = char_encoder(x_flat, params)                                # (T*B, PROJ) time-major
    mask_f = mask_b.astype(jnp.float32)                                  # (B, T)

    out = bilstm_stack(tok_tm, mask_f, params)                           # (2*(L+1), B, T, PROJ)
    activations = [jnp.concatenate([out[l], out[N_LAYERS + 1 + l]], axis=-1)
                   for l in range(N_LAYERS + 1)]                         # each (B, T, 2*PROJ)

    # TODO(synk): stateful cross-batch hidden-state carry of ElmoLstm (_EncoderBase) not modeled;
    #             initial states are zeros as on the first call.
    return {"activations": activations, "mask": mask_b}


# ----------------------------- deterministic parameter init -----------------------------
def init_params(key):
    ks = iter(jax.random.split(key, 32))
    p = {}
    char_emb = 0.1 * jax.random.normal(next(ks), (CHAR_VOCAB + 1, CHAR_DIM), jnp.float32)
    p["char_emb"] = char_emb.at[0].set(0.0)      # padding row = 0 (as in the weight loader)
    p["bos"] = jnp.arange(1, MAX_CHARS + 1, dtype=jnp.int32)
    p["eos"] = jnp.arange(MAX_CHARS + 1, 2 * MAX_CHARS + 1, dtype=jnp.int32)

    # --- char CNN: raw per-filter conv weights repacked into one banded matrix ---
    wband = np.zeros((CHAR_FLAT, CONV_COLS), np.float32)
    colneg = np.zeros((1, CONV_COLS), np.float32)
    cbias = np.zeros((1, N_FILTERS), np.float32)
    off = 0
    for width, num in FILTERS:
        w = np.asarray(0.1 * jax.random.normal(next(ks), (width, CHAR_DIM, num), jnp.float32))
        b = np.asarray(0.1 * jax.random.normal(next(ks), (1, num), jnp.float32))
        n_pos = MAX_CHARS - width + 1
        cbias[0, off:off + num] = b[0]
        for pos in range(MAX_CHARS):
            c0 = pos * N_FILTERS + off
            if pos < n_pos:
                for k in range(width):
                    r0 = (pos + k) * CHAR_DIM
                    wband[r0:r0 + CHAR_DIM, c0:c0 + num] = w[k]
            else:
                colneg[0, c0:c0 + num] = -1e30   # exclude out-of-range conv windows from the max
        off += num
    p["conv_wband"] = jnp.asarray(wband)
    p["conv_colneg"] = jnp.asarray(colneg)
    p["conv_bias"] = jnp.asarray(cbias)

    p["hw_w"] = 0.1 * jax.random.normal(next(ks), (N_HIGHWAY, N_FILTERS, 2 * N_FILTERS), jnp.float32)
    p["hw_b"] = 0.1 * jax.random.normal(next(ks), (N_HIGHWAY, 1, 2 * N_FILTERS), jnp.float32)
    p["proj_w"] = 0.1 * jax.random.normal(next(ks), (N_FILTERS, PROJ), jnp.float32)
    p["proj_b"] = 0.1 * jax.random.normal(next(ks), (1, PROJ), jnp.float32)

    # --- stacked biLSTM weights: axis0 = direction (0 fwd, 1 bwd), axis1 = layer ---
    p["lstm_w_ih"] = 0.1 * jax.random.normal(next(ks), (2, N_LAYERS, PROJ, 4 * CELL), jnp.float32)
    p["lstm_w_hh"] = 0.1 * jax.random.normal(next(ks), (2, N_LAYERS, PROJ, 4 * CELL), jnp.float32)
    p["lstm_b"] = 0.1 * jax.random.normal(next(ks), (2, N_LAYERS, 1, 4 * CELL), jnp.float32)
    p["lstm_w_p"] = 0.1 * jax.random.normal(next(ks), (2, N_LAYERS, CELL, PROJ), jnp.float32)
    return p


# ----------------------------- main -----------------------------
if __name__ == "__main__":
    key = jax.random.PRNGKey(0)
    pkey, dkey = jax.random.split(key)
    params = init_params(pkey)

    # deterministic char ids, all > 0 (no padding), shape (B, S, MAX_CHARS)
    char_ids = jax.random.randint(dkey, (B, S, MAX_CHARS), 1, CHAR_VOCAB + 1, dtype=jnp.int32)

    forward = jax.jit(elmo_bilm_forward)
    out = forward(char_ids, params)
    for act in out["activations"]:
        jax.block_until_ready(act)
    jax.block_until_ready(out["mask"])

    assert len(out["activations"]) == N_LAYERS + 1
    for act in out["activations"]:
        assert act.shape == (B, T, 2 * PROJ), act.shape
    assert out["mask"].shape == (B, T)

    print("KERNEL_OK")
</pallas_src>

<mosaic_0001>
module attributes {stable_mosaic.version = 11 : i64} {
  func.func @char_encoder_kernel(%arg0: memref<16x64xf32, #tpu.memory_space<vmem>>, %arg1: memref<64x128xf32, #tpu.memory_space<vmem>>, %arg2: memref<1x128xf32, #tpu.memory_space<vmem>>, %arg3: memref<1x16xf32, #tpu.memory_space<vmem>>, %arg4: memref<1x16x32xf32, #tpu.memory_space<vmem>>, %arg5: memref<1x1x32xf32, #tpu.memory_space<vmem>>, %arg6: memref<16x16xf32, #tpu.memory_space<vmem>>, %arg7: memref<1x16xf32, #tpu.memory_space<vmem>>, %arg8: memref<16x16xf32, #tpu.memory_space<vmem>>) attributes {dimension_semantics = [], scalar_prefetch = 0 : i64, scratch_operands = 0 : i64, tpu.core_type = #tpu.core_type<tc>} {
    %c0 = arith.constant 0 : index
    %c0_0 = arith.constant 0 : index
    %0 = vector.load %arg0[%c0, %c0_0] : memref<16x64xf32, #tpu.memory_space<vmem>>, vector<16x64xf32>
    %c0_1 = arith.constant 0 : index
    %c0_2 = arith.constant 0 : index
    %1 = vector.load %arg1[%c0_1, %c0_2] : memref<64x128xf32, #tpu.memory_space<vmem>>, vector<64x128xf32>
    %cst = arith.constant dense<0.000000e+00> : vector<16x128xf32>
    %2 = tpu.matmul %0, %1, %cst {dimension_numbers = #tpu.dot_dimension_numbers<[1], [0], [0], [1], [0, 0, 1, 1], [], []>} : vector<16x64xf32>, vector<64x128xf32>, vector<16x128xf32> -> vector<16x128xf32>
    %c0_3 = arith.constant 0 : index
    %c0_4 = arith.constant 0 : index
    %3 = vector.load %arg2[%c0_3, %c0_4] : memref<1x128xf32, #tpu.memory_space<vmem>>, vector<1x128xf32>
    %4 = vector.broadcast %3 : vector<1x128xf32> to vector<16x128xf32>
    %5 = arith.addf %2, %4 : vector<16x128xf32>
    %6 = vector.extract_strided_slice %5 {offsets = [0, 0], sizes = [16, 16], strides = [1, 1]} : vector<16x128xf32> to vector<16x16xf32>
    %7 = vector.extract_strided_slice %5 {offsets = [0, 16], sizes = [16, 16], strides = [1, 1]} : vector<16x128xf32> to vector<16x16xf32>
    %8 = arith.maximumf %6, %7 : vector<16x16xf32>
    %9 = vector.extract_strided_slice %5 {offsets = [0, 32], sizes = [16, 16], strides = [1, 1]} : vector<16x128xf32> to vector<16x16xf32>
    %10 = arith.maximumf %8, %9 : vector<16x16xf32>
    %11 = vector.extract_strided_slice %5 {offsets = [0, 48], sizes = [16, 16], strides = [1, 1]} : vector<16x128xf32> to vector<16x16xf32>
    %12 = arith.maximumf %10, %11 : vector<16x16xf32>
    %13 = vector.extract_strided_slice %5 {offsets = [0, 64], sizes = [16, 16], strides = [1, 1]} : vector<16x128xf32> to vector<16x16xf32>
    %14 = arith.maximumf %12, %13 : vector<16x16xf32>
    %15 = vector.extract_strided_slice %5 {offsets = [0, 80], sizes = [16, 16], strides = [1, 1]} : vector<16x128xf32> to vector<16x16xf32>
    %16 = arith.maximumf %14, %15 : vector<16x16xf32>
    %17 = vector.extract_strided_slice %5 {offsets = [0, 96], sizes = [16, 16], strides = [1, 1]} : vector<16x128xf32> to vector<16x16xf32>
    %18 = arith.maximumf %16, %17 : vector<16x16xf32>
    %19 = vector.extract_strided_slice %5 {offsets = [0, 112], sizes = [16, 16], strides = [1, 1]} : vector<16x128xf32> to vector<16x16xf32>
    %20 = arith.maximumf %18, %19 : vector<16x16xf32>
    %c0_5 = arith.constant 0 : index
    %c0_6 = arith.constant 0 : index
    %21 = vector.load %arg3[%c0_5, %c0_6] : memref<1x16xf32, #tpu.memory_space<vmem>>, vector<1x16xf32>
    %22 = vector.broadcast %21 : vector<1x16xf32> to vector<16x16xf32>
    %23 = arith.addf %20, %22 : vector<16x16xf32>
    %cst_7 = arith.constant 0.000000e+00 : f32
    %24 = vector.broadcast %cst_7 : f32 to vector<16x16xf32>
    %25 = arith.maximumf %23, %24 : vector<16x16xf32>
    %c0_8 = arith.constant 0 : index
    %c0_9 = arith.constant 0 : index
    %c0_10 = arith.constant 0 : index
    %26 = vector.load %arg4[%c0_8, %c0_9, %c0_10] : memref<1x16x32xf32, #tpu.memory_space<vmem>>, vector<1x16x32xf32>
    %27 = vector.shape_cast %26 : vector<1x16x32xf32> to vector<16x32xf32>
    %cst_11 = arith.constant dense<0.000000e+00> : vector<16x32xf32>
    %28 = tpu.matmul %25, %27, %cst_11 {dimension_numbers = #tpu.dot_dimension_numbers<[1], [0], [0], [1], [0, 0, 1, 1], [], []>} : vector<16x16xf32>, vector<16x32xf32>, vector<16x32xf32> -> vector<16x32xf32>
    %c0_12 = arith.constant 0 : index
    %c0_13 = arith.constant 0 : index
    %c0_14 = arith.constant 0 : index
    %29 = vector.load %arg5[%c0_12, %c0_13, %c0_14] : memref<1x1x32xf32, #tpu.memory_space<vmem>>, vector<1x1x32xf32>
    %30 = vector.shape_cast %29 : vector<1x1x32xf32> to vector<1x32xf32>
    %31 = vector.broadcast %30 : vector<1x32xf32> to vector<16x32xf32>
    %32 = arith.addf %28, %31 : vector<16x32xf32>
    %33 = vector.extract_strided_slice %32 {offsets = [0, 0], sizes = [16, 16], strides = [1, 1]} : vector<16x32xf32> to vector<16x16xf32>
    %cst_15 = arith.constant 0.000000e+00 : f32
    %34 = vector.broadcast %cst_15 : f32 to vector<16x16xf32>
    %35 = arith.maximumf %33, %34 : vector<16x16xf32>
    %36 = vector.extract_strided_slice %32 {offsets = [0, 16], sizes = [16, 16], strides = [1, 1]} : vector<16x32xf32> to vector<16x16xf32>
    %37 = arith.negf %36 : vector<16x16xf32>
    %38 = math.exp %37 : vector<16x16xf32>
    %cst_16 = arith.constant 1.000000e+00 : f32
    %39 = vector.broadcast %cst_16 : f32 to vector<16x16xf32>
    %40 = arith.addf %39, %38 : vector<16x16xf32>
    %41 = arith.divf %39, %40 : vector<16x16xf32>
    %42 = arith.mulf %41, %25 : vector<16x16xf32>
    %cst_17 = arith.constant 1.000000e+00 : f32
    %43 = vector.broadcast %cst_17 : f32 to vector<16x16xf32>
    %44 = arith.subf %43, %41 : vector<16x16xf32>
    %45 = arith.mulf %44, %35 : vector<16x16xf32>
    %46 = arith.addf %42, %45 : vector<16x16xf32>
    %c0_18 = arith.constant 0 : index
    %c0_19 = arith.constant 0 : index
    %47 = vector.load %arg6[%c0_18, %c0_19] : memref<16x16xf32, #tpu.memory_space<vmem>>, vector<16x16xf32>
    %cst_20 = arith.constant dense<0.000000e+00> : vector<16x16xf32>
    %48 = tpu.matmul %46, %47, %cst_20 {dimension_numbers = #tpu.dot_dimension_numbers<[1], [0], [0], [1], [0, 0, 1, 1], [], []>} : vector<16x16xf32>, vector<16x16xf32>, vector<16x16xf32> -> vector<16x16xf32>
    %c0_21 = arith.constant 0 : index
    %c0_22 = arith.constant 0 : index
    %49 = vector.load %arg7[%c0_21, %c0_22] : memref<1x16xf32, #tpu.memory_space<vmem>>, vector<1x16xf32>
    %50 = vector.broadcast %49 : vector<1x16xf32> to vector<16x16xf32>
    %51 = arith.addf %48, %50 : vector<16x16xf32>
    %c0_23 = arith.constant 0 : index
    %c0_24 = arith.constant 0 : index
    %52 = vector.load %arg8[%c0_23, %c0_24] : memref<16x16xf32, #tpu.memory_space<vmem>>, vector<16x16xf32>
    tpu.vector_store %arg8[%c0_23, %c0_24], %51 {strides = array<i32>} : memref<16x16xf32, #tpu.memory_space<vmem>>, vector<16x16xf32>,
    return
  }
}

module attributes {stable_mosaic.version = 11 : i64} {
  func.func @bilstm_kernel(%arg0: i32, %arg1: memref<16x16xf32, #tpu.memory_space<vmem>>, %arg2: memref<2x8xf32, #tpu.memory_space<vmem>>, %arg3: memref<1x2x16x128xf32, #tpu.memory_space<vmem>>, %arg4: memref<1x2x16x128xf32, #tpu.memory_space<vmem>>, %arg5: memref<1x2x1x128xf32, #tpu.memory_space<vmem>>, %arg6: memref<1x2x32x16xf32, #tpu.memory_space<vmem>>, %arg7: memref<3x2x8x16xf32, #tpu.memory_space<vmem>>) attributes {dimension_semantics = [#tpu.dimension_semantics<parallel>], iteration_bounds = array<i64: 2>, scalar_prefetch = 0 : i64, scratch_operands = 0 : i64, tpu.core_type = #tpu.core_type<tc>, window_params = [{pipeline_mode = #tpu.pipeline_mode<synchronous>, transform_indices = @transform_0, window_bounds = array<i64: 16, 16>}, {pipeline_mode = #tpu.pipeline_mode<synchronous>, transform_indices = @transform_1, window_bounds = array<i64: 2, 8>}, {transform_indices = @transform_2, window_bounds = array<i64: 1, 2, 16, 128>}, {transform_indices = @transform_3, window_bounds = array<i64: 1, 2, 16, 128>}, {transform_indices = @transform_4, window_bounds = array<i64: 1, 2, 1, 128>}, {transform_indices = @transform_5, window_bounds = array<i64: 1, 2, 32, 16>}, {transform_indices = @transform_6, window_bounds = array<i64: 3, 2, 8, 16>}]} {
    %c1_i32 = arith.constant 1 : i32
    %0 = arith.cmpi eq, %arg0, %c1_i32 : i32
    %c0 = arith.constant 0 : index
    %c0_0 = arith.constant 0 : index
    %1 = vector.load %arg1[%c0, %c0_0] : memref<16x16xf32, #tpu.memory_space<vmem>>, vector<16x16xf32>
    %c0_1 = arith.constant 0 : index
    %c0_2 = arith.constant 0 : index
    %2 = vector.load %arg2[%c0_1, %c0_2] : memref<2x8xf32, #tpu.memory_space<vmem>>, vector<2x8xf32>
    %3 = vector.extract_strided_slice %1 {offsets = [0, 0], sizes = [2, 16], strides = [1, 1]} : vector<16x16xf32> to vector<2x16xf32>
    %4 = vector.extract_strided_slice %1 {offsets = [2, 0], sizes = [2, 16], strides = [1, 1]} : vector<16x16xf32> to vector<2x16xf32>
    %5 = vector.extract_strided_slice %1 {offsets = [4, 0], sizes = [2, 16], strides = [1, 1]} : vector<16x16xf32> to vector<2x16xf32>
    %6 = vector.extract_strided_slice %1 {offsets = [6, 0], sizes = [2, 16], strides = [1, 1]} : vector<16x16xf32> to vector<2x16xf32>
    %7 = vector.extract_strided_slice %1 {offsets = [8, 0], sizes = [2, 16], strides = [1, 1]} : vector<16x16xf32> to vector<2x16xf32>
    %8 = vector.extract_strided_slice %1 {offsets = [10, 0], sizes = [2, 16], strides = [1, 1]} : vector<16x16xf32> to vector<2x16xf32>
    %9 = vector.extract_strided_slice %1 {offsets = [12, 0], sizes = [2, 16], strides = [1, 1]} : vector<16x16xf32> to vector<2x16xf32>
    %10 = vector.extract_strided_slice %1 {offsets = [14, 0], sizes = [2, 16], strides = [1, 1]} : vector<16x16xf32> to vector<2x16xf32>
    %11 = vector.shape_cast %3 : vector<2x16xf32> to vector<2x1x16xf32>
    %12 = vector.shape_cast %4 : vector<2x16xf32> to vector<2x1x16xf32>
    %13 = vector.shape_cast %5 : vector<2x16xf32> to vector<2x1x16xf32>
    %14 = vector.shape_cast %6 : vector<2x16xf32> to vector<2x1x16xf32>
    %15 = vector.shape_cast %7 : vector<2x16xf32> to vector<2x1x16xf32>
    %16 = vector.shape_cast %8 : vector<2x16xf32> to vector<2x1x16xf32>
    %17 = vector.shape_cast %9 : vector<2x16xf32> to vector<2x1x16xf32>
    %18 = vector.shape_cast %10 : vector<2x16xf32> to vector<2x1x16xf32>
    %19 = tpu.concatenate %11, %12, %13, %14, %15, %16, %17, %18 in 1 : vector<2x1x16xf32>, vector<2x1x16xf32>, vector<2x1x16xf32>, vector<2x1x16xf32>, vector<2x1x16xf32>, vector<2x1x16xf32>, vector<2x1x16xf32>, vector<2x1x16xf32> -> vector<2x8x16xf32>
    %20 = vector.shape_cast %2 : vector<2x8xf32> to vector<2x8x1xf32>
    %21 = vector.broadcast %20 : vector<2x8x1xf32> to vector<2x8x16xf32>
    %22 = arith.mulf %19, %21 : vector<2x8x16xf32>
    %c0_3 = arith.constant 0 : index
    %c0_4 = arith.constant 0 : index
    %c0_5 = arith.constant 0 : index
    %c0_6 = arith.constant 0 : index
    %23 = vector.load %arg7[%c0_3, %c0_4, %c0_5, %c0_6] : memref<3x2x8x16xf32, #tpu.memory_space<vmem>>, vector<1x2x8x16xf32>
    %24 = vector.shape_cast %23 : vector<1x2x8x16xf32> to vector<2x8x16xf32>
    %25 = vector.shape_cast %22 : vector<2x8x16xf32> to vector<1x2x8x16xf32>
    tpu.vector_store %arg7[%c0_3, %c0_4, %c0_5, %c0_6], %25 {strides = array<i32>} : memref<3x2x8x16xf32, #tpu.memory_space<vmem>>, vector<1x2x8x16xf32>,
    %26 = vector.extract_strided_slice %1 {offsets = [14, 0], sizes = [2, 16], strides = [1, 1]} : vector<16x16xf32> to vector<2x16xf32>
    %27 = vector.extract_strided_slice %1 {offsets = [12, 0], sizes = [2, 16], strides = [1, 1]} : vector<16x16xf32> to vector<2x16xf32>
    %28 = vector.extract_strided_slice %1 {offsets = [10, 0], sizes = [2, 16], strides = [1, 1]} : vector<16x16xf32> to vector<2x16xf32>
    %29 = vector.extract_strided_slice %1 {offsets = [8, 0], sizes = [2, 16], strides = [1, 1]} : vector<16x16xf32> to vector<2x16xf32>
    %30 = vector.extract_strided_slice %1 {offsets = [6, 0], sizes = [2, 16], strides = [1, 1]} : vector<16x16xf32> to vector<2x16xf32>
    %31 = vector.extract_strided_slice %1 {offsets = [4, 0], sizes = [2, 16], strides = [1, 1]} : vector<16x16xf32> to vector<2x16xf32>
    %32 = vector.extract_strided_slice %1 {offsets = [2, 0], sizes = [2, 16], strides = [1, 1]} : vector<16x16xf32> to vector<2x16xf32>
    %33 = vector.extract_strided_slice %1 {offsets = [0, 0], sizes = [2, 16], strides = [1, 1]} : vector<16x16xf32> to vector<2x16xf32>
    %34 = tpu.concatenate %26, %27, %28, %29, %30, %31, %32, %33 in 0 : vector<2x16xf32>, vector<2x16xf32>, vector<2x16xf32>, vector<2x16xf32>, vector<2x16xf32>, vector<2x16xf32>, vector<2x16xf32>, vector<2x16xf32> -> vector<16x16xf32>
    %35 = arith.select %0, %34, %1 : vector<16x16xf32>
    %36 = vector.extract_strided_slice %2 {offsets = [0, 7], sizes = [2, 1], strides = [1, 1]} : vector<2x8xf32> to vector<2x1xf32>
    %37 = vector.extract_strided_slice %2 {offsets = [0, 0], sizes = [2, 1], strides = [1, 1]} : vector<2x8xf32> to vector<2x1xf32>
    %38 = arith.select %0, %36, %37 : vector<2x1xf32>
    %39 = vector.extract_strided_slice %2 {offsets = [0, 6], sizes = [2, 1], strides = [1, 1]} : vector<2x8xf32> to vector<2x1xf32>
    %40 = vector.extract_strided_slice %2 {offsets = [0, 1], sizes = [2, 1], strides = [1, 1]} : vector<2x8xf32> to vector<2x1xf32>
    %41 = arith.select %0, %39, %40 : vector<2x1xf32>
    %42 = vector.extract_strided_slice %2 {offsets = [0, 5], sizes = [2, 1], strides = [1, 1]} : vector<2x8xf32> to vector<2x1xf32>
    %43 = vector.extract_strided_slice %2 {offsets = [0, 2], sizes = [2, 1], strides = [1, 1]} : vector<2x8xf32> to vector<2x1xf32>
    %44 = arith.select %0, %42, %43 : vector<2x1xf32>
    %45 = vector.extract_strided_slice %2 {offsets = [0, 4], sizes = [2, 1], strides = [1, 1]} : vector<2x8xf32> to vector<2x1xf32>
    %46 = vector.extract_strided_slice %2 {offsets = [0, 3], sizes = [2, 1], strides = [1, 1]} : vector<2x8xf32> to vector<2x1xf32>
    %47 = arith.select %0, %45, %46 : vector<2x1xf32>
    %48 = vector.extract_strided_slice %2 {offsets = [0, 3], sizes = [2, 1], strides = [1, 1]} : vector<2x8xf32> to vector<2x1xf32>
    %49 = vector.extract_strided_slice %2 {offsets = [0, 4], sizes = [2, 1], strides = [1, 1]} : vector<2x8xf32> to vector<2x1xf32>
    %50 = arith.select %0, %48, %49 : vector<2x1xf32>
    %51 = vector.extract_strided_slice %2 {offsets = [0, 2], sizes = [2, 1], strides = [1, 1]} : vector<2x8xf32> to vector<2x1xf32>
    %52 = vector.extract_strided_slice %2 {offsets = [0, 5], sizes = [2, 1], strides = [1, 1]} : vector<2x8xf32> to vector<2x1xf32>
    %53 = arith.select %0, %51, %52 : vector<2x1xf32>
    %54 = vector.extract_strided_slice %2 {offsets = [0, 1], sizes = [2, 1], strides = [1, 1]} : vector<2x8xf32> to vector<2x1xf32>
    %55 = vector.extract_strided_slice %2 {offsets = [0, 6], sizes = [2, 1], strides = [1, 1]} : vector<2x8xf32> to vector<2x1xf32>
    %56 = arith.select %0, %54, %55 : vector<2x1xf32>
    %57 = vector.extract_strided_slice %2 {offsets = [0, 0], sizes = [2, 1], strides = [1, 1]} : vector<2x8xf32> to vector<2x1xf32>
    %58 = vector.extract_strided_slice %2 {offsets = [0, 7], sizes = [2, 1], strides = [1, 1]} : vector<2x8xf32> to vector<2x1xf32>
    %59 = arith.select %0, %57, %58 : vector<2x1xf32>
    %60 = tpu.iota {dimensions = array<i32: 1>} : vector<2x128xi32>
    %c64_i32 = arith.constant 64 : i32
    %61 = vector.broadcast %c64_i32 : i32 to vector<2x128xi32>
    %62 = arith.cmpi sge, %60, %61 : vector<2x128xi32>
    %c96_i32 = arith.constant 96 : i32
    %63 = vector.broadcast %c96_i32 : i32 to vector<2x128xi32>
    %64 = arith.cmpi slt, %60, %63 : vector<2x128xi32>
    %65 = arith.andi %62, %64 : vector<2x128xi1>
    %c0_7 = arith.constant 0 : index
    %c0_8 = arith.constant 0 : index
    %c0_9 = arith.constant 0 : index
    %c0_10 = arith.constant 0 : index
    %66 = vector.load %arg3[%c0_7, %c0_8, %c0_9, %c0_10] : memref<1x2x16x128xf32, #tpu.memory_space<vmem>>, vector<1x1x16x128xf32>
    %67 = vector.shape_cast %66 : vector<1x1x16x128xf32> to vector<16x128xf32>
    %c0_11 = arith.constant 0 : index
    %c0_12 = arith.constant 0 : index
    %c0_13 = arith.constant 0 : index
    %c0_14 = arith.constant 0 : index
    %68 = vector.load %arg4[%c0_11, %c0_12, %c0_13, %c0_14] : memref<1x2x16x128xf32, #tpu.memory_space<vmem>>, vector<1x1x16x128xf32>
    %69 = vector.shape_cast %68 : vector<1x1x16x128xf32> to vector<16x128xf32>
    %c0_15 = arith.constant 0 : index
    %c0_16 = arith.constant 0 : index
    %c0_17 = arith.constant 0 : index
    %c0_18 = arith.constant 0 : index
    %70 = vector.load %arg5[%c0_15, %c0_16, %c0_17, %c0_18] : memref<1x2x1x128xf32, #tpu.memory_space<vmem>>, vector<1x1x1x128xf32>
    %71 = vector.shape_cast %70 : vector<1x1x1x128xf32> to vector<1x128xf32>
    %c0_19 = arith.constant 0 : index
    %c0_20 = arith.constant 0 : index
    %c0_21 = arith.constant 0 : index
    %c0_22 = arith.constant 0 : index
    %72 = vector.load %arg6[%c0_19, %c0_20, %c0_21, %c0_22] : memref<1x2x32x16xf32, #tpu.memory_space<vmem>>, vector<1x1x32x16xf32>
    %73 = vector.shape_cast %72 : vector<1x1x32x16xf32> to vector<32x16xf32>
    %cst = arith.constant dense<0.000000e+00> : vector<16x128xf32>
    %74 = tpu.matmul %35, %67, %cst {dimension_numbers = #tpu.dot_dimension_numbers<[1], [0], [0], [1], [0, 0, 1, 1], [], []>} : vector<16x16xf32>, vector<16x128xf32>, vector<16x128xf32> -> vector<16x128xf32>
    %75 = vector.broadcast %71 : vector<1x128xf32> to vector<16x128xf32>
    %76 = arith.addf %74, %75 : vector<16x128xf32>
    %cst_23 = arith.constant 0.000000e+00 : f32
    %77 = vector.broadcast %cst_23 : f32 to vector<2x16xf32>
    %cst_24 = arith.constant 0.000000e+00 : f32
    %78 = vector.broadcast %cst_24 : f32 to vector<2x32xf32>
    %79 = vector.extract_strided_slice %76 {offsets = [0, 0], sizes = [2, 128], strides = [1, 1]} : vector<16x128xf32> to vector<2x128xf32>
    %cst_25 = arith.constant dense<0.000000e+00> : vector<2x128xf32>
    %80 = tpu.matmul %77, %69, %cst_25 {dimension_numbers = #tpu.dot_dimension_numbers<[1], [0], [0], [1], [0, 0, 1, 1], [], []>} : vector<2x16xf32>, vector<16x128xf32>, vector<2x128xf32> -> vector<2x128xf32>
    %81 = arith.addf %79, %80 : vector<2x128xf32>
    %82 = math.tanh %81 : vector<2x128xf32>
    %83 = arith.negf %81 : vector<2x128xf32>
    %84 = math.exp %83 : vector<2x128xf32>
    %cst_26 = arith.constant 1.000000e+00 : f32
    %85 = vector.broadcast %cst_26 : f32 to vector<2x128xf32>
    %86 = arith.addf %85, %84 : vector<2x128xf32>
    %87 = arith.divf %85, %86 : vector<2x128xf32>
    %88 = arith.select %65, %82, %87 : vector<2x128xi1>, vector<2x128xf32>
    %89 = vector.extract_strided_slice %88 {offsets = [0, 0], sizes = [2, 32], strides = [1, 1]} : vector<2x128xf32> to vector<2x32xf32>
    %90 = vector.extract_strided_slice %88 {offsets = [0, 32], sizes = [2, 32], strides = [1, 1]} : vector<2x128xf32> to vector<2x32xf32>
    %91 = vector.extract_strided_slice %88 {offsets = [0, 64], sizes = [2, 32], strides = [1, 1]} : vector<2x128xf32> to vector<2x32xf32>
    %92 = vector.extract_strided_slice %88 {offsets = [0, 96], sizes = [2, 32], strides = [1, 1]} : vector<2x128xf32> to vector<2x32xf32>
    %93 = arith.mulf %89, %91 : vector<2x32xf32>
    %94 = arith.mulf %90, %78 : vector<2x32xf32>
    %95 = arith.addf %93, %94 : vector<2x32xf32>
    %cst_27 = arith.constant -3.000000e+00 : f32
    %cst_28 = arith.constant 3.000000e+00 : f32
    %96 = vector.broadcast %cst_27 : f32 to vector<2x32xf32>
    %97 = arith.maximumf %96, %95 : vector<2x32xf32>
    %98 = vector.broadcast %cst_28 : f32 to vector<2x32xf32>
    %99 = arith.minimumf %98, %97 : vector<2x32xf32>
    %100 = math.tanh %99 : vector<2x32xf32>
    %101 = arith.mulf %92, %100 : vector<2x32xf32>
    %cst_29 = arith.constant dense<0.000000e+00> : vector<2x16xf32>
    %102 = tpu.matmul %101, %73, %cst_29 {dimension_numbers = #tpu.dot_dimension_numbers<[1], [0], [0], [1], [0, 0, 1, 1], [], []>} : vector<2x32xf32>, vector<32x16xf32>, vector<2x16xf32> -> vector<2x16xf32>
    %cst_30 = arith.constant -3.000000e+00 : f32
    %cst_31 = arith.constant 3.000000e+00 : f32
    %103 = vector.broadcast %cst_30 : f32 to vector<2x16xf32>
    %104 = arith.maximumf %103, %102 : vector<2x16xf32>
    %105 = vector.broadcast %cst_31 : f32 to vector<2x16xf32>
    %106 = arith.minimumf %105, %104 : vector<2x16xf32>
    %107 = vector.broadcast %38 : vector<2x1xf32> to vector<2x16xf32>
    %108 = arith.mulf %107, %106 : vector<2x16xf32>
    %cst_32 = arith.constant 1.000000e+00 : f32
    %109 = vector.broadcast %cst_32 : f32 to vector<2x1xf32>
    %110 = arith.subf %109, %38 : vector<2x1xf32>
    %111 = vector.broadcast %110 : vector<2x1xf32> to vector<2x16xf32>
    %112 = arith.mulf %111, %77 : vector<2x16xf32>
    %113 = arith.addf %108, %112 : vector<2x16xf32>
    %114 = vector.broadcast %38 : vector<2x1xf32> to vector<2x32xf32>
    %115 = arith.mulf %114, %99 : vector<2x32xf32>
    %cst_33 = arith.constant 1.000000e+00 : f32
    %116 = vector.broadcast %cst_33 : f32 to vector<2x1xf32>
    %117 = arith.subf %116, %38 : vector<2x1xf32>
    %118 = vector.broadcast %117 : vector<2x1xf32> to vector<2x32xf32>
    %119 = arith.mulf %118, %78 : vector<2x32xf32>
    %120 = arith.addf %115, %119 : vector<2x32xf32>
    %121 = vector.broadcast %38 : vector<2x1xf32> to vector<2x16xf32>
    %122 = arith.mulf %106, %121 : vector<2x16xf32>
    %123 = vector.extract_strided_slice %76 {offsets = [2, 0], sizes = [2, 128], strides = [1, 1]} : vector<16x128xf32> to vector<2x128xf32>
    %cst_34 = arith.constant dense<0.000000e+00> : vector<2x128xf32>
    %124 = tpu.matmul %113, %69, %cst_34 {dimension_numbers = #tpu.dot_dimension_numbers<[1], [0], [0], [1], [0, 0, 1, 1], [], []>} : vector<2x16xf32>, vector<16x128xf32>, vector<2x128xf32> -> vector<2x128xf32>
    %125 = arith.addf %123, %124 : vector<2x128xf32>
    %126 = math.tanh %125 : vector<2x128xf32>
    %127 = arith.negf %125 : vector<2x128xf32>
    %128 = math.exp %127 : vector<2x128xf32>
    %cst_35 = arith.constant 1.000000e+00 : f32
    %129 = vector.broadcast %cst_35 : f32 to vector<2x128xf32>
    %130 = arith.addf %129, %128 : vector<2x128xf32>
    %131 = arith.divf %129, %130 : vector<2x128xf32>
    %132 = arith.select %65, %126, %131 : vector<2x128xi1>, vector<2x128xf32>
    %133 = vector.extract_strided_slice %132 {offsets = [0, 0], sizes = [2, 32], strides = [1, 1]} : vector<2x128xf32> to vector<2x32xf32>
    %134 = vector.extract_strided_slice %132 {offsets = [0, 32], sizes = [2, 32], strides = [1, 1]} : vector<2x128xf32> to vector<2x32xf32>
    %135 = vector.extract_strided_slice %132 {offsets = [0, 64], sizes = [2, 32], strides = [1, 1]} : vector<2x128xf32> to vector<2x32xf32>
    %136 = vector.extract_strided_slice %132 {offsets = [0, 96], sizes = [2, 32], strides = [1, 1]} : vector<2x128xf32> to vector<2x32xf32>
    %137 = arith.mulf %133, %135 : vector<2x32xf32>
    %138 = arith.mulf %134, %120 : vector<2x32xf32>
    %139 = arith.addf %137, %138 : vector<2x32xf32>
    %cst_36 = arith.constant -3.000000e+00 : f32
    %cst_37 = arith.constant 3.000000e+00 : f32
    %140 = vector.broadcast %cst_36 : f32 to vector<2x32xf32>
    %141 = arith.maximumf %140, %139 : vector<2x32xf32>
    %142 = vector.broadcast %cst_37 : f32 to vector<2x32xf32>
    %143 = arith.minimumf %142, %141 : vector<2x32xf32>
    %144 = math.tanh %143 : vector<2x32xf32>
    %145 = arith.mulf %136, %144 : vector<2x32xf32>
    %cst_38 = arith.constant dense<0.000000e+00> : vector<2x16xf32>
    %146 = tpu.matmul %145, %73, %cst_38 {dimension_numbers = #tpu.dot_dimension_numbers<[1], [0], [0], [1], [0, 0, 1, 1], [], []>} : vector<2x32xf32>, vector<32x16xf32>, vector<2x16xf32> -> vector<2x16xf32>
    %cst_39 = arith.constant -3.000000e+00 : f32
    %cst_40 = arith.constant 3.000000e+00 : f32
    %147 = vector.broadcast %cst_39 : f32 to vector<2x16xf32>
    %148 = arith.maximumf %147, %146 : vector<2x16xf32>
    %149 = vector.broadcast %cst_40 : f32 to vector<2x16xf32>
    %150 = arith.minimumf %149, %148 : vector<2x16xf32>
    %151 = vector.broadcast %41 : vector<2x1xf32> to vector<2x16xf32>
    %152 = arith.mulf %151, %150 : vector<2x16xf32>
    %cst_41 = arith.constant 1.000000e+00 : f32
    %153 = vector.broadcast %cst_41 : f32 to vector<2x1xf32>
    %154 = arith.subf %153, %41 : vector<2x1xf32>
    %155 = vector.broadcast %154 : vector<2x1xf32> to vector<2x16xf32>
    %156 = arith.mulf %155, %113 : vector<2x16xf32>
    %157 = arith.addf %152, %156 : vector<2x16xf32>
    %158 = vector.broadcast %41 : vector<2x1xf32> to vector<2x32xf32>
    %159 = arith.mulf %158, %143 : vector<2x32xf32>
    %cst_42 = arith.constant 1.000000e+00 : f32
    %160 = vector.broadcast %cst_42 : f32 to vector<2x1xf32>
    %161 = arith.subf %160, %41 : vector<2x1xf32>
    %162 = vector.broadcast %161 : vector<2x1xf32> to vector<2x32xf32>
    %163 = arith.mulf %162, %120 : vector<2x32xf32>
    %164 = arith.addf %159, %163 : vector<2x32xf32>
    %165 = vector.broadcast %41 : vector<2x1xf32> to vector<2x16xf32>
    %166 = arith.mulf %150, %165 : vector<2x16xf32>
    %167 = vector.extract_strided_slice %76 {offsets = [4, 0], sizes = [2, 128], strides = [1, 1]} : vector<16x128xf32> to vector<2x128xf32>
    %cst_43 = arith.constant dense<0.000000e+00> : vector<2x128xf32>
    %168 = tpu.matmul %157, %69, %cst_43 {dimension_numbers = #tpu.dot_dimension_numbers<[1], [0], [0], [1], [0, 0, 1, 1], [], []>} : vector<2x16xf32>, vector<16x128xf32>, vector<2x128xf32> -> vector<2x128xf32>
    %169 = arith.addf %167, %168 : vector<2x128xf32>
    %170 = math.tanh %169 : vector<2x128xf32>
    %171 = arith.negf %169 : vector<2x128xf32>
    %172 = math.exp %171 : vector<2x128xf32>
    %cst_44 = arith.constant 1.000000e+00 : f32
    %173 = vector.broadcast %cst_44 : f32 to vector<2x128xf32>
    %174 = arith.addf %173, %172 : vector<2x128xf32>
    %175 = arith.divf %173, %174 : vector<2x128xf32>
    %176 = arith.select %65, %170, %175 : vector<2x128xi1>, vector<2x128xf32>
    %177 = vector.extract_strided_slice %176 {offsets = [0, 0], sizes = [2, 32], strides = [1, 1]} : vector<2x128xf32> to vector<2x32xf32>
    %178 = vector.extract_strided_slice %176 {offsets = [0, 32], sizes = [2, 32], strides = [1, 1]} : vector<2x128xf32> to vector<2x32xf32>
    %179 = vector.extract_strided_slice %176 {offsets = [0, 64], sizes = [2, 32], strides = [1, 1]} : vector<2x128xf32> to vector<2x32xf32>
    %180 = vector.extract_strided_slice %176 {offsets = [0, 96], sizes = [2, 32], strides = [1, 1]} : vector<2x128xf32> to vector<2x32xf32>
    %181 = arith.mulf %177, %179 : vector<2x32xf32>
    %182 = arith.mulf %178, %164 : vector<2x32xf32>
    %183 = arith.addf %181, %182 : vector<2x32xf32>
    %cst_45 = arith.constant -3.000000e+00 : f32
    %cst_46 = arith.constant 3.000000e+00 : f32
    %184 = vector.broadcast %cst_45 : f32 to vector<2x32xf32>
    %185 = arith.maximumf %184, %183 : vector<2x32xf32>
    %186 = vector.broadcast %cst_46 : f32 to vector<2x32xf32>
    %187 = arith.minimumf %186, %185 : vector<2x32xf32>
    %188 = math.tanh %187 : vector<2x32xf32>
    %189 = arith.mulf %180, %188 : vector<2x32xf32>
    %cst_47 = arith.constant dense<0.000000e+00> : vector<2x16xf32>
    %190 = tpu.matmul %189, %73, %cst_47 {dimension_numbers = #tpu.dot_dimension_numbers<[1], [0], [0], [1], [0, 0, 1, 1], [], []>} : vector<2x32xf32>, vector<32x16xf32>, vector<2x16xf32> -> vector<2x16xf32>
    %cst_48 = arith.constant -3.000000e+00 : f32
    %cst_49 = arith.constant 3.000000e+00 : f32
    %191 = vector.broadcast %cst_48 : f32 to vector<2x16xf32>
    %192 = arith.maximumf %191, %190 : vector<2x16xf32>
    %193 = vector.broadcast %cst_49 : f32 to vector<2x16xf32>
    %194 = arith.minimumf %193, %192 : vector<2x16xf32>
    %195 = vector.broadcast %44 : vector<2x1xf32> to vector<2x16xf32>
    %196 = arith.mulf %195, %194 : vector<2x16xf32>
    %cst_50 = arith.constant 1.000000e+00 : f32
    %197 = vector.broadcast %cst_50 : f32 to vector<2x1xf32>
    %198 = arith.subf %197, %44 : vector<2x1xf32>
    %199 = vector.broadcast %198 : vector<2x1xf32> to vector<2x16xf32>
    %200 = arith.mulf %199, %157 : vector<2x16xf32>
    %201 = arith.addf %196, %200 : vector<2x16xf32>
    %202 = vector.broadcast %44 : vector<2x1xf32> to vector<2x32xf32>
    %203 = arith.mulf %202, %187 : vector<2x32xf32>
    %cst_51 = arith.constant 1.000000e+00 : f32
    %204 = vector.broadcast %cst_51 : f32 to vector<2x1xf32>
    %205 = arith.subf %204, %44 : vector<2x1xf32>
    %206 = vector.broadcast %205 : vector<2x1xf32> to vector<2x32xf32>
    %207 = arith.mulf %206, %164 : vector<2x32xf32>
    %208 = arith.addf %203, %207 : vector<2x32xf32>
    %209 = vector.broadcast %44 : vector<2x1xf32> to vector<2x16xf32>
    %210 = arith.mulf %194, %209 : vector<2x16xf32>
    %211 = vector.extract_strided_slice %76 {offsets = [6, 0], sizes = [2, 128], strides = [1, 1]} : vector<16x128xf32> to vector<2x128xf32>
    %cst_52 = arith.constant dense<0.000000e+00> : vector<2x128xf32>
    %212 = tpu.matmul %201, %69, %cst_52 {dimension_numbers = #tpu.dot_dimension_numbers<[1], [0], [0], [1], [0, 0, 1, 1], [], []>} : vector<2x16xf32>, vector<16x128xf32>, vector<2x128xf32> -> vector<2x128xf32>
    %213 = arith.addf %211, %212 : vector<2x128xf32>
    %214 = math.tanh %213 : vector<2x128xf32>
    %215 = arith.negf %213 : vector<2x128xf32>
    %216 = math.exp %215 : vector<2x128xf32>
    %cst_53 = arith.constant 1.000000e+00 : f32
    %217 = vector.broadcast %cst_53 : f32 to vector<2x128xf32>
    %218 = arith.addf %217, %216 : vector<2x128xf32>
    %219 = arith.divf %217, %218 : vector<2x128xf32>
    %220 = arith.select %65, %214, %219 : vector<2x128xi1>, vector<2x128xf32>
    %221 = vector.extract_strided_slice %220 {offsets = [0, 0], sizes = [2, 32], strides = [1, 1]} : vector<2x128xf32> to vector<2x32xf32>
    %222 = vector.extract_strided_slice %220 {offsets = [0, 32], sizes = [2, 32], strides = [1, 1]} : vector<2x128xf32> to vector<2x32xf32>
    %223 = vector.extract_strided_slice %220 {offsets = [0, 64], sizes = [2, 32], strides = [1, 1]} : vector<2x128xf32> to vector<2x32xf32>
    %224 = vector.extract_strided_slice %220 {offsets = [0, 96], sizes = [2, 32], strides = [1, 1]} : vector<2x128xf32> to vector<2x32xf32>
    %225 = arith.mulf %221, %223 : vector<2x32xf32>
    %226 = arith.mulf %222, %208 : vector<2x32xf32>
    %227 = arith.addf %225, %226 : vector<2x32xf32>
    %cst_54 = arith.constant -3.000000e+00 : f32
    %cst_55 = arith.constant 3.000000e+00 : f32
    %228 = vector.broadcast %cst_54 : f32 to vector<2x32xf32>
    %229 = arith.maximumf %228, %227 : vector<2x32xf32>
    %230 = vector.broadcast %cst_55 : f32 to vector<2x32xf32>
    %231 = arith.minimumf %230, %229 : vector<2x32xf32>
    %232 = math.tanh %231 : vector<2x32xf32>
    %233 = arith.mulf %224, %232 : vector<2x32xf32>
    %cst_56 = arith.constant dense<0.000000e+00> : vector<2x16xf32>
    %234 = tpu.matmul %233, %73, %cst_56 {dimension_numbers = #tpu.dot_dimension_numbers<[1], [0], [0], [1], [0, 0, 1, 1], [], []>} : vector<2x32xf32>, vector<32x16xf32>, vector<2x16xf32> -> vector<2x16xf32>
    %cst_57 = arith.constant -3.000000e+00 : f32
    %cst_58 = arith.constant 3.000000e+00 : f32
    %235 = vector.broadcast %cst_57 : f32 to vector<2x16xf32>
    %236 = arith.maximumf %235, %234 : vector<2x16xf32>
    %237 = vector.broadcast %cst_58 : f32 to vector<2x16xf32>
    %238 = arith.minimumf %237, %236 : vector<2x16xf32>
    %239 = vector.broadcast %47 : vector<2x1xf32> to vector<2x16xf32>
    %240 = arith.mulf %239, %238 : vector<2x16xf32>
    %cst_59 = arith.constant 1.000000e+00 : f32
    %241 = vector.broadcast %cst_59 : f32 to vector<2x1xf32>
    %242 = arith.subf %241, %47 : vector<2x1xf32>
    %243 = vector.broadcast %242 : vector<2x1xf32> to vector<2x16xf32>
    %244 = arith.mulf %243, %201 : vector<2x16xf32>
    %245 = arith.addf %240, %244 : vector<2x16xf32>
    %246 = vector.broadcast %47 : vector<2x1xf32> to vector<2x32xf32>
    %247 = arith.mulf %246, %231 : vector<2x32xf32>
    %cst_60 = arith.constant 1.000000e+00 : f32
    %248 = vector.broadcast %cst_60 : f32 to vector<2x1xf32>
    %249 = arith.subf %248, %47 : vector<2x1xf32>
    %250 = vector.broadcast %249 : vector<2x1xf32> to vector<2x32xf32>
    %251 = arith.mulf %250, %208 : vector<2x32xf32>
    %252 = arith.addf %247, %251 : vector<2x32xf32>
    %253 = vector.broadcast %47 : vector<2x1xf32> to vector<2x16xf32>
    %254 = arith.mulf %238, %253 : vector<2x16xf32>
    %255 = vector.extract_strided_slice %76 {offsets = [8, 0], sizes = [2, 128], strides = [1, 1]} : vector<16x128xf32> to vector<2x128xf32>
    %cst_61 = arith.constant dense<0.000000e+00> : vector<2x128xf32>
    %256 = tpu.matmul %245, %69, %cst_61 {dimension_numbers = #tpu.dot_dimension_numbers<[1], [0], [0], [1], [0, 0, 1, 1], [], []>} : vector<2x16xf32>, vector<16x128xf32>, vector<2x128xf32> -> vector<2x128xf32>
    %257 = arith.addf %255, %256 : vector<2x128xf32>
    %258 = math.tanh %257 : vector<2x128xf32>
    %259 = arith.negf %257 : vector<2x128xf32>
    %260 = math.exp %259 : vector<2x128xf32>
    %cst_62 = arith.constant 1.000000e+00 : f32
    %261 = vector.broadcast %cst_62 : f32 to vector<2x128xf32>
    %262 = arith.addf %261, %260 : vector<2x128xf32>
    %263 = arith.divf %261, %262 : vector<2x128xf32>
    %264 = arith.select %65, %258, %263 : vector<2x128xi1>, vector<2x128xf32>
    %265 = vector.extract_strided_slice %264 {offsets = [0, 0], sizes = [2, 32], strides = [1, 1]} : vector<2x128xf32> to vector<2x32xf32>
    %266 = vector.extract_strided_slice %264 {offsets = [0, 32], sizes = [2, 32], strides = [1, 1]} : vector<2x128xf32> to vector<2x32xf32>
    %267 = vector.extract_strided_slice %264 {offsets = [0, 64], sizes = [2, 32], strides = [1, 1]} : vector<2x128xf32> to vector<2x32xf32>
    %268 = vector.extract_strided_slice %264 {offsets = [0, 96], sizes = [2, 32], strides = [1, 1]} : vector<2x128xf32> to vector<2x32xf32>
    %269 = arith.mulf %265, %267 : vector<2x32xf32>
    %270 = arith.mulf %266, %252 : vector<2x32xf32>
    %271 = arith.addf %269, %270 : vector<2x32xf32>
    %cst_63 = arith.constant -3.000000e+00 : f32
    %cst_64 = arith.constant 3.000000e+00 : f32
    %272 = vector.broadcast %cst_63 : f32 to vector<2x32xf32>
    %273 = arith.maximumf %272, %271 : vector<2x32xf32>
    %274 = vector.broadcast %cst_64 : f32 to vector<2x32xf32>
    %275 = arith.minimumf %274, %273 : vector<2x32xf32>
    %276 = math.tanh %275 : vector<2x32xf32>
    %277 = arith.mulf %268, %276 : vector<2x32xf32>
    %cst_65 = arith.constant dense<0.000000e+00> : vector<2x16xf32>
    %278 = tpu.matmul %277, %73, %cst_65 {dimension_numbers = #tpu.dot_dimension_numbers<[1], [0], [0], [1], [0, 0, 1, 1], [], []>} : vector<2x32xf32>, vector<32x16xf32>, vector<2x16xf32> -> vector<2x16xf32>
    %cst_66 = arith.constant -3.000000e+00 : f32
    %cst_67 = arith.constant 3.000000e+00 : f32
    %279 = vector.broadcast %cst_66 : f32 to vector<2x16xf32>
    %280 = arith.maximumf %279, %278 : vector<2x16xf32>
    %281 = vector.broadcast %cst_67 : f32 to vector<2x16xf32>
    %282 = arith.minimumf %281, %280 : vector<2x16xf32>
    %283 = vector.broadcast %50 : vector<2x1xf32> to vector<2x16xf32>
    %284 = arith.mulf %283, %282 : vector<2x16xf32>
    %cst_68 = arith.constant 1.000000e+00 : f32
    %285 = vector.broadcast %cst_68 : f32 to vector<2x1xf32>
    %286 = arith.subf %285, %50 : vector<2x1xf32>
    %287 = vector.broadcast %286 : vector<2x1xf32> to vector<2x16xf32>
    %288 = arith.mulf %287, %245 : vector<2x16xf32>
    %289 = arith.addf %284, %288 : vector<2x16xf32>
    %290 = vector.broadcast %50 : vector<2x1xf32> to vector<2x32xf32>
    %291 = arith.mulf %290, %275 : vector<2x32xf32>
    %cst_69 = arith.constant 1.000000e+00 : f32
    %292 = vector.broadcast %cst_69 : f32 to vector<2x1xf32>
    %293 = arith.subf %292, %50 : vector<2x1xf32>
    %294 = vector.broadcast %293 : vector<2x1xf32> to vector<2x32xf32>
    %295 = arith.mulf %294, %252 : vector<2x32xf32>
    %296 = arith.addf %291, %295 : vector<2x32xf32>
    %297 = vector.broadcast %50 : vector<2x1xf32> to vector<2x16xf32>
    %298 = arith.mulf %282, %297 : vector<2x16xf32>
    %299 = vector.extract_strided_slice %76 {offsets = [10, 0], sizes = [2, 128], strides = [1, 1]} : vector<16x128xf32> to vector<2x128xf32>
    %cst_70 = arith.constant dense<0.000000e+00> : vector<2x128xf32>
    %300 = tpu.matmul %289, %69, %cst_70 {dimension_numbers = #tpu.dot_dimension_numbers<[1], [0], [0], [1], [0, 0, 1, 1], [], []>} : vector<2x16xf32>, vector<16x128xf32>, vector<2x128xf32> -> vector<2x128xf32>
    %301 = arith.addf %299, %300 : vector<2x128xf32>
    %302 = math.tanh %301 : vector<2x128xf32>
    %303 = arith.negf %301 : vector<2x128xf32>
    %304 = math.exp %303 : vector<2x128xf32>
    %cst_71 = arith.constant 1.000000e+00 : f32
    %305 = vector.broadcast %cst_71 : f32 to vector<2x128xf32>
    %306 = arith.addf %305, %304 : vector<2x128xf32>
    %307 = arith.divf %305, %306 : vector<2x128xf32>
    %308 = arith.select %65, %302, %307 : vector<2x128xi1>, vector<2x128xf32>
    %309 = vector.extract_strided_slice %308 {offsets = [0, 0], sizes = [2, 32], strides = [1, 1]} : vector<2x128xf32> to vector<2x32xf32>
    %310 = vector.extract_strided_slice %308 {offsets = [0, 32], sizes = [2, 32], strides = [1, 1]} : vector<2x128xf32> to vector<2x32xf32>
    %311 = vector.extract_strided_slice %308 {offsets = [0, 64], sizes = [2, 32], strides = [1, 1]} : vector<2x128xf32> to vector<2x32xf32>
    %312 = vector.extract_strided_slice %308 {offsets = [0, 96], sizes = [2, 32], strides = [1, 1]} : vector<2x128xf32> to vector<2x32xf32>
    %313 = arith.mulf %309, %311 : vector<2x32xf32>
    %314 = arith.mulf %310, %296 : vector<2x32xf32>
    %315 = arith.addf %313, %314 : vector<2x32xf32>
    %cst_72 = arith.constant -3.000000e+00 : f32
    %cst_73 = arith.constant 3.000000e+00 : f32
    %316 = vector.broadcast %cst_72 : f32 to vector<2x32xf32>
    %317 = arith.maximumf %316, %315 : vector<2x32xf32>
    %318 = vector.broadcast %cst_73 : f32 to vector<2x32xf32>
    %319 = arith.minimumf %318, %317 : vector<2x32xf32>
    %320 = math.tanh %319 : vector<2x32xf32>
    %321 = arith.mulf %312, %320 : vector<2x32xf32>
    %cst_74 = arith.constant dense<0.000000e+00> : vector<2x16xf32>
    %322 = tpu.matmul %321, %73, %cst_74 {dimension_numbers = #tpu.dot_dimension_numbers<[1], [0], [0], [1], [0, 0, 1, 1], [], []>} : vector<2x32xf32>, vector<32x16xf32>, vector<2x16xf32> -> vector<2x16xf32>
    %cst_75 = arith.constant -3.000000e+00 : f32
    %cst_76 = arith.constant 3.000000e+00 : f32
    %323 = vector.broadcast %cst_75 : f32 to vector<2x16xf32>
    %324 = arith.maximumf %323, %322 : vector<2x16xf32>
    %325 = vector.broadcast %cst_76 : f32 to vector<2x16xf32>
    %326 = arith.minimumf %325, %324 : vector<2x16xf32>
    %327 = vector.broadcast %53 : vector<2x1xf32> to vector<2x16xf32>
    %328 = arith.mulf %327, %326 : vector<2x16xf32>
    %cst_77 = arith.constant 1.000000e+00 : f32
    %329 = vector.broadcast %cst_77 : f32 to vector<2x1xf32>
    %330 = arith.subf %329, %53 : vector<2x1xf32>
    %331 = vector.broadcast %330 : vector<2x1xf32> to vector<2x16xf32>
    %332 = arith.mulf %331, %289 : vector<2x16xf32>
    %333 = arith.addf %328, %332 : vector<2x16xf32>
    %334 = vector.broadcast %53 : vector<2x1xf32> to vector<2x32xf32>
    %335 = arith.mulf %334, %319 : vector<2x32xf32>
    %cst_78 = arith.constant 1.000000e+00 : f32
    %336 = vector.broadcast %cst_78 : f32 to vector<2x1xf32>
    %337 = arith.subf %336, %53 : vector<2x1xf32>
    %338 = vector.broadcast %337 : vector<2x1xf32> to vector<2x32xf32>
    %339 = arith.mulf %338, %296 : vector<2x32xf32>
    %340 = arith.addf %335, %339 : vector<2x32xf32>
    %341 = vector.broadcast %53 : vector<2x1xf32> to vector<2x16xf32>
    %342 = arith.mulf %326, %341 : vector<2x16xf32>
    %343 = vector.extract_strided_slice %76 {offsets = [12, 0], sizes = [2, 128], strides = [1, 1]} : vector<16x128xf32> to vector<2x128xf32>
    %cst_79 = arith.constant dense<0.000000e+00> : vector<2x128xf32>
    %344 = tpu.matmul %333, %69, %cst_79 {dimension_numbers = #tpu.dot_dimension_numbers<[1], [0], [0], [1], [0, 0, 1, 1], [], []>} : vector<2x16xf32>, vector<16x128xf32>, vector<2x128xf32> -> vector<2x128xf32>
    %345 = arith.addf %343, %344 : vector<2x128xf32>
    %346 = math.tanh %345 : vector<2x128xf32>
    %347 = arith.negf %345 : vector<2x128xf32>
    %348 = math.exp %347 : vector<2x128xf32>
    %cst_80 = arith.constant 1.000000e+00 : f32
    %349 = vector.broadcast %cst_80 : f32 to vector<2x128xf32>
    %350 = arith.addf %349, %348 : vector<2x128xf32>
    %351 = arith.divf %349, %350 : vector<2x128xf32>
    %352 = arith.select %65, %346, %351 : vector<2x128xi1>, vector<2x128xf32>
    %353 = vector.extract_strided_slice %352 {offsets = [0, 0], sizes = [2, 32], strides = [1, 1]} : vector<2x128xf32> to vector<2x32xf32>
    %354 = vector.extract_strided_slice %352 {offsets = [0, 32], sizes = [2, 32], strides = [1, 1]} : vector<2x128xf32> to vector<2x32xf32>
    %355 = vector.extract_strided_slice %352 {offsets = [0, 64], sizes = [2, 32], strides = [1, 1]} : vector<2x128xf32> to vector<2x32xf32>
    %356 = vector.extract_strided_slice %352 {offsets = [0, 96], sizes = [2, 32], strides = [1, 1]} : vector<2x128xf32> to vector<2x32xf32>
    %357 = arith.mulf %353, %355 : vector<2x32xf32>
    %358 = arith.mulf %354, %340 : vector<2x32xf32>
    %359 = arith.addf %357, %358 : vector<2x32xf32>
    %cst_81 = arith.constant -3.000000e+00 : f32
    %cst_82 = arith.constant 3.000000e+00 : f32
    %360 = vector.broadcast %cst_81 : f32 to vector<2x32xf32>
    %361 = arith.maximumf %360, %359 : vector<2x32xf32>
    %362 = vector.broadcast %cst_82 : f32 to vector<2x32xf32>
    %363 = arith.minimumf %362, %361 : vector<2x32xf32>
    %364 = math.tanh %363 : vector<2x32xf32>
    %365 = arith.mulf %356, %364 : vector<2x32xf32>
    %cst_83 = arith.constant dense<0.000000e+00> : vector<2x16xf32>
    %366 = tpu.matmul %365, %73, %cst_83 {dimension_numbers = #tpu.dot_dimension_numbers<[1], [0], [0], [1], [0, 0, 1, 1], [], []>} : vector<2x32xf32>, vector<32x16xf32>, vector<2x16xf32> -> vector<2x16xf32>
    %cst_84 = arith.constant -3.000000e+00 : f32
    %cst_85 = arith.constant 3.000000e+00 : f32
    %367 = vector.broadcast %cst_84 : f32 to vector<2x16xf32>
    %368 = arith.maximumf %367, %366 : vector<2x16xf32>
    %369 = vector.broadcast %cst_85 : f32 to vector<2x16xf32>
    %370 = arith.minimumf %369, %368 : vector<2x16xf32>
    %371 = vector.broadcast %56 : vector<2x1xf32> to vector<2x16xf32>
    %372 = arith.mulf %371, %370 : vector<2x16xf32>
    %cst_86 = arith.constant 1.000000e+00 : f32
    %373 = vector.broadcast %cst_86 : f32 to vector<2x1xf32>
    %374 = arith.subf %373, %56 : vector<2x1xf32>
    %375 = vector.broadcast %374 : vector<2x1xf32> to vector<2x16xf32>
    %376 = arith.mulf %375, %333 : vector<2x16xf32>
    %377 = arith.addf %372, %376 : vector<2x16xf32>
    %378 = vector.broadcast %56 : vector<2x1xf32> to vector<2x32xf32>
    %379 = arith.mulf %378, %363 : vector<2x32xf32>
    %cst_87 = arith.constant 1.000000e+00 : f32
    %380 = vector.broadcast %cst_87 : f32 to vector<2x1xf32>
    %381 = arith.subf %380, %56 : vector<2x1xf32>
    %382 = vector.broadcast %381 : vector<2x1xf32> to vector<2x32xf32>
    %383 = arith.mulf %382, %340 : vector<2x32xf32>
    %384 = arith.addf %379, %383 : vector<2x32xf32>
    %385 = vector.broadcast %56 : vector<2x1xf32> to vector<2x16xf32>
    %386 = arith.mulf %370, %385 : vector<2x16xf32>
    %387 = vector.extract_strided_slice %76 {offsets = [14, 0], sizes = [2, 128], strides = [1, 1]} : vector<16x128xf32> to vector<2x128xf32>
    %cst_88 = arith.constant dense<0.000000e+00> : vector<2x128xf32>
    %388 = tpu.matmul %377, %69, %cst_88 {dimension_numbers = #tpu.dot_dimension_numbers<[1], [0], [0], [1], [0, 0, 1, 1], [], []>} : vector<2x16xf32>, vector<16x128xf32>, vector<2x128xf32> -> vector<2x128xf32>
    %389 = arith.addf %387, %388 : vector<2x128xf32>
    %390 = math.tanh %389 : vector<2x128xf32>
    %391 = arith.negf %389 : vector<2x128xf32>
    %392 = math.exp %391 : vector<2x128xf32>
    %cst_89 = arith.constant 1.000000e+00 : f32
    %393 = vector.broadcast %cst_89 : f32 to vector<2x128xf32>
    %394 = arith.addf %393, %392 : vector<2x128xf32>
    %395 = arith.divf %393, %394 : vector<2x128xf32>
    %396 = arith.select %65, %390, %395 : vector<2x128xi1>, vector<2x128xf32>
    %397 = vector.extract_strided_slice %396 {offsets = [0, 0], sizes = [2, 32], strides = [1, 1]} : vector<2x128xf32> to vector<2x32xf32>
    %398 = vector.extract_strided_slice %396 {offsets = [0, 32], sizes = [2, 32], strides = [1, 1]} : vector<2x128xf32> to vector<2x32xf32>
    %399 = vector.extract_strided_slice %396 {offsets = [0, 64], sizes = [2, 32], strides = [1, 1]} : vector<2x128xf32> to vector<2x32xf32>
    %400 = vector.extract_strided_slice %396 {offsets = [0, 96], sizes = [2, 32], strides = [1, 1]} : vector<2x128xf32> to vector<2x32xf32>
    %401 = arith.mulf %397, %399 : vector<2x32xf32>
    %402 = arith.mulf %398, %384 : vector<2x32xf32>
    %403 = arith.addf %401, %402 : vector<2x32xf32>
    %cst_90 = arith.constant -3.000000e+00 : f32
    %cst_91 = arith.constant 3.000000e+00 : f32
    %404 = vector.broadcast %cst_90 : f32 to vector<2x32xf32>
    %405 = arith.maximumf %404, %403 : vector<2x32xf32>
    %406 = vector.broadcast %cst_91 : f32 to vector<2x32xf32>
    %407 = arith.minimumf %406, %405 : vector<2x32xf32>
    %408 = math.tanh %407 : vector<2x32xf32>
    %409 = arith.mulf %400, %408 : vector<2x32xf32>
    %cst_92 = arith.constant dense<0.000000e+00> : vector<2x16xf32>
    %410 = tpu.matmul %409, %73, %cst_92 {dimension_numbers = #tpu.dot_dimension_numbers<[1], [0], [0], [1], [0, 0, 1, 1], [], []>} : vector<2x32xf32>, vector<32x16xf32>, vector<2x16xf32> -> vector<2x16xf32>
    %cst_93 = arith.constant -3.000000e+00 : f32
    %cst_94 = arith.constant 3.000000e+00 : f32
    %411 = vector.broadcast %cst_93 : f32 to vector<2x16xf32>
    %412 = arith.maximumf %411, %410 : vector<2x16xf32>
    %413 = vector.broadcast %cst_94 : f32 to vector<2x16xf32>
    %414 = arith.minimumf %413, %412 : vector<2x16xf32>
    %415 = vector.broadcast %59 : vector<2x1xf32> to vector<2x16xf32>
    %416 = arith.mulf %414, %415 : vector<2x16xf32>
    %417 = vector.shape_cast %122 : vector<2x16xf32> to vector<2x1x16xf32>
    %418 = vector.shape_cast %166 : vector<2x16xf32> to vector<2x1x16xf32>
    %419 = vector.shape_cast %210 : vector<2x16xf32> to vector<2x1x16xf32>
    %420 = vector.shape_cast %254 : vector<2x16xf32> to vector<2x1x16xf32>
    %421 = vector.shape_cast %298 : vector<2x16xf32> to vector<2x1x16xf32>
    %422 = vector.shape_cast %342 : vector<2x16xf32> to vector<2x1x16xf32>
    %423 = vector.shape_cast %386 : vector<2x16xf32> to vector<2x1x16xf32>
    %424 = vector.shape_cast %416 : vector<2x16xf32> to vector<2x1x16xf32>
    %425 = tpu.concatenate %417, %418, %419, %420, %421, %422, %423, %424 in 1 : vector<2x1x16xf32>, vector<2x1x16xf32>, vector<2x1x16xf32>, vector<2x1x16xf32>, vector<2x1x16xf32>, vector<2x1x16xf32>, vector<2x1x16xf32>, vector<2x1x16xf32> -> vector<2x8x16xf32>
    %426 = vector.shape_cast %416 : vector<2x16xf32> to vector<2x1x16xf32>
    %427 = vector.shape_cast %386 : vector<2x16xf32> to vector<2x1x16xf32>
    %428 = vector.shape_cast %342 : vector<2x16xf32> to vector<2x1x16xf32>
    %429 = vector.shape_cast %298 : vector<2x16xf32> to vector<2x1x16xf32>
    %430 = vector.shape_cast %254 : vector<2x16xf32> to vector<2x1x16xf32>
    %431 = vector.shape_cast %210 : vector<2x16xf32> to vector<2x1x16xf32>
    %432 = vector.shape_cast %166 : vector<2x16xf32> to vector<2x1x16xf32>
    %433 = vector.shape_cast %122 : vector<2x16xf32> to vector<2x1x16xf32>
    %434 = tpu.concatenate %426, %427, %428, %429, %430, %431, %432, %433 in 1 : vector<2x1x16xf32>, vector<2x1x16xf32>, vector<2x1x16xf32>, vector<2x1x16xf32>, vector<2x1x16xf32>, vector<2x1x16xf32>, vector<2x1x16xf32>, vector<2x1x16xf32> -> vector<2x8x16xf32>
    %435 = arith.select %0, %434, %425 : vector<2x8x16xf32>
    %c1 = arith.constant 1 : index
    %c0_95 = arith.constant 0 : index
    %c0_96 = arith.constant 0 : index
    %c0_97 = arith.constant 0 : index
    %436 = vector.load %arg7[%c1, %c0_95, %c0_96, %c0_97] : memref<3x2x8x16xf32, #tpu.memory_space<vmem>>, vector<1x2x8x16xf32>
    %437 = vector.shape_cast %436 : vector<1x2x8x16xf32> to vector<2x8x16xf32>
    %438 = vector.shape_cast %435 : vector<2x8x16xf32> to vector<1x2x8x16xf32>
    tpu.vector_store %arg7[%c1, %c0_95, %c0_96, %c0_97], %438 {strides = array<i32>} : memref<3x2x8x16xf32, #tpu.memory_space<vmem>>, vector<1x2x8x16xf32>,
    %439 = tpu.concatenate %122, %166, %210, %254, %298, %342, %386, %416 in 0 : vector<2x16xf32>, vector<2x16xf32>, vector<2x16xf32>, vector<2x16xf32>, vector<2x16xf32>, vector<2x16xf32>, vector<2x16xf32>, vector<2x16xf32> -> vector<16x16xf32>
    %c0_98 = arith.constant 0 : index
    %c1_99 = arith.constant 1 : index
    %c0_100 = arith.constant 0 : index
    %c0_101 = arith.constant 0 : index
    %440 = vector.load %arg3[%c0_98, %c1_99, %c0_100, %c0_101] : memref<1x2x16x128xf32, #tpu.memory_space<vmem>>, vector<1x1x16x128xf32>
    %441 = vector.shape_cast %440 : vector<1x1x16x128xf32> to vector<16x128xf32>
    %c0_102 = arith.constant 0 : index
    %c1_103 = arith.constant 1 : index
    %c0_104 = arith.constant 0 : index
    %c0_105 = arith.constant 0 : index
    %442 = vector.load %arg4[%c0_102, %c1_103, %c0_104, %c0_105] : memref<1x2x16x128xf32, #tpu.memory_space<vmem>>, vector<1x1x16x128xf32>
    %443 = vector.shape_cast %442 : vector<1x1x16x128xf32> to vector<16x128xf32>
    %c0_106 = arith.constant 0 : index
    %c1_107 = arith.constant 1 : index
    %c0_108 = arith.constant 0 : index
    %c0_109 = arith.constant 0 : index
    %444 = vector.load %arg5[%c0_106, %c1_107, %c0_108, %c0_109] : memref<1x2x1x128xf32, #tpu.memory_space<vmem>>, vector<1x1x1x128xf32>
    %445 = vector.shape_cast %444 : vector<1x1x1x128xf32> to vector<1x128xf32>
    %c0_110 = arith.constant 0 : index
    %c1_111 = arith.constant 1 : index
    %c0_112 = arith.constant 0 : index
    %c0_113 = arith.constant 0 : index
    %446 = vector.load %arg6[%c0_110, %c1_111, %c0_112, %c0_113] : memref<1x2x32x16xf32, #tpu.memory_space<vmem>>, vector<1x1x32x16xf32>
    %447 = vector.shape_cast %446 : vector<1x1x32x16xf32> to vector<32x16xf32>
    %cst_114 = arith.constant dense<0.000000e+00> : vector<16x128xf32>
    %448 = tpu.matmul %439, %441, %cst_114 {dimension_numbers = #tpu.dot_dimension_numbers<[1], [0], [0], [1], [0, 0, 1, 1], [], []>} : vector<16x16xf32>, vector<16x128xf32>, vector<16x128xf32> -> vector<16x128xf32>
    %449 = vector.broadcast %445 : vector<1x128xf32> to vector<16x128xf32>
    %450 = arith.addf %448, %449 : vector<16x128xf32>
    %cst_115 = arith.constant 0.000000e+00 : f32
    %451 = vector.broadcast %cst_115 : f32 to vector<2x16xf32>
    %cst_116 = arith.constant 0.000000e+00 : f32
    %452 = vector.broadcast %cst_116 : f32 to vector<2x32xf32>
    %453 = vector.extract_strided_slice %450 {offsets = [0, 0], sizes = [2, 128], strides = [1, 1]} : vector<16x128xf32> to vector<2x128xf32>
    %cst_117 = arith.constant dense<0.000000e+00> : vector<2x128xf32>
    %454 = tpu.matmul %451, %443, %cst_117 {dimension_numbers = #tpu.dot_dimension_numbers<[1], [0], [0], [1], [0, 0, 1, 1], [], []>} : vector<2x16xf32>, vector<16x128xf32>, vector<2x128xf32> -> vector<2x128xf32>
    %455 = arith.addf %453, %454 : vector<2x128xf32>
    %456 = math.tanh %455 : vector<2x128xf32>
    %457 = arith.negf %455 : vector<2x128xf32>
    %458 = math.exp %457 : vector<2x128xf32>
    %cst_118 = arith.constant 1.000000e+00 : f32
    %459 = vector.broadcast %cst_118 : f32 to vector<2x128xf32>
    %460 = arith.addf %459, %458 : vector<2x128xf32>
    %461 = arith.divf %459, %460 : vector<2x128xf32>
    %462 = arith.select %65, %456, %461 : vector<2x128xi1>, vector<2x128xf32>
    %463 = vector.extract_strided_slice %462 {offsets = [0, 0], sizes = [2, 32], strides = [1, 1]} : vector<2x128xf32> to vector<2x32xf32>
    %464 = vector.extract_strided_slice %462 {offsets = [0, 32], sizes = [2, 32], strides = [1, 1]} : vector<2x128xf32> to vector<2x32xf32>
    %465 = vector.extract_strided_slice %462 {offsets = [0, 64], sizes = [2, 32], strides = [1, 1]} : vector<2x128xf32> to vector<2x32xf32>
    %466 = vector.extract_strided_slice %462 {offsets = [0, 96], sizes = [2, 32], strides = [1, 1]} : vector<2x128xf32> to vector<2x32xf32>
    %467 = arith.mulf %463, %465 : vector<2x32xf32>
    %468 = arith.mulf %464, %452 : vector<2x32xf32>
    %469 = arith.addf %467, %468 : vector<2x32xf32>
    %cst_119 = arith.constant -3.000000e+00 : f32
    %cst_120 = arith.constant 3.000000e+00 : f32
    %470 = vector.broadcast %cst_119 : f32 to vector<2x32xf32>
    %471 = arith.maximumf %470, %469 : vector<2x32xf32>
    %472 = vector.broadcast %cst_120 : f32 to vector<2x32xf32>
    %473 = arith.minimumf %472, %471 : vector<2x32xf32>
    %474 = math.tanh %473 : vector<2x32xf32>
    %475 = arith.mulf %466, %474 : vector<2x32xf32>
    %cst_121 = arith.constant dense<0.000000e+00> : vector<2x16xf32>
    %476 = tpu.matmul %475, %447, %cst_121 {dimension_numbers = #tpu.dot_dimension_numbers<[1], [0], [0], [1], [0, 0, 1, 1], [], []>} : vector<2x32xf32>, vector<32x16xf32>, vector<2x16xf32> -> vector<2x16xf32>
    %cst_122 = arith.constant -3.000000e+00 : f32
    %cst_123 = arith.constant 3.000000e+00 : f32
    %477 = vector.broadcast %cst_122 : f32 to vector<2x16xf32>
    %478 = arith.maximumf %477, %476 : vector<2x16xf32>
    %479 = vector.broadcast %cst_123 : f32 to vector<2x16xf32>
    %480 = arith.minimumf %479, %478 : vector<2x16xf32>
    %481 = vector.broadcast %38 : vector<2x1xf32> to vector<2x16xf32>
    %482 = arith.mulf %481, %480 : vector<2x16xf32>
    %cst_124 = arith.constant 1.000000e+00 : f32
    %483 = vector.broadcast %cst_124 : f32 to vector<2x1xf32>
    %484 = arith.subf %483, %38 : vector<2x1xf32>
    %485 = vector.broadcast %484 : vector<2x1xf32> to vector<2x16xf32>
    %486 = arith.mulf %485, %451 : vector<2x16xf32>
    %487 = arith.addf %482, %486 : vector<2x16xf32>
    %488 = vector.broadcast %38 : vector<2x1xf32> to vector<2x32xf32>
    %489 = arith.mulf %488, %473 : vector<2x32xf32>
    %cst_125 = arith.constant 1.000000e+00 : f32
    %490 = vector.broadcast %cst_125 : f32 to vector<2x1xf32>
    %491 = arith.subf %490, %38 : vector<2x1xf32>
    %492 = vector.broadcast %491 : vector<2x1xf32> to vector<2x32xf32>
    %493 = arith.mulf %492, %452 : vector<2x32xf32>
    %494 = arith.addf %489, %493 : vector<2x32xf32>
    %495 = vector.broadcast %38 : vector<2x1xf32> to vector<2x16xf32>
    %496 = arith.mulf %480, %495 : vector<2x16xf32>
    %497 = vector.extract_strided_slice %450 {offsets = [2, 0], sizes = [2, 128], strides = [1, 1]} : vector<16x128xf32> to vector<2x128xf32>
    %cst_126 = arith.constant dense<0.000000e+00> : vector<2x128xf32>
    %498 = tpu.matmul %487, %443, %cst_126 {dimension_numbers = #tpu.dot_dimension_numbers<[1], [0], [0], [1], [0, 0, 1, 1], [], []>} : vector<2x16xf32>, vector<16x128xf32>, vector<2x128xf32> -> vector<2x128xf32>
    %499 = arith.addf %497, %498 : vector<2x128xf32>
    %500 = math.tanh %499 : vector<2x128xf32>
    %501 = arith.negf %499 : vector<2x128xf32>
    %502 = math.exp %501 : vector<2x128xf32>
    %cst_127 = arith.constant 1.000000e+00 : f32
    %503 = vector.broadcast %cst_127 : f32 to vector<2x128xf32>
    %504 = arith.addf %503, %502 : vector<2x128xf32>
    %505 = arith.divf %503, %504 : vector<2x128xf32>
    %506 = arith.select %65, %500, %505 : vector<2x128xi1>, vector<2x128xf32>
    %507 = vector.extract_strided_slice %506 {offsets = [0, 0], sizes = [2, 32], strides = [1, 1]} : vector<2x128xf32> to vector<2x32xf32>
    %508 = vector.extract_strided_slice %506 {offsets = [0, 32], sizes = [2, 32], strides = [1, 1]} : vector<2x128xf32> to vector<2x32xf32>
    %509 = vector.extract_strided_slice %506 {offsets = [0, 64], sizes = [2, 32], strides = [1, 1]} : vector<2x128xf32> to vector<2x32xf32>
    %510 = vector.extract_strided_slice %506 {offsets = [0, 96], sizes = [2, 32], strides = [1, 1]} : vector<2x128xf32> to vector<2x32xf32>
    %511 = arith.mulf %507, %509 : vector<2x32xf32>
    %512 = arith.mulf %508, %494 : vector<2x32xf32>
    %513 = arith.addf %511, %512 : vector<2x32xf32>
    %cst_128 = arith.constant -3.000000e+00 : f32
    %cst_129 = arith.constant 3.000000e+00 : f32
    %514 = vector.broadcast %cst_128 : f32 to vector<2x32xf32>
    %515 = arith.maximumf %514, %513 : vector<2x32xf32>
    %516 = vector.broadcast %cst_129 : f32 to vector<2x32xf32>
    %517 = arith.minimumf %516, %515 : vector<2x32xf32>
    %518 = math.tanh %517 : vector<2x32xf32>
    %519 = arith.mulf %510, %518 : vector<2x32xf32>
    %cst_130 = arith.constant dense<0.000000e+00> : vector<2x16xf32>
    %520 = tpu.matmul %519, %447, %cst_130 {dimension_numbers = #tpu.dot_dimension_numbers<[1], [0], [0], [1], [0, 0, 1, 1], [], []>} : vector<2x32xf32>, vector<32x16xf32>, vector<2x16xf32> -> vector<2x16xf32>
    %cst_131 = arith.constant -3.000000e+00 : f32
    %cst_132 = arith.constant 3.000000e+00 : f32
    %521 = vector.broadcast %cst_131 : f32 to vector<2x16xf32>
    %522 = arith.maximumf %521, %520 : vector<2x16xf32>
    %523 = vector.broadcast %cst_132 : f32 to vector<2x16xf32>
    %524 = arith.minimumf %523, %522 : vector<2x16xf32>
    %525 = vector.broadcast %41 : vector<2x1xf32> to vector<2x16xf32>
    %526 = arith.mulf %525, %524 : vector<2x16xf32>
    %cst_133 = arith.constant 1.000000e+00 : f32
    %527 = vector.broadcast %cst_133 : f32 to vector<2x1xf32>
    %528 = arith.subf %527, %41 : vector<2x1xf32>
    %529 = vector.broadcast %528 : vector<2x1xf32> to vector<2x16xf32>
    %530 = arith.mulf %529, %487 : vector<2x16xf32>
    %531 = arith.addf %526, %530 : vector<2x16xf32>
    %532 = vector.broadcast %41 : vector<2x1xf32> to vector<2x32xf32>
    %533 = arith.mulf %532, %517 : vector<2x32xf32>
    %cst_134 = arith.constant 1.000000e+00 : f32
    %534 = vector.broadcast %cst_134 : f32 to vector<2x1xf32>
    %535 = arith.subf %534, %41 : vector<2x1xf32>
    %536 = vector.broadcast %535 : vector<2x1xf32> to vector<2x32xf32>
    %537 = arith.mulf %536, %494 : vector<2x32xf32>
    %538 = arith.addf %533, %537 : vector<2x32xf32>
    %539 = vector.broadcast %41 : vector<2x1xf32> to vector<2x16xf32>
    %540 = arith.mulf %524, %539 : vector<2x16xf32>
    %541 = vector.extract_strided_slice %450 {offsets = [4, 0], sizes = [2, 128], strides = [1, 1]} : vector<16x128xf32> to vector<2x128xf32>
    %cst_135 = arith.constant dense<0.000000e+00> : vector<2x128xf32>
    %542 = tpu.matmul %531, %443, %cst_135 {dimension_numbers = #tpu.dot_dimension_numbers<[1], [0], [0], [1], [0, 0, 1, 1], [], []>} : vector<2x16xf32>, vector<16x128xf32>, vector<2x128xf32> -> vector<2x128xf32>
    %543 = arith.addf %541, %542 : vector<2x128xf32>
    %544 = math.tanh %543 : vector<2x128xf32>
    %545 = arith.negf %543 : vector<2x128xf32>
    %546 = math.exp %545 : vector<2x128xf32>
    %cst_136 = arith.constant 1.000000e+00 : f32
    %547 = vector.broadcast %cst_136 : f32 to vector<2x128xf32>
    %548 = arith.addf %547, %546 : vector<2x128xf32>
    %549 = arith.divf %547, %548 : vector<2x128xf32>
    %550 = arith.select %65, %544, %549 : vector<2x128xi1>, vector<2x128xf32>
    %551 = vector.extract_strided_slice %550 {offsets = [0, 0], sizes = [2, 32], strides = [1, 1]} : vector<2x128xf32> to vector<2x32xf32>
    %552 = vector.extract_strided_slice %550 {offsets = [0, 32], sizes = [2, 32], strides = [1, 1]} : vector<2x128xf32> to vector<2x32xf32>
    %553 = vector.extract_strided_slice %550 {offsets = [0, 64], sizes = [2, 32], strides = [1, 1]} : vector<2x128xf32> to vector<2x32xf32>
    %554 = vector.extract_strided_slice %550 {offsets = [0, 96], sizes = [2, 32], strides = [1, 1]} : vector<2x128xf32> to vector<2x32xf32>
    %555 = arith.mulf %551, %553 : vector<2x32xf32>
    %556 = arith.mulf %552, %538 : vector<2x32xf32>
    %557 = arith.addf %555, %556 : vector<2x32xf32>
    %cst_137 = arith.constant -3.000000e+00 : f32
    %cst_138 = arith.constant 3.000000e+00 : f32
    %558 = vector.broadcast %cst_137 : f32 to vector<2x32xf32>
    %559 = arith.maximumf %558, %557 : vector<2x32xf32>
    %560 = vector.broadcast %cst_138 : f32 to vector<2x32xf32>
    %561 = arith.minimumf %560, %559 : vector<2x32xf32>
    %562 = math.tanh %561 : vector<2x32xf32>
    %563 = arith.mulf %554, %562 : vector<2x32xf32>
    %cst_139 = arith.constant dense<0.000000e+00> : vector<2x16xf32>
    %564 = tpu.matmul %563, %447, %cst_139 {dimension_numbers = #tpu.dot_dimension_numbers<[1], [0], [0], [1], [0, 0, 1, 1], [], []>} : vector<2x32xf32>, vector<32x16xf32>, vector<2x16xf32> -> vector<2x16xf32>
    %cst_140 = arith.constant -3.000000e+00 : f32
    %cst_141 = arith.constant 3.000000e+00 : f32
    %565 = vector.broadcast %cst_140 : f32 to vector<2x16xf32>
    %566 = arith.maximumf %565, %564 : vector<2x16xf32>
    %567 = vector.broadcast %cst_141 : f32 to vector<2x16xf32>
    %568 = arith.minimumf %567, %566 : vector<2x16xf32>
    %569 = vector.broadcast %44 : vector<2x1xf32> to vector<2x16xf32>
    %570 = arith.mulf %569, %568 : vector<2x16xf32>
    %cst_142 = arith.constant 1.000000e+00 : f32
    %571 = vector.broadcast %cst_142 : f32 to vector<2x1xf32>
    %572 = arith.subf %571, %44 : vector<2x1xf32>
    %573 = vector.broadcast %572 : vector<2x1xf32> to vector<2x16xf32>
    %574 = arith.mulf %573, %531 : vector<2x16xf32>
    %575 = arith.addf %570, %574 : vector<2x16xf32>
    %576 = vector.broadcast %44 : vector<2x1xf32> to vector<2x32xf32>
    %577 = arith.mulf %576, %561 : vector<2x32xf32>
    %cst_143 = arith.constant 1.000000e+00 : f32
    %578 = vector.broadcast %cst_143 : f32 to vector<2x1xf32>
    %579 = arith.subf %578, %44 : vector<2x1xf32>
    %580 = vector.broadcast %579 : vector<2x1xf32> to vector<2x32xf32>
    %581 = arith.mulf %580, %538 : vector<2x32xf32>
    %582 = arith.addf %577, %581 : vector<2x32xf32>
    %583 = vector.broadcast %44 : vector<2x1xf32> to vector<2x16xf32>
    %584 = arith.mulf %568, %583 : vector<2x16xf32>
    %585 = vector.extract_strided_slice %450 {offsets = [6, 0], sizes = [2, 128], strides = [1, 1]} : vector<16x128xf32> to vector<2x128xf32>
    %cst_144 = arith.constant dense<0.000000e+00> : vector<2x128xf32>
    %586 = tpu.matmul %575, %443, %cst_144 {dimension_numbers = #tpu.dot_dimension_numbers<[1], [0], [0], [1], [0, 0, 1, 1], [], []>} : vector<2x16xf32>, vector<16x128xf32>, vector<2x128xf32> -> vector<2x128xf32>
    %587 = arith.addf %585, %586 : vector<2x128xf32>
    %588 = math.tanh %587 : vector<2x128xf32>
    %589 = arith.negf %587 : vector<2x128xf32>
    %590 = math.exp %589 : vector<2x128xf32>
    %cst_145 = arith.constant 1.000000e+00 : f32
    %591 = vector.broadcast %cst_145 : f32 to vector<2x128xf32>
    %592 = arith.addf %591, %590 : vector<2x128xf32>
    %593 = arith.divf %591, %592 : vector<2x128xf32>
    %594 = arith.select %65, %588, %593 : vector<2x128xi1>, vector<2x128xf32>
    %595 = vector.extract_strided_slice %594 {offsets = [0, 0], sizes = [2, 32], strides = [1, 1]} : vector<2x128xf32> to vector<2x32xf32>
    %596 = vector.extract_strided_slice %594 {offsets = [0, 32], sizes = [2, 32], strides = [1, 1]} : vector<2x128xf32> to vector<2x32xf32>
    %597 = vector.extract_strided_slice %594 {offsets = [0, 64], sizes = [2, 32], strides = [1, 1]} : vector<2x128xf32> to vector<2x32xf32>
    %598 = vector.extract_strided_slice %594 {offsets = [0, 96], sizes = [2, 32], strides = [1, 1]} : vector<2x128xf32> to vector<2x32xf32>
    %599 = arith.mulf %595, %597 : vector<2x32xf32>
    %600 = arith.mulf %596, %582 : vector<2x32xf32>
    %601 = arith.addf %599, %600 : vector<2x32xf32>
    %cst_146 = arith.constant -3.000000e+00 : f32
    %cst_147 = arith.constant 3.000000e+00 : f32
    %602 = vector.broadcast %cst_146 : f32 to vector<2x32xf32>
    %603 = arith.maximumf %602, %601 : vector<2x32xf32>
    %604 = vector.broadcast %cst_147 : f32 to vector<2x32xf32>
    %605 = arith.minimumf %604, %603 : vector<2x32xf32>
    %606 = math.tanh %605 : vector<2x32xf32>
    %607 = arith.mulf %598, %606 : vector<2x32xf32>
    %cst_148 = arith.constant dense<0.000000e+00> : vector<2x16xf32>
    %608 = tpu.matmul %607, %447, %cst_148 {dimension_numbers = #tpu.dot_dimension_numbers<[1], [0], [0], [1], [0, 0, 1, 1], [], []>} : vector<2x32xf32>, vector<32x16xf32>, vector<2x16xf32> -> vector<2x16xf32>
    %cst_149 = arith.constant -3.000000e+00 : f32
    %cst_150 = arith.constant 3.000000e+00 : f32
    %609 = vector.broadcast %cst_149 : f32 to vector<2x16xf32>
    %610 = arith.maximumf %609, %608 : vector<2x16xf32>
    %611 = vector.broadcast %cst_150 : f32 to vector<2x16xf32>
    %612 = arith.minimumf %611, %610 : vector<2x16xf32>
    %613 = vector.broadcast %47 : vector<2x1xf32> to vector<2x16xf32>
    %614 = arith.mulf %613, %612 : vector<2x16xf32>
    %cst_151 = arith.constant 1.000000e+00 : f32
    %615 = vector.broadcast %cst_151 : f32 to vector<2x1xf32>
    %616 = arith.subf %615, %47 : vector<2x1xf32>
    %617 = vector.broadcast %616 : vector<2x1xf32> to vector<2x16xf32>
    %618 = arith.mulf %617, %575 : vector<2x16xf32>
    %619 = arith.addf %614, %618 : vector<2x16xf32>
    %620 = vector.broadcast %47 : vector<2x1xf32> to vector<2x32xf32>
    %621 = arith.mulf %620, %605 : vector<2x32xf32>
    %cst_152 = arith.constant 1.000000e+00 : f32
    %622 = vector.broadcast %cst_152 : f32 to vector<2x1xf32>
    %623 = arith.subf %622, %47 : vector<2x1xf32>
    %624 = vector.broadcast %623 : vector<2x1xf32> to vector<2x32xf32>
    %625 = arith.mulf %624, %582 : vector<2x32xf32>
    %626 = arith.addf %621, %625 : vector<2x32xf32>
    %627 = vector.broadcast %47 : vector<2x1xf32> to vector<2x16xf32>
    %628 = arith.mulf %612, %627 : vector<2x16xf32>
    %629 = vector.extract_strided_slice %450 {offsets = [8, 0], sizes = [2, 128], strides = [1, 1]} : vector<16x128xf32> to vector<2x128xf32>
    %cst_153 = arith.constant dense<0.000000e+00> : vector<2x128xf32>
    %630 = tpu.matmul %619, %443, %cst_153 {dimension_numbers = #tpu.dot_dimension_numbers<[1], [0], [0], [1], [0, 0, 1, 1], [], []>} : vector<2x16xf32>, vector<16x128xf32>, vector<2x128xf32> -> vector<2x128xf32>
    %631 = arith.addf %629, %630 : vector<2x128xf32>
    %632 = math.tanh %631 : vector<2x128xf32>
    %633 = arith.negf %631 : vector<2x128xf32>
    %634 = math.exp %633 : vector<2x128xf32>
    %cst_154 = arith.constant 1.000000e+00 : f32
    %635 = vector.broadcast %cst_154 : f32 to vector<2x128xf32>
    %636 = arith.addf %635, %634 : vector<2x128xf32>
    %637 = arith.divf %635, %636 : vector<2x128xf32>
    %638 = arith.select %65, %632, %637 : vector<2x128xi1>, vector<2x128xf32>
    %639 = vector.extract_strided_slice %638 {offsets = [0, 0], sizes = [2, 32], strides = [1, 1]} : vector<2x128xf32> to vector<2x32xf32>
    %640 = vector.extract_strided_slice %638 {offsets = [0, 32], sizes = [2, 32], strides = [1, 1]} : vector<2x128xf32> to vector<2x32xf32>
    %641 = vector.extract_strided_slice %638 {offsets = [0, 64], sizes = [2, 32], strides = [1, 1]} : vector<2x128xf32> to vector<2x32xf32>
    %642 = vector.extract_strided_slice %638 {offsets = [0, 96], sizes = [2, 32], strides = [1, 1]} : vector<2x128xf32> to vector<2x32xf32>
    %643 = arith.mulf %639, %641 : vector<2x32xf32>
    %644 = arith.mulf %640, %626 : vector<2x32xf32>
    %645 = arith.addf %643, %644 : vector<2x32xf32>
    %cst_155 = arith.constant -3.000000e+00 : f32
    %cst_156 = arith.constant 3.000000e+00 : f32
    %646 = vector.broadcast %cst_155 : f32 to vector<2x32xf32>
    %647 = arith.maximumf %646, %645 : vector<2x32xf32>
    %648 = vector.broadcast %cst_156 : f32 to vector<2x32xf32>
    %649 = arith.minimumf %648, %647 : vector<2x32xf32>
    %650 = math.tanh %649 : vector<2x32xf32>
    %651 = arith.mulf %642, %650 : vector<2x32xf32>
    %cst_157 = arith.constant dense<0.000000e+00> : vector<2x16xf32>
    %652 = tpu.matmul %651, %447, %cst_157 {dimension_numbers = #tpu.dot_dimension_numbers<[1], [0], [0], [1], [0, 0, 1, 1], [], []>} : vector<2x32xf32>, vector<32x16xf32>, vector<2x16xf32> -> vector<2x16xf32>
    %cst_158 = arith.constant -3.000000e+00 : f32
    %cst_159 = arith.constant 3.000000e+00 : f32
    %653 = vector.broadcast %cst_158 : f32 to vector<2x16xf32>
    %654 = arith.maximumf %653, %652 : vector<2x16xf32>
    %655 = vector.broadcast %cst_159 : f32 to vector<2x16xf32>
    %656 = arith.minimumf %655, %654 : vector<2x16xf32>
    %657 = vector.broadcast %50 : vector<2x1xf32> to vector<2x16xf32>
    %658 = arith.mulf %657, %656 : vector<2x16xf32>
    %cst_160 = arith.constant 1.000000e+00 : f32
    %659 = vector.broadcast %cst_160 : f32 to vector<2x1xf32>
    %660 = arith.subf %659, %50 : vector<2x1xf32>
    %661 = vector.broadcast %660 : vector<2x1xf32> to vector<2x16xf32>
    %662 = arith.mulf %661, %619 : vector<2x16xf32>
    %663 = arith.addf %658, %662 : vector<2x16xf32>
    %664 = vector.broadcast %50 : vector<2x1xf32> to vector<2x32xf32>
    %665 = arith.mulf %664, %649 : vector<2x32xf32>
    %cst_161 = arith.constant 1.000000e+00 : f32
    %666 = vector.broadcast %cst_161 : f32 to vector<2x1xf32>
    %667 = arith.subf %666, %50 : vector<2x1xf32>
    %668 = vector.broadcast %667 : vector<2x1xf32> to vector<2x32xf32>
    %669 = arith.mulf %668, %626 : vector<2x32xf32>
    %670 = arith.addf %665, %669 : vector<2x32xf32>
    %671 = vector.broadcast %50 : vector<2x1xf32> to vector<2x16xf32>
    %672 = arith.mulf %656, %671 : vector<2x16xf32>
    %673 = vector.extract_strided_slice %450 {offsets = [10, 0], sizes = [2, 128], strides = [1, 1]} : vector<16x128xf32> to vector<2x128xf32>
    %cst_162 = arith.constant dense<0.000000e+00> : vector<2x128xf32>
    %674 = tpu.matmul %663, %443, %cst_162 {dimension_numbers = #tpu.dot_dimension_numbers<[1], [0], [0], [1], [0, 0, 1, 1], [], []>} : vector<2x16xf32>, vector<16x128xf32>, vector<2x128xf32> -> vector<2x128xf32>
    %675 = arith.addf %673, %674 : vector<2x128xf32>
    %676 = math.tanh %675 : vector<2x128xf32>
    %677 = arith.negf %675 : vector<2x128xf32>
    %678 = math.exp %677 : vector<2x128xf32>
    %cst_163 = arith.constant 1.000000e+00 : f32
    %679 = vector.broadcast %cst_163 : f32 to vector<2x128xf32>
    %680 = arith.addf %679, %678 : vector<2x128xf32>
    %681 = arith.divf %679, %680 : vector<2x128xf32>
    %682 = arith.select %65, %676, %681 : vector<2x128xi1>, vector<2x128xf32>
    %683 = vector.extract_strided_slice %682 {offsets = [0, 0], sizes = [2, 32], strides = [1, 1]} : vector<2x128xf32> to vector<2x32xf32>
    %684 = vector.extract_strided_slice %682 {offsets = [0, 32], sizes = [2, 32], strides = [1, 1]} : vector<2x128xf32> to vector<2x32xf32>
    %685 = vector.extract_strided_slice %682 {offsets = [0, 64], sizes = [2, 32], strides = [1, 1]} : vector<2x128xf32> to vector<2x32xf32>
    %686 = vector.extract_strided_slice %682 {offsets = [0, 96], sizes = [2, 32], strides = [1, 1]} : vector<2x128xf32> to vector<2x32xf32>
    %687 = arith.mulf %683, %685 : vector<2x32xf32>
    %688 = arith.mulf %684, %670 : vector<2x32xf32>
    %689 = arith.addf %687, %688 : vector<2x32xf32>
    %cst_164 = arith.constant -3.000000e+00 : f32
    %cst_165 = arith.constant 3.000000e+00 : f32
    %690 = vector.broadcast %cst_164 : f32 to vector<2x32xf32>
    %691 = arith.maximumf %690, %689 : vector<2x32xf32>
    %692 = vector.broadcast %cst_165 : f32 to vector<2x32xf32>
    %693 = arith.minimumf %692, %691 : vector<2x32xf32>
    %694 = math.tanh %693 : vector<2x32xf32>
    %695 = arith.mulf %686, %694 : vector<2x32xf32>
    %cst_166 = arith.constant dense<0.000000e+00> : vector<2x16xf32>
    %696 = tpu.matmul %695, %447, %cst_166 {dimension_numbers = #tpu.dot_dimension_numbers<[1], [0], [0], [1], [0, 0, 1, 1], [], []>} : vector<2x32xf32>, vector<32x16xf32>, vector<2x16xf32> -> vector<2x16xf32>
    %cst_167 = arith.constant -3.000000e+00 : f32
    %cst_168 = arith.constant 3.000000e+00 : f32
    %697 = vector.broadcast %cst_167 : f32 to vector<2x16xf32>
    %698 = arith.maximumf %697, %696 : vector<2x16xf32>
    %699 = vector.broadcast %cst_168 : f32 to vector<2x16xf32>
    %700 = arith.minimumf %699, %698 : vector<2x16xf32>
    %701 = vector.broadcast %53 : vector<2x1xf32> to vector<2x16xf32>
    %702 = arith.mulf %701, %700 : vector<2x16xf32>
    %cst_169 = arith.constant 1.000000e+00 : f32
    %703 = vector.broadcast %cst_169 : f32 to vector<2x1xf32>
    %704 = arith.subf %703, %53 : vector<2x1xf32>
    %705 = vector.broadcast %704 : vector<2x1xf32> to vector<2x16xf32>
    %706 = arith.mulf %705, %663 : vector<2x16xf32>
    %707 = arith.addf %702, %706 : vector<2x16xf32>
    %708 = vector.broadcast %53 : vector<2x1xf32> to vector<2x32xf32>
    %709 = arith.mulf %708, %693 : vector<2x32xf32>
    %cst_170 = arith.constant 1.000000e+00 : f32
    %710 = vector.broadcast %cst_170 : f32 to vector<2x1xf32>
    %711 = arith.subf %710, %53 : vector<2x1xf32>
    %712 = vector.broadcast %711 : vector<2x1xf32> to vector<2x32xf32>
    %713 = arith.mulf %712, %670 : vector<2x32xf32>
    %714 = arith.addf %709, %713 : vector<2x32xf32>
    %715 = vector.broadcast %53 : vector<2x1xf32> to vector<2x16xf32>
    %716 = arith.mulf %700, %715 : vector<2x16xf32>
    %717 = vector.extract_strided_slice %450 {offsets = [12, 0], sizes = [2, 128], strides = [1, 1]} : vector<16x128xf32> to vector<2x128xf32>
    %cst_171 = arith.constant dense<0.000000e+00> : vector<2x128xf32>
    %718 = tpu.matmul %707, %443, %cst_171 {dimension_numbers = #tpu.dot_dimension_numbers<[1], [0], [0], [1], [0, 0, 1, 1], [], []>} : vector<2x16xf32>, vector<16x128xf32>, vector<2x128xf32> -> vector<2x128xf32>
    %719 = arith.addf %717, %718 : vector<2x128xf32>
    %720 = math.tanh %719 : vector<2x128xf32>
    %721 = arith.negf %719 : vector<2x128xf32>
    %722 = math.exp %721 : vector<2x128xf32>
    %cst_172 = arith.constant 1.000000e+00 : f32
    %723 = vector.broadcast %cst_172 : f32 to vector<2x128xf32>
    %724 = arith.addf %723, %722 : vector<2x128xf32>
    %725 = arith.divf %723, %724 : vector<2x128xf32>
    %726 = arith.select %65, %720, %725 : vector<2x128xi1>, vector<2x128xf32>
    %727 = vector.extract_strided_slice %726 {offsets = [0, 0], sizes = [2, 32], strides = [1, 1]} : vector<2x128xf32> to vector<2x32xf32>
    %728 = vector.extract_strided_slice %726 {offsets = [0, 32], sizes = [2, 32], strides = [1, 1]} : vector<2x128xf32> to vector<2x32xf32>
    %729 = vector.extract_strided_slice %726 {offsets = [0, 64], sizes = [2, 32], strides = [1, 1]} : vector<2x128xf32> to vector<2x32xf32>
    %730 = vector.extract_strided_slice %726 {offsets = [0, 96], sizes = [2, 32], strides = [1, 1]} : vector<2x128xf32> to vector<2x32xf32>
    %731 = arith.mulf %727, %729 : vector<2x32xf32>
    %732 = arith.mulf %728, %714 : vector<2x32xf32>
    %733 = arith.addf %731, %732 : vector<2x32xf32>
    %cst_173 = arith.constant -3.000000e+00 : f32
    %cst_174 = arith.constant 3.000000e+00 : f32
    %734 = vector.broadcast %cst_173 : f32 to vector<2x32xf32>
    %735 = arith.maximumf %734, %733 : vector<2x32xf32>
    %736 = vector.broadcast %cst_174 : f32 to vector<2x32xf32>
    %737 = arith.minimumf %736, %735 : vector<2x32xf32>
    %738 = math.tanh %737 : vector<2x32xf32>
    %739 = arith.mulf %730, %738 : vector<2x32xf32>
    %cst_175 = arith.constant dense<0.000000e+00> : vector<2x16xf32>
    %740 = tpu.matmul %739, %447, %cst_175 {dimension_numbers = #tpu.dot_dimension_numbers<[1], [0], [0], [1], [0, 0, 1, 1], [], []>} : vector<2x32xf32>, vector<32x16xf32>, vector<2x16xf32> -> vector<2x16xf32>
    %cst_176 = arith.constant -3.000000e+00 : f32
    %cst_177 = arith.constant 3.000000e+00 : f32
    %741 = vector.broadcast %cst_176 : f32 to vector<2x16xf32>
    %742 = arith.maximumf %741, %740 : vector<2x16xf32>
    %743 = vector.broadcast %cst_177 : f32 to vector<2x16xf32>
    %744 = arith.minimumf %743, %742 : vector<2x16xf32>
    %745 = vector.broadcast %56 : vector<2x1xf32> to vector<2x16xf32>
    %746 = arith.mulf %745, %744 : vector<2x16xf32>
    %cst_178 = arith.constant 1.000000e+00 : f32
    %747 = vector.broadcast %cst_178 : f32 to vector<2x1xf32>
    %748 = arith.subf %747, %56 : vector<2x1xf32>
    %749 = vector.broadcast %748 : vector<2x1xf32> to vector<2x16xf32>
    %750 = arith.mulf %749, %707 : vector<2x16xf32>
    %751 = arith.addf %746, %750 : vector<2x16xf32>
    %752 = vector.broadcast %56 : vector<2x1xf32> to vector<2x32xf32>
    %753 = arith.mulf %752, %737 : vector<2x32xf32>
    %cst_179 = arith.constant 1.000000e+00 : f32
    %754 = vector.broadcast %cst_179 : f32 to vector<2x1xf32>
    %755 = arith.subf %754, %56 : vector<2x1xf32>
    %756 = vector.broadcast %755 : vector<2x1xf32> to vector<2x32xf32>
    %757 = arith.mulf %756, %714 : vector<2x32xf32>
    %758 = arith.addf %753, %757 : vector<2x32xf32>
    %759 = vector.broadcast %56 : vector<2x1xf32> to vector<2x16xf32>
    %760 = arith.mulf %744, %759 : vector<2x16xf32>
    %761 = vector.extract_strided_slice %450 {offsets = [14, 0], sizes = [2, 128], strides = [1, 1]} : vector<16x128xf32> to vector<2x128xf32>
    %cst_180 = arith.constant dense<0.000000e+00> : vector<2x128xf32>
    %762 = tpu.matmul %751, %443, %cst_180 {dimension_numbers = #tpu.dot_dimension_numbers<[1], [0], [0], [1], [0, 0, 1, 1], [], []>} : vector<2x16xf32>, vector<16x128xf32>, vector<2x128xf32> -> vector<2x128xf32>
    %763 = arith.addf %761, %762 : vector<2x128xf32>
    %764 = math.tanh %763 : vector<2x128xf32>
    %765 = arith.negf %763 : vector<2x128xf32>
    %766 = math.exp %765 : vector<2x128xf32>
    %cst_181 = arith.constant 1.000000e+00 : f32
    %767 = vector.broadcast %cst_181 : f32 to vector<2x128xf32>
    %768 = arith.addf %767, %766 : vector<2x128xf32>
    %769 = arith.divf %767, %768 : vector<2x128xf32>
    %770 = arith.select %65, %764, %769 : vector<2x128xi1>, vector<2x128xf32>
    %771 = vector.extract_strided_slice %770 {offsets = [0, 0], sizes = [2, 32], strides = [1, 1]} : vector<2x128xf32> to vector<2x32xf32>
    %772 = vector.extract_strided_slice %770 {offsets = [0, 32], sizes = [2, 32], strides = [1, 1]} : vector<2x128xf32> to vector<2x32xf32>
    %773 = vector.extract_strided_slice %770 {offsets = [0, 64], sizes = [2, 32], strides = [1, 1]} : vector<2x128xf32> to vector<2x32xf32>
    %774 = vector.extract_strided_slice %770 {offsets = [0, 96], sizes = [2, 32], strides = [1, 1]} : vector<2x128xf32> to vector<2x32xf32>
    %775 = arith.mulf %771, %773 : vector<2x32xf32>
    %776 = arith.mulf %772, %758 : vector<2x32xf32>
    %777 = arith.addf %775, %776 : vector<2x32xf32>
    %cst_182 = arith.constant -3.000000e+00 : f32
    %cst_183 = arith.constant 3.000000e+00 : f32
    %778 = vector.broadcast %cst_182 : f32 to vector<2x32xf32>
    %779 = arith.maximumf %778, %777 : vector<2x32xf32>
    %780 = vector.broadcast %cst_183 : f32 to vector<2x32xf32>
    %781 = arith.minimumf %780, %779 : vector<2x32xf32>
    %782 = math.tanh %781 : vector<2x32xf32>
    %783 = arith.mulf %774, %782 : vector<2x32xf32>
    %cst_184 = arith.constant dense<0.000000e+00> : vector<2x16xf32>
    %784 = tpu.matmul %783, %447, %cst_184 {dimension_numbers = #tpu.dot_dimension_numbers<[1], [0], [0], [1], [0, 0, 1, 1], [], []>} : vector<2x32xf32>, vector<32x16xf32>, vector<2x16xf32> -> vector<2x16xf32>
    %cst_185 = arith.constant -3.000000e+00 : f32
    %cst_186 = arith.constant 3.000000e+00 : f32
    %785 = vector.broadcast %cst_185 : f32 to vector<2x16xf32>
    %786 = arith.maximumf %785, %784 : vector<2x16xf32>
    %787 = vector.broadcast %cst_186 : f32 to vector<2x16xf32>
    %788 = arith.minimumf %787, %786 : vector<2x16xf32>
    %789 = vector.broadcast %59 : vector<2x1xf32> to vector<2x16xf32>
    %790 = arith.mulf %788, %789 : vector<2x16xf32>
    %791 = arith.addf %496, %122 : vector<2x16xf32>
    %792 = arith.addf %540, %166 : vector<2x16xf32>
    %793 = arith.addf %584, %210 : vector<2x16xf32>
    %794 = arith.addf %628, %254 : vector<2x16xf32>
    %795 = arith.addf %672, %298 : vector<2x16xf32>
    %796 = arith.addf %716, %342 : vector<2x16xf32>
    %797 = arith.addf %760, %386 : vector<2x16xf32>
    %798 = arith.addf %790, %416 : vector<2x16xf32>
    %799 = vector.shape_cast %791 : vector<2x16xf32> to vector<2x1x16xf32>
    %800 = vector.shape_cast %792 : vector<2x16xf32> to vector<2x1x16xf32>
    %801 = vector.shape_cast %793 : vector<2x16xf32> to vector<2x1x16xf32>
    %802 = vector.shape_cast %794 : vector<2x16xf32> to vector<2x1x16xf32>
    %803 = vector.shape_cast %795 : vector<2x16xf32> to vector<2x1x16xf32>
    %804 = vector.shape_cast %796 : vector<2x16xf32> to vector<2x1x16xf32>
    %805 = vector.shape_cast %797 : vector<2x16xf32> to vector<2x1x16xf32>
    %806 = vector.shape_cast %798 : vector<2x16xf32> to vector<2x1x16xf32>
    %807 = tpu.concatenate %799, %800, %801, %802, %803, %804, %805, %806 in 1 : vector<2x1x16xf32>, vector<2x1x16xf32>, vector<2x1x16xf32>, vector<2x1x16xf32>, vector<2x1x16xf32>, vector<2x1x16xf32>, vector<2x1x16xf32>, vector<2x1x16xf32> -> vector<2x8x16xf32>
    %808 = vector.shape_cast %798 : vector<2x16xf32> to vector<2x1x16xf32>
    %809 = vector.shape_cast %797 : vector<2x16xf32> to vector<2x1x16xf32>
    %810 = vector.shape_cast %796 : vector<2x16xf32> to vector<2x1x16xf32>
    %811 = vector.shape_cast %795 : vector<2x16xf32> to vector<2x1x16xf32>
    %812 = vector.shape_cast %794 : vector<2x16xf32> to vector<2x1x16xf32>
    %813 = vector.shape_cast %793 : vector<2x16xf32> to vector<2x1x16xf32>
    %814 = vector.shape_cast %792 : vector<2x16xf32> to vector<2x1x16xf32>
    %815 = vector.shape_cast %791 : vector<2x16xf32> to vector<2x1x16xf32>
    %816 = tpu.concatenate %808, %809, %810, %811, %812, %813, %814, %815 in 1 : vector<2x1x16xf32>, vector<2x1x16xf32>, vector<2x1x16xf32>, vector<2x1x16xf32>, vector<2x1x16xf32>, vector<2x1x16xf32>, vector<2x1x16xf32>, vector<2x1x16xf32> -> vector<2x8x16xf32>
    %817 = arith.select %0, %816, %807 : vector<2x8x16xf32>
    %c2 = arith.constant 2 : index
    %c0_187 = arith.constant 0 : index
    %c0_188 = arith.constant 0 : index
    %c0_189 = arith.constant 0 : index
    %818 = vector.load %arg7[%c2, %c0_187, %c0_188, %c0_189] : memref<3x2x8x16xf32, #tpu.memory_space<vmem>>, vector<1x2x8x16xf32>
    %819 = vector.shape_cast %818 : vector<1x2x8x16xf32> to vector<2x8x16xf32>
    %820 = vector.shape_cast %817 : vector<2x8x16xf32> to vector<1x2x8x16xf32>
    tpu.vector_store %arg7[%c2, %c0_187, %c0_188, %c0_189], %820 {strides = array<i32>} : memref<3x2x8x16xf32, #tpu.memory_space<vmem>>, vector<1x2x8x16xf32>,
    return
  }
  func.func @transform_0(%arg0: i32) -> (i32, i32) {
    %c0_i32 = arith.constant 0 : i32
    %c0_i32_0 = arith.constant 0 : i32
    %c0_i32_1 = arith.constant 0 : i32
    return %c0_i32, %c0_i32_0 : i32, i32
  }
  func.func @transform_1(%arg0: i32) -> (i32, i32) {
    %c0_i32 = arith.constant 0 : i32
    %c0_i32_0 = arith.constant 0 : i32
    %c0_i32_1 = arith.constant 0 : i32
    return %c0_i32, %c0_i32_0 : i32, i32
  }
  func.func @transform_2(%arg0: i32) -> (i32, i32, i32, i32) {
    %c0_i32 = arith.constant 0 : i32
    %c0_i32_0 = arith.constant 0 : i32
    %c0_i32_1 = arith.constant 0 : i32
    %c0_i32_2 = arith.constant 0 : i32
    return %arg0, %c0_i32, %c0_i32_0, %c0_i32_1 : i32, i32, i32, i32
  }
  func.func @transform_3(%arg0: i32) -> (i32, i32, i32, i32) {
    %c0_i32 = arith.constant 0 : i32
    %c0_i32_0 = arith.constant 0 : i32
    %c0_i32_1 = arith.constant 0 : i32
    %c0_i32_2 = arith.constant 0 : i32
    return %arg0, %c0_i32, %c0_i32_0, %c0_i32_1 : i32, i32, i32, i32
  }
  func.func @transform_4(%arg0: i32) -> (i32, i32, i32, i32) {
    %c0_i32 = arith.constant 0 : i32
    %c0_i32_0 = arith.constant 0 : i32
    %c0_i32_1 = arith.constant 0 : i32
    %c0_i32_2 = arith.constant 0 : i32
    return %arg0, %c0_i32, %c0_i32_0, %c0_i32_1 : i32, i32, i32, i32
  }
  func.func @transform_5(%arg0: i32) -> (i32, i32, i32, i32) {
    %c0_i32 = arith.constant 0 : i32
    %c0_i32_0 = arith.constant 0 : i32
    %c0_i32_1 = arith.constant 0 : i32
    %c0_i32_2 = arith.constant 0 : i32
    return %arg0, %c0_i32, %c0_i32_0, %c0_i32_1 : i32, i32, i32, i32
  }
  func.func @transform_6(%arg0: i32) -> (i32, i32, i32, i32) {
    %c0_i32 = arith.constant 0 : i32
    %c0_i32_0 = arith.constant 0 : i32
    %c0_i32_1 = arith.constant 0 : i32
    %c0_i32_2 = arith.constant 0 : i32
    return %arg0, %c0_i32, %c0_i32_0, %c0_i32_1 : i32, i32, i32, i32
  }
}

</mosaic_0001>

<bundles_post_ra>
// kernel: elmo_bilm_forward.2
= control target key start
LH: loop header
LB: loop body
LE: loop exit
PB: predicated region body
PF: predicated region fallthrough
CT: control target
= control target key end

     0   :  { %vm46_vm0 = vcmask 523264   ;;  %s527_s27 = smov 112   ;;  %s528_s28 = smov 80   ;;  %vm206_vm1 = vcmask 130048   ;;  %s656_s1 = inlined_call_operand.vmem [shape: f32[64,128], index: 1, kind: input, shape index: {}]   ;;  %s657_s0 = inlined_call_operand.vmem [shape: f32[16,64], index: 0, kind: input, shape index: {}]   ;;  %s658_s2 = inlined_call_operand.vmem [shape: f32[1,128], index: 2, kind: input, shape index: {}]   ;;  %s659_s4 = inlined_call_operand.vmem [shape: f32[1,16,32], index: 4, kind: input, shape index: {}]   ;;  %s660_s3 = inlined_call_operand.vmem [shape: f32[1,16], index: 3, kind: input, shape index: {}]   ;;  %s661_s5 = inlined_call_operand.vmem [shape: f32[1,1,32], index: 5, kind: input, shape index: {}]   ;;  %s662_s6 = inlined_call_operand.vmem [shape: f32[16,16], index: 6, kind: input, shape index: {}]   ;;  %s663_s7 = inlined_call_operand.vmem [shape: f32[1,16], index: 7, kind: input, shape index: {}]   ;;  %s664_s8 = inlined_call_operand.vmem [shape: f32[16,16], index: 8, kind: output, shape index: {}]  }
   0x1   :  { %v31_v0 = vld [vmem:[%s656_s1] sm:$0xff]  ;;  %v32_v1 = vld [vmem:[%s656_s1 + $0x8] sm:$0xff]  ;;  %v33_v2 = vld [vmem:[%s656_s1 + $0x10] sm:$0xff]  ;;  %s530_s10 = smov 48   ;;  %s531_s11 = smov 32  }
   0x2   :  { %v487_v3 = vpack.c.bf16 %v32_v1, %v31_v0  ;;  %v34_v4 = vld [vmem:[%s656_s1 + $0x18] sm:$0xff]  ;;  %v35_v6 = vld [vmem:[%s656_s1 + $0x20] sm:$0xff]  ;;  %v36_v7 = vld [vmem:[%s656_s1 + $0x28] sm:$0xff]  ;;  %s532_s12 = smov 16  }
   0x3   :  { %v491_v5 = vpack.c.bf16 %v34_v4, %v33_v2  ;;  %v29_v8 = vld [vmem:[%s657_s0] sm:$0xff]  ;;  %v495_v9 = vpack.c.bf16 %v36_v7, %v35_v6  ;;  %v37_v10 = vld [vmem:[%s656_s1 + $0x30] sm:$0xff]  ;;  %v38_v11 = vld [vmem:[%s656_s1 + $0x38] sm:$0xff]  ;;  %s526_s1 = smov 96  }
   0x4   :  { %488 = vmatprep.subr.bf16.mxu0 %v487_v3  ;;  %470 = vmatprep.mubr.msk.f32.mxu0 %vm46_vm0, %v29_v8  ;;  %v499_v12 = vpack.c.bf16 %v38_v11, %v37_v10  ;;  %v30_v13 = vld [vmem:[%s657_s0 + $0x8] sm:$0xff]  ;;  %v424_v14 = vld [vmem:[%s658_s2] ss:$0 sm:$0xff]  ;;  %s529_s0 = smov 64  }
   0x5   :  { %490 = vmatpush3.bf16.msra.mxu0 %v487_v3  ;;  %v197_v19 = vld [vmem:[%s659_s4] sm:$0xff]  ;;  %v198_v20 = vld [vmem:[%s659_s4 + $0x8] sm:$0xff] }
   0x6   :  { %492 = vmatprep.subr.bf16.mxu0 %v491_v5  ;;  %v503_v21 = vpack.c.bf16 %v198_v20, %v197_v19  ;;  %v427_v46 = vld [vmem:[%s660_s3] ss:$0 sm:$0xff]  ;;  %v325_v60 = vld [vmem:[%s662_s6 + $0x8] sm:$0xff] }
   0x7   :  { %v428_v55 = vld [vmem:[%s661_s5] ss:$0 sm:$0xff] }
   0x8   :  { %504 = vmatprep.subr.bf16.mxu1 %v503_v21  ;;  %v324_v59 = vld [vmem:[%s662_s6] sm:$0xff] }
   0x9   :  { %494 = vmatpush3.bf16.msra.mxu0 %v491_v5  ;;  %506 = vmatpush3.bf16.msra.mxu1 %v503_v21  ;;  %v507_v61 = vpack.c.bf16 %v325_v60, %v324_v59 }
   0xa   :  { %496 = vmatprep.subr.bf16.mxu0 %v495_v9 }
   0xb   :  { %508 = vmatprep.subr.bf16.mxu1 %v507_v61 }
   0xd   :  { %498 = vmatpush3.bf16.msra.mxu0 %v495_v9 }
   0xe   :  { %500 = vmatprep.subr.bf16.mxu0 %v499_v12 }
  0x11   :  { %502 = vmatpush3.bf16.msra.mxu0 %v499_v12 }
  0x14   :  { %471 = vmatmul.mubr.msk.f32.vlgmr.msra.gmra.mrb[0].mxu0 %vm46_vm0, %v30_v13 }
  0xe7   :  { %v472_v15 = vpop.f32.mrb[0].mxu0 }
  0xe8   :  { %v125_v16 = vadd.f32 %v472_v15, %v424_v14  ;;  %v119_v17 = vpop.f32.mrb[1].mxu0 }
  0xe9   :  { %v120_v18 = vadd.f32 %v424_v14, %v119_v17 }
  0xea   :  { %140 = vrot.lane.b32.xlu1 %v125_v16, %s526_s1  ;;  %132 = vrot.lane.b32.xlu0 %v125_v16, %s527_s27 }
  0xee   :  { %148 = vrot.lane.b32.xlu1 %v125_v16, %s528_s28  ;;  %130 = vrot.lane.b32.xlu0 %v120_v18, %s527_s27 }
  0xf2   :  { %156 = vrot.lane.b32.xlu1 %v125_v16, %s529_s0  ;;  %146 = vrot.lane.b32.xlu0 %v120_v18, %s528_s28 }
  0xf6   :  { %138 = vrot.lane.b32.xlu1 %v120_v18, %s526_s1  ;;  %154 = vrot.lane.b32.xlu0 %v120_v18, %s529_s0 }
  0xfa   :  { %164 = vrot.lane.b32.xlu1 %v125_v16, %s530_s10  ;;  %162 = vrot.lane.b32.xlu0 %v120_v18, %s530_s10 }
  0xfe   :  { %172 = vrot.lane.b32.xlu1 %v125_v16, %s531_s11  ;;  %170 = vrot.lane.b32.xlu0 %v120_v18, %s531_s11 }
 0x102   :  { %180 = vrot.lane.b32.xlu1 %v125_v16, %s532_s12  ;;  %178 = vrot.lane.b32.xlu0 %v120_v18, %s532_s12 }
 0x15c   :  { %v141_v22 = vpop.permute.xlu1 %140  ;;  %v133_v23 = vpop.permute.xlu0 %132 }
 0x15d   :  { %v137_v28 = vmax.f32 %v125_v16, %v133_v23  ;;  %v433_v23 = vld [vmem:[%s663_s7] ss:$0 sm:$0xff] }
 0x15f   :  { %v145_v32 = vmax.f32 %v137_v28, %v141_v22 }
 0x160   :  { %v149_v24 = vpop.permute.xlu1 %148  ;;  %v131_v25 = vpop.permute.xlu0 %130 }
 0x161   :  { %v136_v29 = vmax.f32 %v120_v18, %v131_v25  ;;  %v153_v37 = vmax.f32 %v145_v32, %v149_v24 }
 0x164   :  { %v157_v26 = vpop.permute.xlu1 %156  ;;  %v147_v27 = vpop.permute.xlu0 %146 }
 0x165   :  { %v161_v39 = vmax.f32 %v153_v37, %v157_v26 }
 0x168   :  { %v139_v30 = vpop.permute.xlu1 %138  ;;  %v155_v31 = vpop.permute.xlu0 %154 }
 0x169   :  { %v144_v33 = vmax.f32 %v136_v29, %v139_v30 }
 0x16b   :  { %v152_v34 = vmax.f32 %v144_v33, %v147_v27 }
 0x16c   :  { %v165_v35 = vpop.permute.xlu1 %164  ;;  %v163_v36 = vpop.permute.xlu0 %162 }
 0x16d   :  { %v160_v38 = vmax.f32 %v152_v34, %v155_v31  ;;  %v169_v43 = vmax.f32 %v161_v39, %v165_v35 }
 0x16f   :  { %v168_v40 = vmax.f32 %v160_v38, %v163_v36 }
 0x170   :  { %v173_v41 = vpop.permute.xlu1 %172  ;;  %v171_v42 = vpop.permute.xlu0 %170 }
 0x171   :  { %v177_v44 = vmax.f32 %v169_v43, %v173_v41  ;;  %v176_v45 = vmax.f32 %v168_v40, %v171_v42 }
 0x174   :  { %v181_v47 = vpop.permute.xlu1 %180  ;;  %v179_v48 = vpop.permute.xlu0 %178 }
 0x175   :  { %v185_v49 = vmax.f32 %v177_v44, %v181_v47  ;;  %v184_v50 = vmax.f32 %v176_v45, %v179_v48 }
 0x177   :  { %v194_v51 = vadd.f32 %v427_v46, %v185_v49  ;;  %v193_v52 = vadd.f32 %v427_v46, %v184_v50 }
 0x179   :  { %v196_v53 = vmax.f32 %v194_v51, 0.0  ;;  %v195_v54 = vmax.f32 %v193_v52, 0.0 }
 0x17b   :  { %302 = vrot.lane.b32.xlu0 %v195_v54, %s532_s12  ;;  %477 = vmatprep.mubr.msk.f32.mxu1 %vm206_vm1, %v195_v54 }
 0x17c   :  { %478 = vmatmul.mubr.msk.f32.vlgmr.msra.gmra.mrb[0].mxu1 %vm206_vm1, %v196_v53 }
 0x17d   :  { %510 = vmatpush3.bf16.msra.mxu1 %v507_v61 }
 0x17f   :  { %304 = vrot.lane.b32.xlu0 %v196_v53, %s532_s12 }
 0x1ed   :  { %v303_v8 = vpop.permute.xlu0 %302 }
 0x1f1   :  { %v305_v16 = vpop.permute.xlu0 %304 }
 0x24f   :  { %v479_v56 = vpop.f32.mrb[0].mxu1 }
 0x250   :  { %v279_v57 = vpop.f32.mrb[1].mxu1  ;;  %v285_v62 = vadd.f32 %v479_v56, %v428_v55 }
 0x251   :  { %v280_v58 = vadd.f32 %v428_v55, %v279_v57 }
 0x252   :  { %v289_v0 = vmax.f32 %v285_v62, 0.0  ;;  %v432_v2 = vmul.f32 -1.442695, %v285_v62 }
 0x253   :  { %v288_v63 = vmax.f32 %v280_v58, 0.0  ;;  %v431_v1 = vmul.f32 -1.442695, %v280_v58 }
 0x255   :  { %314 = vrot.lane.b32.xlu1 %v288_v63, %s532_s12  ;;  %518 = vpow2.f32 %v431_v1 }
 0x256   :  { %520 = vpow2.f32 %v432_v2 }
 0x259   :  { %316 = vrot.lane.b32.xlu1 %v289_v0, %s532_s12 }
 0x25f   :  { %v519_v3 = vpop.eup %518 }
 0x260   :  { %v296_v4 = vadd.f32 1.0, %v519_v3  ;;  %v521_v5 = vpop.eup %520 }
 0x261   :  { %v297_v6 = vadd.f32 1.0, %v521_v5 }
 0x262   :  { %522 = vrcp.f32 %v296_v4 }
 0x263   :  { %524 = vrcp.f32 %v297_v6 }
 0x26c   :  { %v523_v7 = vpop.eup %522 }
 0x26d   :  { %v310_v9 = vsub.f32 1.0, %v523_v7  ;;  %v525_v10 = vpop.eup %524  ;;  %v308_v12 = vmul.f32 %v523_v7, %v303_v8 }
 0x26e   :  { %v311_v15 = vsub.f32 1.0, %v525_v10  ;;  %v309_v18 = vmul.f32 %v525_v10, %v305_v16 }
 0x2c7   :  { %v315_v11 = vpop.permute.xlu1 %314 }
 0x2c8   :  { %v320_v13 = vmul.f32 %v315_v11, %v310_v9 }
 0x2ca   :  { %v322_v14 = vadd.f32 %v320_v13, %v308_v12 }
 0x2cb   :  { %v317_v17 = vpop.permute.xlu1 %316 }
 0x2cc   :  { %v321_v19 = vmul.f32 %v317_v17, %v311_v15  ;;  %335 = vrot.lane.b32.xlu0 %v322_v14, %s527_s27 }
 0x2ce   :  { %v323_v20 = vadd.f32 %v321_v19, %v309_v18 }
 0x2d0   :  { %337 = vrot.lane.b32.xlu1 %v323_v20, %s527_s27 }
 0x33e   :  { %v336_v21 = vpop.permute.xlu0 %335 }
 0x33f   :  { %484 = vmatprep.mubr.msk.f32.mxu1 %vm206_vm1, %v336_v21 }
 0x342   :  { %v338_v22 = vpop.permute.xlu1 %337 }
 0x343   :  { %485 = vmatmul.mubr.msk.f32.vlgmr.msra.gmra.mrb[2].mxu1 %vm206_vm1, %v338_v22 }
 0x416   :  { %v486_v24 = vpop.f32.mrb[2].mxu1 }
 0x417   :  { %v415_v25 = vadd.f32 %v486_v24, %v433_v23  ;;  %v409_v26 = vpop.f32.mrb[3].mxu1 }
 0x418   :  { %v410_v27 = vadd.f32 %v433_v23, %v409_v26 }
 0x419   :  { %419 = vst.msk [vmem:[%s664_s8 + $0x8] sm:$0xff] %vm206_vm1, %v415_v25 }
 0x41a   :  { %418 = vst.msk [vmem:[%s664_s8] sm:$0xff] %vm206_vm1, %v410_v27 }

// kernel: elmo_bilm_forward.3
= control target key start
LH: loop header
LB: loop body
LE: loop exit
PB: predicated region body
PF: predicated region fallthrough
CT: control target
= control target key end

     0   :  { %s5612_s21 = smov 0   ;;  %s6552_s0 = inlined_call_operand.vmem [shape: f32[16,16], index: 0, kind: input, shape index: {}]   ;;  %s6553_s1 = inlined_call_operand.vmem [shape: f32[2,8], index: 1, kind: input, shape index: {}]   ;;  %s6554_s2 = inlined_call_operand.vmem [shape: f32[2,2,16,128], index: 2, kind: input, shape index: {}]   ;;  %s6555_s3 = inlined_call_operand.vmem [shape: f32[2,2,16,128], index: 3, kind: input, shape index: {}]   ;;  %s6556_s4 = inlined_call_operand.vmem [shape: f32[2,2,1,128], index: 4, kind: input, shape index: {}]   ;;  %s6557_s5 = inlined_call_operand.vmem [shape: f32[2,2,32,16], index: 5, kind: input, shape index: {}]   ;;  %s6558_s6 = inlined_call_operand.vmem [shape: f32[6,2,8,16], index: 6, kind: output, shape index: {}]  }
   0x1 LB: > { %s5618_s22 = sadd.s32 4294967295, %s5552_s21   ;;  %p4664_p0 = scmp.ge.s32.totalorder %s5552_s21, 1  ;;  %s5552_s21 = sphi %s5612_s21, %s16_s21  }
   0x2   : > { %p241_p1 = scmp.lt.s32.totalorder %s5552_s21, 3 }
   0x4   : > { %p242_p2 = pnand %p4664_p0, %p241_p1 }
   0x5   : > { %p286_p3 = scmp.lt.s32.totalorder (!%p242_p2), %s5618_s22, 1  ;;  %p312_p4 = scmp.eq.s32.totalorder (!%p242_p2), %s5618_s22, 1  ;;  %v313_v0 = vld [vmem:[%s6552_s0] sm:$0xff] (!%p242_p2)  ;;  %v314_v1 = vld [vmem:[%s6552_s0 + $0x8] sm:$0xff] (!%p242_p2)  ;;  %vm491_vm0 = vcmask (!%p242_p2), 1041408   ;;  %vm497_vm1 = vcmask (!%p242_p2), 1043456   ;;  %v320_v34 = vlaneseq (!%p242_p2) }
   0x6   : > { %245 = sbr.rel (%p242_p2) target bundleno = 13268 (0x33d4), region = 44  ;;  %v528_v2 = vrot.slane (!%p242_p2), %v314_v1, 6  ;;  %v530_v3 = vrot.slane (!%p242_p2), %v314_v1, 2  ;;  %v532_v4 = vrot.slane (!%p242_p2), %v313_v0, 6  ;;  %v534_v5 = vrot.slane (!%p242_p2), %v313_v0, 2  ;;  %s5557_s16 = smov (!%p242_p2), 64  }
   0x7   : > { %vm503_vm2 = vcmask (!%p242_p2), 1045504   ;;  %v5554_v9 = vmov (!%p242_p2), 0.0|0.0   ;;  %vm5555_vm3 = vmmov (!%p242_p2), 0   ;;  %v5556_v10 = vmov (!%p242_p2), 0.0   ;;  %s5558_s17 = smov (!%p242_p2), 96   ;;  %s5559_s20 = smov (!%p242_p2), 7  }
   0x8   : > { %v536_v6 = vsel (!%p242_p2), %vm491_vm0, %v528_v2, %v530_v3  ;;  %v539_v8 = vsel (!%p242_p2), %vm491_vm0, %v532_v4, %v534_v5  ;;  %5222 = vmatprep.subr.bf16.mxu0 (!%p242_p2), %v5554_v9  ;;  %4935 = vmatprep.mubr.msk.f32.mxu0 (!%p242_p2), %vm5555_vm3, %v5556_v10  ;;  %vm525_vm5 = vcmask (!%p242_p2), 130048   ;;  %v581_v36 = vand.u32 (!%p242_p2), 127, %v320_v34  ;;  %v5703_v42 = vld [vmem:[%s6553_s1] sm:$0x3] (!%p242_p2)  ;;  %s5567_s30 = smov (!%p242_p2), 1   ;;  %s5569_s7 = smov (!%p242_p2), 127  }
   0x9   : > { %v537_v13 = vsel (!%p242_p2), %vm497_vm1, %v536_v6, %v528_v2  ;;  %v540_v15 = vsel (!%p242_p2), %vm497_vm1, %v539_v8, %v532_v4  ;;  %v5560_v49 = vmov (!%p242_p2), 7   ;;  %vm785_vm9 = vcmask (!%p242_p2), 261120   ;;  %s5571_s9 = smov (!%p242_p2), 125   ;;  %s5573_s10 = smov (!%p242_p2), 123  }
   0xa   : > { %v538_v19 = vsel (!%p242_p2), %vm503_vm2, %v537_v13, %v530_v3  ;;  %v541_v21 = vsel (!%p242_p2), %vm503_vm2, %v540_v15, %v534_v5  ;;  %vm582_vm6 = vcmp.ge.s32.totalorder (!%p242_p2), %v581_v36, 64  ;;  %vm583_vm7 = vcmp.lt.s32.totalorder (!%p242_p2), %v581_v36, 96  ;;  %5399 = vset.pattern.permute.xlu0 (!%p242_p2), %v5560_v49  ;;  %5398 = vset.pattern.permute.xlu1 (!%p242_p2), %v5560_v49 }
   0xb   : > { %vm5692_vm8 = vmand (!%p242_p2), %vm582_vm6, %vm583_vm7  ;;  %vm488_vm10 = vcmask (!%p242_p2), 1040384   ;;  %vm494_vm11 = vcmask (!%p242_p2), 1042432   ;;  %vm500_vm12 = vcmask (!%p242_p2), 1044480   ;;  %vm506_vm13 = vcmask (!%p242_p2), 1046528  }
   0xd   : > { %s5631_s27 = scalar_select %p286_p3, %s5618_s22, 1 }
   0xe   : > { %s542_s28 = scalar_select %p312_p4, 1, 0 }
   0xf   : > { %s4773_s29 = sshll.u32 %s5631_s27, 5  ;;  %s4669_s12 = sshll.u32 %s5631_s27, 1 }
  0x10   : > { %s5637_s8 = scalar_lea.vmem %s6554_s2, %s4773_s29  ;;  %s5642_s11 = scalar_lea.vmem %s6555_s3, %s4773_s29  ;;  %v543_v7 = vstv %s542_s28 }
  0x11   : > { %v585_v11 = vld [vmem:[%s5637_s8] sm:$0xff]  ;;  %v586_v12 = vld [vmem:[%s5637_s8 + $0x8] sm:$0xff]  ;;  %vm5652_vm4 = vcmp.eq.s32.totalorder %v543_v7, 1  ;;  %s5683_s15 = scalar_lea.vmem %s6556_s4, %s4669_s12  ;;  %s4775_s23 = sshll.u32 %s5631_s27, 6 }
  0x12   : > { %v587_v16 = vld [vmem:[%s5642_s11] sm:$0xff]  ;;  %v588_v17 = vld [vmem:[%s5642_s11 + $0x8] sm:$0xff]  ;;  %v5215_v18 = vpack.c.bf16 %v586_v12, %v585_v11  ;;  %v545_v20 = vsel %vm5652_vm4, %v538_v19, %v313_v0  ;;  %v546_v23 = vsel %vm5652_vm4, %v541_v21, %v314_v1  ;;  %s5710_s26 = scalar_lea.vmem %s6557_s5, %s4775_s23  ;;  %s5561_s27 = smov 32  }
  0x13   : > { %v5663_v22 = vpack.c.bf16 %v588_v17, %v587_v16  ;;  %4917 = vmatprep.mubr.msk.f32.mxu1 %vm525_vm5, %v545_v20  ;;  %v4674_v24 = vld [vmem:[%s5683_s15] ss:$0 sm:$0xff]  ;;  %v591_v53 = vld [vmem:[%s5710_s26 + $0x8] sm:$0xff]  ;;  %v592_v54 = vld [vmem:[%s5710_s26 + $0x10] sm:$0xff]  ;;  %s5563_s28 = smov 5   ;;  %s5565_s29 = smov 3  }
  0x14   : > { %5216 = vmatprep.subr.bf16.mxu1 %v5215_v18  ;;  %v590_v52 = vld [vmem:[%s5710_s26] sm:$0xff]  ;;  %v593_v56 = vld [vmem:[%s5710_s26 + $0x18] sm:$0xff]  ;;  %s5574_s12 = smov 121  }
  0x15   : > { %5218 = vmatpush3.bf16.msra.mxu1 %v5215_v18  ;;  %v5718_v55 = vpack.c.bf16 %v591_v53, %v590_v52  ;;  %v5722_v57 = vpack.c.bf16 %v593_v56, %v592_v54 }
  0x16   : > { %5219 = vmatprep.subr.bf16.mxu1 %v5554_v9 }
  0x17   : > { %5224 = vmatpush3.bf16.msra.mxu0 %v5718_v55 }
  0x18   : > { %4918 = vmatmul.mubr.msk.f32.vlgmr.msra.gmra.mrb[0].mxu1 %vm525_vm5, %v546_v23  ;;  %5225 = vmatprep.subr.bf16.mxu0 %v5554_v9 }
  0x19   : > { %5221 = vmatpush3.bf16.msra.mxu1 %v5663_v22  ;;  %4924 = vmatprep.mubr.msk.f32.mxu1 %vm5555_vm3, %v5556_v10 }
  0x1a   : > { %5228 = vmatprep.subr.bf16.mxu1 %v5554_v9 }
  0x1b   : > { %5227 = vmatpush3.bf16.msra.mxu0 %v5722_v57 }
  0x1c   : > { %4925 = vmatmul.mubr.f32.vlgmr.msra.gmra.mrb[2].mxu1 %v5556_v10  ;;  %5237 = vmatprep.subr.bf16.mxu0 %v5554_v9 }
  0x1d   : > { %5230 = vmatpush3.bf16.msra.mxu1 %v5663_v22  ;;  %4942 = vmatprep.mubr.msk.f32.mxu1 %vm5555_vm3, %v5556_v10 }
  0x1e   : > { %5231 = vmatprep.subr.bf16.mxu1 %v5554_v9 }
  0xeb   : > { %v4919_v25 = vpop.f32.mrb[0].mxu1 }
  0xec   : > { %v5686_v26 = vadd.f32 %v4919_v25, %v4674_v24  ;;  %v672_v27 = vpop.f32.mrb[1].mxu1 }
  0xed   : > { %v5688_v28 = vadd.f32 %v4674_v24, %v672_v27 }
  0xef   : > { %v750_v29 = vpop.f32.mrb[2].mxu1 }
  0xf0   : > { %v754_v30 = vadd.f32 %v750_v29, %v5688_v28  ;;  %v4926_v31 = vpop.f32.mrb[3].mxu1 }
  0xf2   : > { %v4677_v32 = vmul.f32 -1.442695, %v754_v30 }
  0xf4   : > { %5415 = vpow2.f32 %v4677_v32  ;;  %v5562_v32 = vmov 6  }
  0xf5   : > { %5417 = vtanh.f32 %v754_v30 }
  0xfe   : > { %v5416_v33 = vpop.eup %5415 }
  0xff   : > { %v759_v35 = vadd.f32 1.0, %v5416_v33  ;;  %v5418_v38 = vpop.eup %5417 }
 0x101   : > { %5419 = vrcp.f32 %v759_v35 }
 0x10b   : > { %v5420_v39 = vpop.eup %5419 }
 0x10c   : > { %v762_v40 = vsel %vm5692_vm8, %v5418_v38, %v5420_v39 }
 0x10d   : > { %764 = vrot.lane.b32.xlu0 %v762_v40, %s5557_s16  ;;  %v768_v41 = vmul.f32 0.0, %v762_v40 }
 0x111   : > { %770 = vrot.lane.b32.xlu0 %v768_v41, %s5558_s17 }
 0x115   : > { %548 = vrot.lane.b32.xlu0 %v5703_v42, %s5559_s20 }
 0x17f   : > { %v765_v43 = vpop.permute.xlu0 %764 }
 0x180   : > { %v767_v44 = vmul.f32 %v765_v43, %v762_v40 }
 0x183   : > { %v771_v45 = vpop.permute.xlu0 %770 }
 0x184   : > { %v773_v46 = vadd.f32 %v771_v45, %v767_v44 }
 0x186   : > { %v4678_v47 = vclamps-f32 %v773_v46, 3.0 }
 0x187   : > { %v549_v48 = vpop.permute.xlu0 %548 }
 0x188   : > { %5421 = vtanh.f32 %v4678_v47  ;;  %v551_v50 = vsel %vm5652_vm4, %v5703_v42, %v549_v48 }
 0x189   : > { %v866_v51 = vsub.f32 1.0, %v551_v50 }
 0x18b   : > { %869 = vperm.xlu0 %5399, %v866_v51  }
 0x18f   : > { %5400 = vset.pattern.permute.xlu0 %v5562_v32 }
 0x192   : > { %v5422_v58 = vpop.eup %5421 }
 0x193   : > { %778 = vrot.lane.b32.xlu1 %v5422_v58, %s5558_s17 }
 0x205   : > { %v779_v59 = vpop.permute.xlu1 %778 }
 0x206   : > { %v781_v60 = vmul.f32 %v779_v59, %v762_v40 }
 0x208   : > { %783 = vrot.lane.b32.xlu1 %v781_v60, %s5561_s27 }
 0x20a   : > { %v870_v62 = vpop.permute.xlu0 %869 }
 0x20b   : > { %v5734_v63 = vmul.f32 0.0, %v870_v62 }
 0x20c   : > { %862 = vperm.xlu1 %5398, %v551_v50  }
 0x210   : > { %5401 = vset.pattern.permute.xlu1 %v5562_v32 }
 0x27a   : > { %v784_v61 = vpop.permute.xlu1 %783 }
 0x27b   : > { %4936 = vmatmul.mubr.msk.f32.vlgmr.msra.gmra.mrb[0].mxu0 %vm785_vm9, %v784_v61 }
 0x27c   : > { %5239 = vmatpush3.bf16.msra.mxu0 %v5663_v22  ;;  %4960 = vmatprep.mubr.msk.f32.mxu0 %vm5555_vm3, %v5556_v10 }
 0x27d   : > { %5240 = vmatprep.subr.bf16.mxu0 %v5554_v9 }
 0x28b   : > { %v5736_v0 = vpop.permute.xlu1 %862 }
 0x28c   : > { %v874_v1 = vmul.f32 %v4678_v47, %v5736_v0 }
 0x28e   : > { %v875_v2 = vadd.f32 %v874_v1, %v5734_v63 }
 0x290   : > { %v967_v3 = vrot.slane %v875_v2, 6 }
 0x292   : > { %968 = vrot.lane.b32.xlu1 %v967_v3, %s5561_s27 }
 0x304   : > { %v969_v21 = vpop.permute.xlu1 %968 }
 0x34e   : > { %v854_v4 = vpop.f32.mrb[0].mxu0 }
 0x34f   : > { %v4680_v5 = vclamps-f32 %v854_v4, 3.0  ;;  %v4937_v6 = vpop.f32.mrb[1].mxu0 }
 0x351   : > { %v5742_v7 = vmul.f32 %v4680_v5, %v5736_v0 }
 0x353   : > { %v873_v8 = vadd.f32 %v5734_v63, %v5742_v7 }
 0x355   : > { %4943 = vmatmul.mubr.msk.f32.vlgmr.msra.gmra.mrb[4].mxu1 %vm525_vm5, %v873_v8 }
 0x356   : > { %5233 = vmatpush3.bf16.msra.mxu1 %v5718_v55  ;;  %4953 = vmatprep.mubr.msk.f32.mxu1 %vm5555_vm3, %v5556_v10 }
 0x357   : > { %5234 = vmatprep.subr.bf16.mxu1 %v5554_v9 }
 0x35a   : > { %5236 = vmatpush3.bf16.msra.mxu1 %v5722_v57 }
 0x35b   : > { %5246 = vmatprep.subr.bf16.mxu1 %v5554_v9 }
 0x428   : > { %v945_v11 = vpop.f32.mrb[4].mxu1 }
 0x429   : > { %v950_v12 = vrot.slane %v945_v11, 6  ;;  %v4944_v13 = vpop.f32.mrb[5].mxu1 }
 0x42b   : > { %v952_v15 = vadd.f32 %v950_v12, %v5688_v28 }
 0x42d   : > { %v4682_v16 = vmul.f32 -1.442695, %v952_v15 }
 0x42f   : > { %5423 = vpow2.f32 %v4682_v16 }
 0x430   : > { %5425 = vtanh.f32 %v952_v15 }
 0x439   : > { %v5424_v17 = vpop.eup %5423 }
 0x43a   : > { %v957_v18 = vadd.f32 1.0, %v5424_v17  ;;  %v5426_v19 = vpop.eup %5425 }
 0x43c   : > { %5427 = vrcp.f32 %v957_v18  ;;  %v5564_v18 = vmov 5  }
 0x446   : > { %v5428_v20 = vpop.eup %5427 }
 0x447   : > { %v960_v23 = vsel %vm5692_vm8, %v5426_v19, %v5428_v20 }
 0x448   : > { %962 = vrot.lane.b32.xlu1 %v960_v23, %s5557_s16  ;;  %v971_v24 = vmul.f32 %v969_v21, %v960_v23 }
 0x44a   : > { %973 = vrot.lane.b32.xlu0 %v971_v24, %s5558_s17 }
 0x4ba   : > { %v963_v25 = vpop.permute.xlu1 %962 }
 0x4bb   : > { %v965_v27 = vmul.f32 %v963_v25, %v960_v23 }
 0x4bc   : > { %v974_v29 = vpop.permute.xlu0 %973 }
 0x4bd   : > { %v976_v30 = vadd.f32 %v974_v29, %v965_v27 }
 0x4bf   : > { %v4683_v31 = vclamps-f32 %v976_v30, 3.0 }
 0x4c1   : > { %5429 = vtanh.f32 %v4683_v31  ;;  %v1078_v44 = vrot.slane %v4683_v31, 2 }
 0x4cb   : > { %v5430_v33 = vpop.eup %5429 }
 0x4cc   : > { %981 = vrot.lane.b32.xlu1 %v5430_v33, %s5558_s17 }
 0x4d0   : > { %552 = vrot.lane.b32.xlu1 %v5703_v42, %s5563_s28 }
 0x53e   : > { %v982_v35 = vpop.permute.xlu1 %981 }
 0x53f   : > { %v984_v36 = vmul.f32 %v982_v35, %v960_v23 }
 0x541   : > { %v986_v38 = vrot.slane %v984_v36, 2 }
 0x542   : > { %v553_v39 = vpop.permute.xlu1 %552 }
 0x543   : > { %v555_v40 = vsel %vm5652_vm4, %v5703_v42, %v553_v39  ;;  %987 = vrot.lane.b32.xlu0 %v986_v38, %s5561_s27 }
 0x544   : > { %v1069_v41 = vsub.f32 1.0, %v555_v40 }
 0x546   : > { %1072 = vperm.xlu1 %5401, %v1069_v41  }
 0x547   : > { %1065 = vperm.xlu0 %5400, %v555_v40  }
 0x54a   : > { %5402 = vset.pattern.permute.xlu1 %v5564_v18 }
 0x54b   : > { %5403 = vset.pattern.permute.xlu0 %v5564_v18 }
 0x5b5   : > { %v988_v43 = vpop.permute.xlu0 %987 }
 0x5b6   : > { %4954 = vmatmul.mubr.msk.f32.vlgmr.msra.gmra.mrb[6].mxu1 %vm785_vm9, %v988_v43 }
 0x5b7   : > { %5248 = vmatpush3.bf16.msra.mxu1 %v5663_v22  ;;  %4978 = vmatprep.mubr.msk.f32.mxu1 %vm5555_vm3, %v5556_v10 }
 0x5b8   : > { %5249 = vmatprep.subr.bf16.mxu1 %v5554_v9 }
 0x5c5   : > { %v5769_v45 = vpop.permute.xlu1 %1072 }
 0x5c6   : > { %v1081_v46 = vmul.f32 %v5769_v45, %v875_v2  ;;  %v5772_v47 = vpop.permute.xlu0 %1065  ;;  %v1075_v54 = vmul.f32 %v5769_v45, %v873_v8 }
 0x5c7   : > { %v1080_v48 = vmul.f32 %v1078_v44, %v5772_v47 }
 0x5c9   : > { %v1082_v49 = vadd.f32 %v1081_v46, %v1080_v48 }
 0x5cb   : > { %v1174_v50 = vrot.slane %v1082_v49, 4 }
 0x5cd   : > { %1175 = vrot.lane.b32.xlu1 %v1174_v50, %s5561_s27 }
 0x63f   : > { %v1176_v6 = vpop.permute.xlu1 %1175 }
 0x689   : > { %v1057_v51 = vpop.f32.mrb[6].mxu1 }
 0x68a   : > { %v4685_v52 = vclamps-f32 %v1057_v51, 3.0  ;;  %v4955_v53 = vpop.f32.mrb[7].mxu1 }
 0x68c   : > { %v5778_v56 = vmul.f32 %v4685_v52, %v5772_v47 }
 0x68e   : > { %v1076_v58 = vadd.f32 %v1075_v54, %v5778_v56 }
 0x690   : > { %4961 = vmatmul.mubr.msk.f32.vlgmr.msra.gmra.mrb[2].mxu0 %vm525_vm5, %v1076_v58 }
 0x691   : > { %5242 = vmatpush3.bf16.msra.mxu0 %v5718_v55  ;;  %4971 = vmatprep.mubr.msk.f32.mxu0 %vm5555_vm3, %v5556_v10 }
 0x692   : > { %5243 = vmatprep.subr.bf16.mxu0 %v5554_v9 }
 0x695   : > { %5245 = vmatpush3.bf16.msra.mxu0 %v5722_v57 }
 0x696   : > { %5255 = vmatprep.subr.bf16.mxu0 %v5554_v9 }
 0x763   : > { %v1152_v59 = vpop.f32.mrb[2].mxu0 }
 0x764   : > { %v1157_v60 = vrot.slane %v1152_v59, 4  ;;  %v4962_v61 = vpop.f32.mrb[3].mxu0 }
 0x766   : > { %v1159_v62 = vadd.f32 %v1157_v60, %v5688_v28 }
 0x768   : > { %v4687_v1 = vmul.f32 -1.442695, %v1159_v62 }
 0x76a   : > { %5431 = vpow2.f32 %v4687_v1 }
 0x76b   : > { %5433 = vtanh.f32 %v1159_v62 }
 0x774   : > { %v5432_v2 = vpop.eup %5431 }
 0x775   : > { %v1164_v3 = vadd.f32 1.0, %v5432_v2  ;;  %v5434_v4 = vpop.eup %5433 }
 0x777   : > { %5435 = vrcp.f32 %v1164_v3 }
 0x781   : > { %v5436_v5 = vpop.eup %5435 }
 0x782   : > { %v1167_v8 = vsel %vm5692_vm8, %v5434_v4, %v5436_v5  ;;  %v5566_v5 = vmov 4  }
 0x783   : > { %1169 = vrot.lane.b32.xlu0 %v1167_v8, %s5557_s16  ;;  %v1178_v11 = vmul.f32 %v1176_v6, %v1167_v8 }
 0x785   : > { %1180 = vrot.lane.b32.xlu1 %v1178_v11, %s5558_s17 }
 0x7f5   : > { %v1170_v12 = vpop.permute.xlu0 %1169 }
 0x7f6   : > { %v1172_v13 = vmul.f32 %v1170_v12, %v1167_v8 }
 0x7f7   : > { %v1181_v15 = vpop.permute.xlu1 %1180 }
 0x7f8   : > { %v1183_v16 = vadd.f32 %v1181_v15, %v1172_v13 }
 0x7fa   : > { %v4688_v17 = vclamps-f32 %v1183_v16, 3.0 }
 0x7fc   : > { %5437 = vtanh.f32 %v4688_v17  ;;  %v1285_v30 = vrot.slane %v4688_v17, 4 }
 0x806   : > { %v5438_v19 = vpop.eup %5437 }
 0x807   : > { %1188 = vrot.lane.b32.xlu0 %v5438_v19, %s5558_s17 }
 0x80b   : > { %556 = vrot.lane.b32.xlu0 %v5703_v42, %s5565_s29 }
 0x879   : > { %v1189_v20 = vpop.permute.xlu0 %1188 }
 0x87a   : > { %v1191_v21 = vmul.f32 %v1189_v20, %v1167_v8 }
 0x87c   : > { %v1193_v23 = vrot.slane %v1191_v21, 4 }
 0x87d   : > { %v557_v24 = vpop.permute.xlu0 %556 }
 0x87e   : > { %v559_v25 = vsel %vm5652_vm4, %v5703_v42, %v557_v24  ;;  %1194 = vrot.lane.b32.xlu1 %v1193_v23, %s5561_s27 }
 0x87f   : > { %v1276_v27 = vsub.f32 1.0, %v559_v25 }
 0x881   : > { %1279 = vperm.xlu0 %5403, %v1276_v27  }
 0x882   : > { %1272 = vperm.xlu1 %5402, %v559_v25  }
 0x885   : > { %5404 = vset.pattern.permute.xlu0 %v5566_v5 }
 0x886   : > { %5405 = vset.pattern.permute.xlu1 %v5566_v5 }
 0x8f0   : > { %v1195_v29 = vpop.permute.xlu1 %1194 }
 0x8f1   : > { %4972 = vmatmul.mubr.msk.f32.vlgmr.msra.gmra.mrb[4].mxu0 %vm785_vm9, %v1195_v29 }
 0x8f2   : > { %5257 = vmatpush3.bf16.msra.mxu0 %v5663_v22  ;;  %4996 = vmatprep.mubr.msk.f32.mxu0 %vm5555_vm3, %v5556_v10 }
 0x8f3   : > { %5258 = vmatprep.subr.bf16.mxu0 %v5554_v9 }
 0x900   : > { %v5804_v31 = vpop.permute.xlu0 %1279 }
 0x901   : > { %v1288_v32 = vmul.f32 %v5804_v31, %v1082_v49  ;;  %v5807_v33 = vpop.permute.xlu1 %1272  ;;  %v1282_v43 = vmul.f32 %v5804_v31, %v1076_v58 }
 0x902   : > { %v1287_v35 = vmul.f32 %v1285_v30, %v5807_v33 }
 0x904   : > { %v1289_v36 = vadd.f32 %v1288_v32, %v1287_v35 }
 0x906   : > { %v1381_v38 = vrot.slane %v1289_v36, 2 }
 0x908   : > { %1382 = vrot.lane.b32.xlu1 %v1381_v38, %s5561_s27 }
 0x97a   : > { %v1383_v60 = vpop.permute.xlu1 %1382 }
 0x9c4   : > { %v1264_v39 = vpop.f32.mrb[4].mxu0 }
 0x9c5   : > { %v4690_v40 = vclamps-f32 %v1264_v39, 3.0  ;;  %v4973_v41 = vpop.f32.mrb[5].mxu0 }
 0x9c7   : > { %v5813_v44 = vmul.f32 %v4690_v40, %v5807_v33 }
 0x9c9   : > { %v1283_v46 = vadd.f32 %v1282_v43, %v5813_v44 }
 0x9cb   : > { %4979 = vmatmul.mubr.msk.f32.vlgmr.msra.gmra.mrb[8].mxu1 %vm525_vm5, %v1283_v46 }
 0x9cc   : > { %5251 = vmatpush3.bf16.msra.mxu1 %v5718_v55  ;;  %4989 = vmatprep.mubr.msk.f32.mxu1 %vm5555_vm3, %v5556_v10 }
 0x9cd   : > { %5252 = vmatprep.subr.bf16.mxu1 %v5554_v9 }
 0x9d0   : > { %5254 = vmatpush3.bf16.msra.mxu1 %v5722_v57 }
 0x9d1   : > { %5264 = vmatprep.subr.bf16.mxu1 %v5554_v9 }
 0xa9e   : > { %v1359_v48 = vpop.f32.mrb[8].mxu1 }
 0xa9f   : > { %v1364_v49 = vrot.slane %v1359_v48, 2  ;;  %v4980_v50 = vpop.f32.mrb[9].mxu1 }
 0xaa1   : > { %v1366_v51 = vadd.f32 %v1364_v49, %v5688_v28 }
 0xaa3   : > { %v4692_v52 = vmul.f32 -1.442695, %v1366_v51 }
 0xaa5   : > { %5439 = vpow2.f32 %v4692_v52 }
 0xaa6   : > { %5441 = vtanh.f32 %v1366_v51 }
 0xaaf   : > { %v5440_v53 = vpop.eup %5439 }
 0xab0   : > { %v1371_v54 = vadd.f32 1.0, %v5440_v53  ;;  %v5442_v58 = vpop.eup %5441 }
 0xab2   : > { %5443 = vrcp.f32 %v1371_v54 }
 0xabc   : > { %v5444_v59 = vpop.eup %5443 }
 0xabd   : > { %v1374_v61 = vsel %vm5692_vm8, %v5442_v58, %v5444_v59 }
 0xabe   : > { %1376 = vrot.lane.b32.xlu1 %v1374_v61, %s5557_s16  ;;  %v1385_v62 = vmul.f32 %v1383_v60, %v1374_v61  ;;  %v5568_v60 = vmov 3  }
 0xac0   : > { %1387 = vrot.lane.b32.xlu0 %v1385_v62, %s5558_s17 }
 0xb30   : > { %v1377_v1 = vpop.permute.xlu1 %1376 }
 0xb31   : > { %v1379_v2 = vmul.f32 %v1377_v1, %v1374_v61 }
 0xb32   : > { %v1388_v28 = vpop.permute.xlu0 %1387 }
 0xb33   : > { %v1390_v3 = vadd.f32 %v1388_v28, %v1379_v2 }
 0xb35   : > { %v4693_v4 = vclamps-f32 %v1390_v3, 3.0 }
 0xb37   : > { %5445 = vtanh.f32 %v4693_v4  ;;  %v1492_v18 = vrot.slane %v4693_v4, 6 }
 0xb41   : > { %v5446_v6 = vpop.eup %5445 }
 0xb42   : > { %1395 = vrot.lane.b32.xlu1 %v5446_v6, %s5558_s17 }
 0xb46   : > { %560 = vrot.lane.b32.xlu1 %v5703_v42, %s5567_s30 }
 0xbb4   : > { %v1396_v8 = vpop.permute.xlu1 %1395 }
 0xbb5   : > { %v1398_v11 = vmul.f32 %v1396_v8, %v1374_v61 }
 0xbb7   : > { %v1400_v12 = vrot.slane %v1398_v11, 6 }
 0xbb8   : > { %v561_v13 = vpop.permute.xlu1 %560 }
 0xbb9   : > { %v563_v15 = vsel %vm5652_vm4, %v5703_v42, %v561_v13  ;;  %1401 = vrot.lane.b32.xlu0 %v1400_v12, %s5561_s27 }
 0xbba   : > { %v1483_v16 = vsub.f32 1.0, %v563_v15 }
 0xbbc   : > { %1486 = vperm.xlu1 %5405, %v1483_v16  }
 0xbbd   : > { %1479 = vperm.xlu0 %5404, %v563_v15  }
 0xbc0   : > { %5406 = vset.pattern.permute.xlu1 %v5568_v60 }
 0xbc1   : > { %5407 = vset.pattern.permute.xlu0 %v5568_v60 }
 0xc2b   : > { %v1402_v17 = vpop.permute.xlu0 %1401 }
 0xc2c   : > { %4990 = vmatmul.mubr.msk.f32.vlgmr.msra.gmra.mrb[10].mxu1 %vm785_vm9, %v1402_v17 }
 0xc2d   : > { %5266 = vmatpush3.bf16.msra.mxu1 %v5663_v22  ;;  %5014 = vmatprep.mubr.msk.f32.mxu1 %vm5555_vm3, %v5556_v10 }
 0xc2e   : > { %5267 = vmatprep.subr.bf16.mxu1 %v5554_v9 }
 0xc3b   : > { %v5839_v19 = vpop.permute.xlu1 %1486 }
 0xc3c   : > { %v1495_v20 = vmul.f32 %v5839_v19, %v1289_v36  ;;  %v5842_v21 = vpop.permute.xlu0 %1479  ;;  %v1489_v30 = vmul.f32 %v5839_v19, %v1283_v46 }
 0xc3d   : > { %v1494_v23 = vmul.f32 %v1492_v18, %v5842_v21 }
 0xc3f   : > { %v1496_v24 = vadd.f32 %v1495_v20, %v1494_v23 }
 0xc41   : > { %1585 = vrot.lane.b32.xlu1 %v1496_v24, %s5561_s27 }
 0xcb3   : > { %v1586_v49 = vpop.permute.xlu1 %1585 }
 0xcff   : > { %v1471_v25 = vpop.f32.mrb[10].mxu1 }
 0xd00   : > { %v4695_v27 = vclamps-f32 %v1471_v25, 3.0  ;;  %v4991_v29 = vpop.f32.mrb[11].mxu1 }
 0xd02   : > { %v5848_v32 = vmul.f32 %v4695_v27, %v5842_v21 }
 0xd04   : > { %v1490_v35 = vadd.f32 %v1489_v30, %v5848_v32 }
 0xd06   : > { %4997 = vmatmul.mubr.msk.f32.vlgmr.msra.gmra.mrb[6].mxu0 %vm525_vm5, %v1490_v35 }
 0xd07   : > { %5260 = vmatpush3.bf16.msra.mxu0 %v5718_v55  ;;  %5007 = vmatprep.mubr.msk.f32.mxu0 %vm5555_vm3, %v5556_v10 }
 0xd08   : > { %5261 = vmatprep.subr.bf16.mxu0 %v5554_v9 }
 0xd0b   : > { %5263 = vmatpush3.bf16.msra.mxu0 %v5722_v57 }
 0xd0c   : > { %5273 = vmatprep.subr.bf16.mxu0 %v5554_v9 }
 0xdd9   : > { %v1566_v36 = vpop.f32.mrb[6].mxu0 }
 0xdda   : > { %v1570_v38 = vadd.f32 %v1566_v36, %v5686_v26  ;;  %v4998_v39 = vpop.f32.mrb[7].mxu0 }
 0xddc   : > { %v4697_v40 = vmul.f32 -1.442695, %v1570_v38 }
 0xdde   : > { %5447 = vpow2.f32 %v4697_v40 }
 0xddf   : > { %5449 = vtanh.f32 %v1570_v38 }
 0xde8   : > { %v5448_v41 = vpop.eup %5447 }
 0xde9   : > { %v1575_v43 = vadd.f32 1.0, %v5448_v41  ;;  %v5450_v46 = vpop.eup %5449 }
 0xdeb   : > { %5451 = vrcp.f32 %v1575_v43 }
 0xdf5   : > { %v5452_v48 = vpop.eup %5451 }
 0xdf6   : > { %v1578_v50 = vsel %vm5692_vm8, %v5450_v46, %v5452_v48 }
 0xdf7   : > { %1580 = vrot.lane.b32.xlu0 %v1578_v50, %s5557_s16  ;;  %v1588_v51 = vmul.f32 %v1586_v49, %v1578_v50 }
 0xdf9   : > { %1590 = vrot.lane.b32.xlu1 %v1588_v51, %s5558_s17 }
 0xe69   : > { %v1581_v52 = vpop.permute.xlu0 %1580 }
 0xe6a   : > { %v1583_v53 = vmul.f32 %v1581_v52, %v1578_v50  ;;  %v5570_v52 = vmov 2  }
 0xe6b   : > { %v1591_v54 = vpop.permute.xlu1 %1590 }
 0xe6c   : > { %v1593_v58 = vadd.f32 %v1591_v54, %v1583_v53 }
 0xe6e   : > { %v4698_v59 = vclamps-f32 %v1593_v58, 3.0 }
 0xe70   : > { %5453 = vtanh.f32 %v4698_v59 }
 0xe7a   : > { %v5454_v61 = vpop.eup %5453 }
 0xe7b   : > { %1598 = vrot.lane.b32.xlu0 %v5454_v61, %s5558_s17 }
 0xe7f   : > { %564 = vrot.lane.b32.xlu0 %v5703_v42, %s5569_s7 }
 0xeed   : > { %v1599_v62 = vpop.permute.xlu0 %1598 }
 0xeee   : > { %v1601_v1 = vmul.f32 %v1599_v62, %v1578_v50 }
 0xef0   : > { %1603 = vrot.lane.b32.xlu1 %v1601_v1, %s5561_s27 }
 0xef1   : > { %v565_v2 = vpop.permute.xlu0 %564 }
 0xef2   : > { %v567_v28 = vsel %vm5652_vm4, %v5703_v42, %v565_v2 }
 0xef3   : > { %v1685_v3 = vsub.f32 1.0, %v567_v28 }
 0xef4   : > { %1681 = vperm.xlu1 %5406, %v567_v28  }
 0xef5   : > { %1688 = vperm.xlu0 %5407, %v1685_v3  }
 0xef8   : > { %5409 = vset.pattern.permute.xlu1 %v5570_v52 }
 0xef9   : > { %5408 = vset.pattern.permute.xlu0 %v5570_v52 }
 0xf62   : > { %v1604_v4 = vpop.permute.xlu1 %1603 }
 0xf63   : > { %5008 = vmatmul.mubr.msk.f32.vlgmr.msra.gmra.mrb[8].mxu0 %vm785_vm9, %v1604_v4 }
 0xf64   : > { %5275 = vmatpush3.bf16.msra.mxu0 %v5663_v22  ;;  %5032 = vmatprep.mubr.msk.f32.mxu0 %vm5555_vm3, %v5556_v10 }
 0xf65   : > { %5276 = vmatprep.subr.bf16.mxu0 %v5554_v9 }
 0xf73   : > { %v5874_v5 = vpop.permute.xlu1 %1681 }
 0xf74   : > { %v1693_v6 = vmul.f32 %v4698_v59, %v5874_v5  ;;  %v5877_v8 = vpop.permute.xlu0 %1688 }
 0xf75   : > { %v1694_v11 = vmul.f32 %v5877_v8, %v1496_v24  ;;  %v1691_v18 = vmul.f32 %v5877_v8, %v1490_v35 }
 0xf77   : > { %v1695_v12 = vadd.f32 %v1694_v11, %v1693_v6 }
 0xf79   : > { %v1787_v13 = vrot.slane %v1695_v12, 6 }
 0xf7b   : > { %1788 = vrot.lane.b32.xlu1 %v1787_v13, %s5561_s27 }
 0xfed   : > { %v1789_v40 = vpop.permute.xlu1 %1788 }
0x1036   : > { %v1673_v15 = vpop.f32.mrb[8].mxu0 }
0x1037   : > { %v4700_v16 = vclamps-f32 %v1673_v15, 3.0  ;;  %v5009_v17 = vpop.f32.mrb[9].mxu0 }
0x1039   : > { %v5883_v20 = vmul.f32 %v4700_v16, %v5874_v5 }
0x103b   : > { %v1692_v23 = vadd.f32 %v1691_v18, %v5883_v20 }
0x103d   : > { %5015 = vmatmul.mubr.msk.f32.vlgmr.msra.gmra.mrb[12].mxu1 %vm525_vm5, %v1692_v23 }
0x103e   : > { %5269 = vmatpush3.bf16.msra.mxu1 %v5718_v55  ;;  %5025 = vmatprep.mubr.msk.f32.mxu1 %vm5555_vm3, %v5556_v10 }
0x103f   : > { %5270 = vmatprep.subr.bf16.mxu1 %v5554_v9 }
0x1042   : > { %5272 = vmatpush3.bf16.msra.mxu1 %v5722_v57 }
0x1043   : > { %5282 = vmatprep.subr.bf16.mxu1 %v5554_v9 }
0x1110   : > { %v1765_v24 = vpop.f32.mrb[12].mxu1 }
0x1111   : > { %v1770_v25 = vrot.slane %v1765_v24, 6  ;;  %v5016_v27 = vpop.f32.mrb[13].mxu1 }
0x1113   : > { %v1772_v29 = vadd.f32 %v1770_v25, %v5686_v26 }
0x1115   : > { %v4702_v30 = vmul.f32 -1.442695, %v1772_v29 }
0x1117   : > { %5455 = vpow2.f32 %v4702_v30 }
0x1118   : > { %5457 = vtanh.f32 %v1772_v29 }
0x1121   : > { %v5456_v35 = vpop.eup %5455 }
0x1122   : > { %v1777_v36 = vadd.f32 1.0, %v5456_v35  ;;  %v5458_v38 = vpop.eup %5457 }
0x1124   : > { %5459 = vrcp.f32 %v1777_v36 }
0x112e   : > { %v5460_v39 = vpop.eup %5459 }
0x112f   : > { %v1780_v41 = vsel %vm5692_vm8, %v5458_v38, %v5460_v39 }
0x1130   : > { %1782 = vrot.lane.b32.xlu1 %v1780_v41, %s5557_s16  ;;  %v1791_v43 = vmul.f32 %v1789_v40, %v1780_v41 }
0x1132   : > { %1793 = vrot.lane.b32.xlu0 %v1791_v43, %s5558_s17 }
0x11a2   : > { %v1783_v46 = vpop.permute.xlu1 %1782 }
0x11a3   : > { %v1785_v48 = vmul.f32 %v1783_v46, %v1780_v41 }
0x11a4   : > { %v1794_v49 = vpop.permute.xlu0 %1793 }
0x11a5   : > { %v1796_v50 = vadd.f32 %v1794_v49, %v1785_v48 }
0x11a7   : > { %v4703_v51 = vclamps-f32 %v1796_v50, 3.0 }
0x11a9   : > { %5461 = vtanh.f32 %v4703_v51  ;;  %v1898_v2 = vrot.slane %v4703_v51, 2  ;;  %v5572_v51 = vmov 1  }
0x11b3   : > { %v5462_v53 = vpop.eup %5461 }
0x11b4   : > { %1801 = vrot.lane.b32.xlu1 %v5462_v53, %s5558_s17 }
0x11b8   : > { %568 = vrot.lane.b32.xlu1 %v5703_v42, %s5571_s9 }
0x1226   : > { %v1802_v54 = vpop.permute.xlu1 %1801 }
0x1227   : > { %v1804_v58 = vmul.f32 %v1802_v54, %v1780_v41 }
0x1229   : > { %v1806_v59 = vrot.slane %v1804_v58, 2 }
0x122a   : > { %v569_v60 = vpop.permute.xlu1 %568 }
0x122b   : > { %v571_v61 = vsel %vm5652_vm4, %v5703_v42, %v569_v60  ;;  %1807 = vrot.lane.b32.xlu0 %v1806_v59, %s5561_s27 }
0x122c   : > { %v1889_v62 = vsub.f32 1.0, %v571_v61 }
0x122e   : > { %1892 = vperm.xlu1 %5409, %v1889_v62   ;;  %v2604_v62 = vrot.slane %v5778_v56, 6 }
0x122f   : > { %1885 = vperm.xlu0 %5408, %v571_v61  }
0x1232   : > { %5410 = vset.pattern.permute.xlu1 %v5572_v51 }
0x1233   : > { %5411 = vset.pattern.permute.xlu0 %v5572_v51 }
0x129d   : > { %v1808_v1 = vpop.permute.xlu0 %1807 }
0x129e   : > { %5026 = vmatmul.mubr.msk.f32.vlgmr.msra.gmra.mrb[14].mxu1 %vm785_vm9, %v1808_v1  ;;  %v2606_v1 = vrot.slane %v5813_v44, 4 }
0x129f   : > { %5284 = vmatpush3.bf16.msra.mxu1 %v5663_v22  ;;  %5050 = vmatprep.mubr.msk.f32.mxu1 %vm5555_vm3, %v5556_v10 }
0x12a0   : > { %5285 = vmatprep.subr.bf16.mxu1 %v5554_v9 }
0x12ad   : > { %v5909_v28 = vpop.permute.xlu1 %1892 }
0x12ae   : > { %v1901_v3 = vmul.f32 %v5909_v28, %v1695_v12  ;;  %v5912_v4 = vpop.permute.xlu0 %1885  ;;  %v1895_v17 = vmul.f32 %v5909_v28, %v1692_v23 }
0x12af   : > { %v1900_v6 = vmul.f32 %v1898_v2, %v5912_v4  ;;  %v2608_v2 = vrot.slane %v5848_v32, 2 }
0x12b1   : > { %v5915_v11 = vadd.f32 %v1901_v3, %v1900_v6  ;;  %v2616_v3 = vsel %vm491_vm0, %v5742_v7, %v2604_v62 }
0x12b3   : > { %v1994_v13 = vrot.slane %v5915_v11, 4 }
0x12b5   : > { %1995 = vrot.lane.b32.xlu1 %v1994_v13, %s5561_s27  ;;  %v2617_v13 = vsel %vm497_vm1, %v2616_v3, %v2606_v1 }
0x1327   : > { %v1996_v39 = vpop.permute.xlu1 %1995 }
0x1371   : > { %v1877_v22 = vpop.f32.mrb[14].mxu1 }
0x1372   : > { %v4705_v15 = vclamps-f32 %v1877_v22, 3.0  ;;  %v5027_v16 = vpop.f32.mrb[15].mxu1  ;;  %v2618_v22 = vsel %vm503_vm2, %v2617_v13, %v2608_v2  ;;  %v4718_v13 = vld [vmem:[%s5637_s8 + $0x10] sm:$0xff] }
0x1374   : > { %v5921_v18 = vmul.f32 %v4705_v15, %v5912_v4 }
0x1376   : > { %v5924_v12 = vadd.f32 %v1895_v17, %v5921_v18 }
0x1378   : > { %5033 = vmatmul.mubr.msk.f32.vlgmr.msra.gmra.mrb[10].mxu0 %vm525_vm5, %v5924_v12 }
0x1379   : > { %5278 = vmatpush3.bf16.msra.mxu0 %v5718_v55  ;;  %5043 = vmatprep.mubr.msk.f32.mxu0 %vm5555_vm3, %v5556_v10 }
0x137a   : > { %5279 = vmatprep.subr.bf16.mxu0 %v5554_v9 }
0x137d   : > { %5281 = vmatpush3.bf16.msra.mxu0 %v5722_v57 }
0x144b   : > { %v1972_v24 = vpop.f32.mrb[10].mxu0 }
0x144c   : > { %v1977_v23 = vrot.slane %v1972_v24, 4  ;;  %v5034_v25 = vpop.f32.mrb[11].mxu0 }
0x144e   : > { %v1979_v27 = vadd.f32 %v1977_v23, %v5686_v26 }
0x1450   : > { %v4707_v29 = vmul.f32 -1.442695, %v1979_v27 }
0x1452   : > { %5463 = vpow2.f32 %v4707_v29 }
0x1453   : > { %5465 = vtanh.f32 %v1979_v27 }
0x145c   : > { %v5464_v30 = vpop.eup %5463 }
0x145d   : > { %v1984_v35 = vadd.f32 1.0, %v5464_v30  ;;  %v5466_v36 = vpop.eup %5465 }
0x145f   : > { %5467 = vrcp.f32 %v1984_v35 }
0x1469   : > { %v5468_v38 = vpop.eup %5467 }
0x146a   : > { %v1987_v40 = vsel %vm5692_vm8, %v5466_v36, %v5468_v38 }
0x146b   : > { %1989 = vrot.lane.b32.xlu0 %v1987_v40, %s5557_s16  ;;  %v1998_v41 = vmul.f32 %v1996_v39, %v1987_v40 }
0x146d   : > { %2000 = vrot.lane.b32.xlu1 %v1998_v41, %s5558_s17 }
0x14dd   : > { %v1990_v43 = vpop.permute.xlu0 %1989 }
0x14de   : > { %v1992_v46 = vmul.f32 %v1990_v43, %v1987_v40 }
0x14df   : > { %v2001_v48 = vpop.permute.xlu1 %2000 }
0x14e0   : > { %v2003_v49 = vadd.f32 %v2001_v48, %v1992_v46 }
0x14e2   : > { %v4708_v50 = vclamps-f32 %v2003_v49, 3.0 }
0x14e4   : > { %5469 = vtanh.f32 %v4708_v50  ;;  %v2105_v15 = vrot.slane %v4708_v50, 4 }
0x14ee   : > { %v5470_v52 = vpop.eup %5469 }
0x14ef   : > { %2008 = vrot.lane.b32.xlu0 %v5470_v52, %s5558_s17 }
0x14f3   : > { %572 = vrot.lane.b32.xlu0 %v5703_v42, %s5573_s10 }
0x1561   : > { %v2009_v53 = vpop.permute.xlu0 %2008 }
0x1562   : > { %v2011_v54 = vmul.f32 %v2009_v53, %v1987_v40 }
0x1564   : > { %v2013_v58 = vrot.slane %v2011_v54, 4 }
0x1565   : > { %v573_v59 = vpop.permute.xlu0 %572 }
0x1566   : > { %v575_v60 = vsel %vm5652_vm4, %v5703_v42, %v573_v59  ;;  %2014 = vrot.lane.b32.xlu1 %v2013_v58, %s5561_s27 }
0x1567   : > { %v2096_v61 = vsub.f32 1.0, %v575_v60 }
0x1569   : > { %2099 = vperm.xlu0 %5411, %v2096_v61  }
0x156a   : > { %2092 = vperm.xlu1 %5410, %v575_v60   ;;  %v5575_v60 = vmov 0  }
0x156d   : > { %5412 = vset.pattern.permute.xlu0 %v5575_v60 }
0x15d8   : > { %v2015_v6 = vpop.permute.xlu1 %2014 }
0x15d9   : > { %5044 = vmatmul.mubr.msk.f32.vlgmr.msra.gmra.mrb[12].mxu0 %vm785_vm9, %v2015_v6 }
0x15da   : > { %5068 = vmatprep.mubr.msk.f32.mxu0 %vm525_vm5, %v2618_v22  ;;  %v4719_v22 = vld [vmem:[%s5637_s8 + $0x18] sm:$0xff]  ;;  %s305_s8 = smul.u32 3, %s5618_s22 }
0x15dc   : > { %p6062_p5 = scmp.lt.s32.totalorder %s305_s8, 5 }
0x15de   : > { %s6565_s8 = smov (!%p6062_p5, %s305_s8), 5 }
0x15df   : > { %s4776_s22 = sshll.u32 %s6565_s8, 4 }
0x15e0   : > { %s6130_s18 = scalar_lea.vmem %s6558_s6, %s4776_s22 }
0x15e8   : > { %v5953_v16 = vpop.permute.xlu0 %2099 }
0x15e9   : > { %v2108_v17 = vmul.f32 %v5953_v16, %v5915_v11  ;;  %v5957_v24 = vpop.permute.xlu1 %2092  ;;  %v2102_v36 = vmul.f32 %v5953_v16, %v5924_v12 }
0x15ea   : > { %v2107_v23 = vmul.f32 %v2105_v15, %v5957_v24  ;;  %v5291_v15 = vpack.c.bf16 %v4719_v22, %v4718_v13  ;;  %v2610_v13 = vrot.slane %v5921_v18, 6 }
0x15ec   : > { %v2109_v25 = vadd.f32 %v2108_v17, %v2107_v23  ;;  %5292 = vmatprep.subr.bf16.mxu0 %v5291_v15  ;;  %v5576_v17 = vmov 1966171168  }
0x15ed   : > { %5294 = vmatpush3.bf16.msra.mxu0 %v5291_v15  ;;  %v318_v23 = vunpack.c.l.s4 %v5576_v17 }
0x15ee   : > { %v2201_v27 = vrot.slane %v2109_v25, 2  ;;  %5295 = vmatprep.subr.bf16.mxu0 %v5554_v9 }
0x15ef   : > { %v319_v25 = vunpack.c.0.s8 %v318_v23 }
0x15f0   : > { %2202 = vrot.lane.b32.xlu1 %v2201_v27, %s5561_s27 }
0x1662   : > { %v2203_v50 = vpop.permute.xlu1 %2202 }
0x16ac   : > { %v2084_v29 = vpop.f32.mrb[12].mxu0 }
0x16ad   : > { %v4710_v30 = vclamps-f32 %v2084_v29, 3.0  ;;  %v5045_v35 = vpop.f32.mrb[13].mxu0 }
0x16af   : > { %v5964_v38 = vmul.f32 %v4710_v30, %v5957_v24 }
0x16b1   : > { %v2103_v39 = vadd.f32 %v2102_v36, %v5964_v38 }
0x16b3   : > { %5051 = vmatmul.mubr.msk.f32.vlgmr.msra.gmra.mrb[16].mxu1 %vm525_vm5, %v2103_v39 }
0x16b4   : > { %5287 = vmatpush3.bf16.msra.mxu1 %v5718_v55  ;;  %5061 = vmatprep.mubr.msk.f32.mxu1 %vm5555_vm3, %v5556_v10 }
0x16b5   : > { %5288 = vmatprep.subr.bf16.mxu1 %v5554_v9 }
0x16b8   : > { %5290 = vmatpush3.bf16.msra.mxu1 %v5722_v57 }
0x16b9   : > { %5298 = vmatprep.subr.bf16.mxu1 %v5554_v9 }
0x1786   : > { %v2179_v11 = vpop.f32.mrb[16].mxu1 }
0x1787   : > { %v2184_v12 = vrot.slane %v2179_v11, 2  ;;  %v5052_v40 = vpop.f32.mrb[17].mxu1 }
0x1789   : > { %v2186_v41 = vadd.f32 %v2184_v12, %v5686_v26 }
0x178b   : > { %v4712_v43 = vmul.f32 -1.442695, %v2186_v41 }
0x178d   : > { %5471 = vpow2.f32 %v4712_v43 }
0x178e   : > { %5473 = vtanh.f32 %v2186_v41 }
0x1797   : > { %v5472_v46 = vpop.eup %5471 }
0x1798   : > { %v2191_v48 = vadd.f32 1.0, %v5472_v46  ;;  %v5474_v55 = vpop.eup %5473  ;;  %v4720_v46 = vld [vmem:[%s5642_s11 + $0x10] sm:$0xff] }
0x179a   : > { %5475 = vrcp.f32 %v2191_v48  ;;  %v4721_v48 = vld [vmem:[%s5642_s11 + $0x18] sm:$0xff] }
0x17a4   : > { %v5476_v49 = vpop.eup %5475 }
0x17a5   : > { %v2194_v51 = vsel %vm5692_vm8, %v5474_v55, %v5476_v49 }
0x17a6   : > { %2196 = vrot.lane.b32.xlu1 %v2194_v51, %s5557_s16  ;;  %v2205_v57 = vmul.f32 %v2203_v50, %v2194_v51 }
0x17a8   : > { %2207 = vrot.lane.b32.xlu0 %v2205_v57, %s5558_s17 }
0x1818   : > { %v2197_v52 = vpop.permute.xlu1 %2196 }
0x1819   : > { %v2199_v53 = vmul.f32 %v2197_v52, %v2194_v51 }
0x181a   : > { %v2208_v26 = vpop.permute.xlu0 %2207 }
0x181b   : > { %v2210_v54 = vadd.f32 %v2208_v26, %v2199_v53  ;;  %v6028_v26 = vpack.c.bf16 %v4721_v48, %v4720_v46 }
0x181d   : > { %v4713_v58 = vclamps-f32 %v2210_v54, 3.0 }
0x181f   : > { %5477 = vtanh.f32 %v4713_v58 }
0x1829   : > { %v5478_v59 = vpop.eup %5477 }
0x182a   : > { %2215 = vrot.lane.b32.xlu1 %v5478_v59, %s5558_s17 }
0x182e   : > { %576 = vrot.lane.b32.xlu1 %v5703_v42, %s5574_s12 }
0x189c   : > { %v2216_v61 = vpop.permute.xlu1 %2215 }
0x189d   : > { %v2218_v62 = vmul.f32 %v2216_v61, %v2194_v51 }
0x189f   : > { %v2220_v1 = vrot.slane %v2218_v62, 6 }
0x18a0   : > { %v577_v2 = vpop.permute.xlu1 %576 }
0x18a1   : > { %2221 = vrot.lane.b32.xlu0 %v2220_v1, %s5561_s27  ;;  %v579_v3 = vsel %vm5652_vm4, %v5703_v42, %v577_v2  ;;  %v5992_v42 = vshrl.u32 %v320_v34, 7 }
0x18a3   : > { %v5995_v27 = vsub.s32 %v319_v25, %v5992_v42  ;;  %v6008_v12 = vsub.s32 0, %v5992_v42 }
0x18a5   : > { %2299 = vperm.xlu0 %5412, %v579_v3   ;;  %v2335_v29 = vrot.slane %v5778_v56, %v5995_v27  ;;  %v2310_v35 = vrot.slane %v5742_v7, %v5995_v27  ;;  %v2358_v36 = vrot.slane %v5813_v44, %v5995_v27  ;;  %v2381_v11 = vrot.slane %v5848_v32, %v5995_v27 }
0x18a6   : > { %v2450_v57 = vrot.slane %v5964_v38, %v5995_v27  ;;  %v2404_v52 = vrot.slane %v5883_v20, %v5995_v27  ;;  %v2427_v53 = vrot.slane %v5921_v18, %v5995_v27 }
0x18a7   : > { %v2336_v30 = vcombine.high %v2335_v29, %v2335_v29  ;;  %v2343_v39 = vrot.slane %v2335_v29, %v5995_v27  ;;  %v2311_v40 = vcombine.high %v2310_v35, %v2310_v35  ;;  %v2359_v41 = vcombine.high %v2358_v36, %v2358_v36 }
0x18a8   : > { %v2366_v43 = vrot.slane %v2358_v36, %v5995_v27  ;;  %v6014_v55 = vrot.slane %v2310_v35, %v5995_v27  ;;  %v2382_v50 = vcombine.high %v2381_v11, %v2381_v11  ;;  %v2389_v62 = vrot.slane %v2381_v11, %v5995_v27 }
0x18a9   : > { %v2350_v34 = vrot.slane %v2336_v30, %v5995_v27  ;;  %v6017_v49 = vrot.slane %v2343_v39, %v6008_v12  ;;  %v6031_v54 = vrot.slane %v2311_v40, %v5995_v27  ;;  %v2373_v58 = vrot.slane %v2359_v41, %v5995_v27 }
0x18aa   : > { %v6035_v59 = vrot.slane %v2366_v43, %v6008_v12  ;;  %v2578_v60 = vrot.slane %v6014_v55, %v6008_v12  ;;  %v2396_v1 = vrot.slane %v2382_v50, %v5995_v27  ;;  %v2451_v22 = vcombine.high %v2450_v57, %v2450_v57 }
0x18ab   : > { %v6020_v51 = vrot.slane %v2350_v34, %v6008_v12  ;;  %v2561_v61 = vsel %vm488_vm10, %v6014_v55, %v6017_v49  ;;  %v2405_v23 = vcombine.high %v2404_v52, %v2404_v52  ;;  %v2412_v25 = vrot.slane %v2404_v52, %v5995_v27  ;;  %v4727_v55 = vld [vmem:[%s5683_s15 + $0x1] ss:$0 sm:$0xff] }
0x18ac   : > { %v2428_v29 = vcombine.high %v2427_v53, %v2427_v53  ;;  %v2612_v30 = vrot.slane %v5964_v38, 4  ;;  %v2508_v35 = vrot.slane %v2373_v58, %v6008_v12  ;;  %v2563_v36 = vsel %vm491_vm0, %v2561_v61, %v6035_v59 }
0x18ad   : > { %v2458_v39 = vrot.slane %v2450_v57, %v5995_v27  ;;  %v2514_v34 = vrot.slane %v2389_v62, %v6008_v12  ;;  %v2518_v40 = vrot.slane %v2396_v1, %v6008_v12  ;;  %v2435_v41 = vrot.slane %v2427_v53, %v5995_v27 }
0x18ae   : > { %v2465_v43 = vrot.slane %v2451_v22, %v5995_v27  ;;  %v2619_v50 = vsel %vm491_vm0, %v5883_v20, %v2610_v13  ;;  %v2419_v57 = vrot.slane %v2405_v23, %v5995_v27  ;;  %v2524_v52 = vrot.slane %v2412_v25, %v6008_v12 }
0x18af   : > { %v2442_v58 = vrot.slane %v2428_v29, %v5995_v27  ;;  %v2620_v61 = vsel %vm497_vm1, %v2619_v50, %v2612_v30  ;;  %v2544_v53 = vrot.slane %v2458_v39, %v6008_v12  ;;  %v2582_v13 = vrot.slane %v6031_v54, %v6008_v12 }
0x18b0   : > { %v2548_v23 = vrot.slane %v2465_v43, %v6008_v12 }
0x18b1   : > { %v2538_v30 = vrot.slane %v2442_v58, %v6008_v12 }
0x1913   : > { %v2222_v6 = vpop.permute.xlu0 %2221 }
0x1914   : > { %5062 = vmatmul.mubr.msk.f32.vlgmr.msra.gmra.mrb[18].mxu1 %vm785_vm9, %v2222_v6  ;;  %v2562_v6 = vsel %vm488_vm10, %v6031_v54, %v6020_v51 }
0x1915   : > { %5086 = vmatprep.mubr.msk.f32.mxu1 %vm5555_vm3, %v5556_v10  ;;  %v2564_v22 = vsel %vm491_vm0, %v2562_v6, %v2508_v35  ;;  %v2528_v6 = vrot.slane %v2419_v57, %v6008_v12 }
0x1916   : > { %v2566_v54 = vsel %vm494_vm11, %v2564_v22, %v2518_v40 }
0x1924   : > { %v6045_v3 = vpop.permute.xlu0 %2299 }
0x19e7   : > { %v2291_v2 = vpop.f32.mrb[18].mxu1 }
0x19e8   : > { %v4715_v15 = vclamps-f32 %v2291_v2, 3.0  ;;  %v5063_v17 = vpop.f32.mrb[19].mxu1 }
0x19e9   : > { %v2534_v17 = vrot.slane %v2435_v41, %v6008_v12 }
0x19ea   : > { %v6058_v11 = vmul.f32 %v4715_v15, %v6045_v3  ;;  %v2565_v15 = vsel %vm494_vm11, %v2563_v36, %v2514_v34 }
0x19eb   : > { %v2567_v39 = vsel %vm497_vm1, %v2565_v15, %v2524_v52 }
0x19ec   : > { %v2473_v46 = vrot.slane %v6058_v11, %v5995_v27  ;;  %v2614_v48 = vrot.slane %v6058_v11, 2 }
0x19ee   : > { %v2474_v62 = vcombine.high %v2473_v46, %v2473_v46  ;;  %v2481_v1 = vrot.slane %v2473_v46, %v5995_v27  ;;  %v2621_v2 = vsel %vm503_vm2, %v2620_v61, %v2614_v48  ;;  %v2569_v48 = vsel %vm500_vm12, %v2567_v39, %v2534_v17 }
0x19ef   : > { %5069 = vmatmul.mubr.msk.f32.vlgmr.msra.gmra.mrb[14].mxu0 %vm525_vm5, %v2621_v2 }
0x19f0   : > { %v2488_v25 = vrot.slane %v2474_v62, %v5995_v27  ;;  %v2585_v29 = vsel %vm488_vm10, %v2481_v1, %v2544_v53  ;;  %5297 = vmatpush3.bf16.msra.mxu0 %v6028_v26  ;;  %5075 = vmatprep.mubr.msk.f32.mxu0 %vm5555_vm3, %v5556_v10  ;;  %v2554_v41 = vrot.slane %v2481_v1, %v6008_v12 }
0x19f1   : > { %v2587_v36 = vsel %vm491_vm0, %v2585_v29, %v2534_v17  ;;  %5304 = vmatprep.subr.bf16.mxu0 %v5554_v9  ;;  %v2571_v1 = vsel %vm503_vm2, %v2569_v48, %v2544_v53 }
0x19f2   : > { %v2586_v43 = vsel %vm488_vm10, %v2488_v25, %v2548_v23  ;;  %v2589_v46 = vsel %vm494_vm11, %v2587_v36, %v2524_v52  ;;  %v2558_v58 = vrot.slane %v2488_v25, %v6008_v12  ;;  %v2568_v52 = vsel %vm497_vm1, %v2566_v54, %v2528_v6 }
0x19f3   : > { %v2588_v50 = vsel %vm491_vm0, %v2586_v43, %v2538_v30  ;;  %v2591_v57 = vsel %vm497_vm1, %v2589_v46, %v2514_v34  ;;  %5076 = vmatmul.mubr.f32.vlgmr.msra.gmra.mrb[16].mxu0 %v5556_v10  ;;  %v2573_v22 = vsel %vm506_vm13, %v2571_v1, %v2554_v41  ;;  %v4723_v1 = vld [vmem:[%s5710_s26 + $0x20] sm:$0xff] }
0x19f4   : > { %v2590_v61 = vsel %vm494_vm11, %v2588_v50, %v2528_v6  ;;  %v2593_v62 = vsel %vm500_vm12, %v2591_v57, %v6035_v59  ;;  %5306 = vmatpush3.bf16.msra.mxu0 %v6028_v26  ;;  %5093 = vmatprep.mubr.msk.f32.mxu0 %vm5555_vm3, %v5556_v10  ;;  %v2570_v59 = vsel %vm500_vm12, %v2568_v52, %v2538_v30 }
0x19f5   : > { %v2592_v34 = vsel %vm497_vm1, %v2590_v61, %v2518_v40  ;;  %v2595_v2 = vsel %vm503_vm2, %v2593_v62, %v6017_v49  ;;  %5307 = vmatprep.subr.bf16.mxu0 %v5554_v9  ;;  %v2572_v40 = vsel %vm503_vm2, %v2570_v59, %v2548_v23 }
0x19f6   : > { %v2594_v53 = vsel %vm500_vm12, %v2592_v34, %v2508_v35  ;;  %v2597_v49 = vsel %vm506_vm13, %v2595_v2, %v2578_v60  ;;  %v2574_v25 = vsel %vm506_vm13, %v2572_v40, %v2558_v58  ;;  %v4724_v34 = vld [vmem:[%s5710_s26 + $0x28] sm:$0xff]  ;;  %v4725_v2 = vld [vmem:[%s5710_s26 + $0x30] sm:$0xff] }
0x19f7   : > { %v2596_v15 = vsel %vm503_vm2, %v2594_v53, %v6020_v51  ;;  %v2599_v17 = vsel %vm5652_vm4, %v2597_v49, %v2573_v22  ;;  %v6165_v59 = vpack.c.bf16 %v4724_v34, %v4723_v1  ;;  %v4726_v22 = vld [vmem:[%s5710_s26 + $0x38] sm:$0xff] }
0x19f8   : > { %v2598_v29 = vsel %vm506_vm13, %v2596_v15, %v2582_v13  ;;  %4716 = vst.msk [vmem:[%s6130_s18 + $0x10] sm:$0xff] %vm525_vm5, %v2599_v17  ;;  %v6169_v53 = vpack.c.bf16 %v4726_v22, %v4725_v2 }
0x19f9   : > { %v2600_v35 = vsel %vm5652_vm4, %v2598_v29, %v2574_v25  ;;  %5300 = vmatpush3.bf16.msra.mxu1 %v6165_v59 }
0x19fa   : > { %4717 = vst.msk [vmem:[%s6130_s18 + $0x18] sm:$0xff] %vm525_vm5, %v2600_v35  ;;  %5301 = vmatprep.subr.bf16.mxu1 %v5554_v9 }
0x19fd   : > { %5303 = vmatpush3.bf16.msra.mxu1 %v6169_v53 }
0x19fe   : > { %5313 = vmatprep.subr.bf16.mxu1 %v5554_v9 }
0x1ac2   : > { %v5070_v60 = vpop.f32.mrb[14].mxu0 }
0x1ac3   : > { %v6153_v23 = vadd.f32 %v5070_v60, %v4727_v55  ;;  %v2713_v54 = vpop.f32.mrb[15].mxu0 }
0x1ac4   : > { %v6155_v51 = vadd.f32 %v4727_v55, %v2713_v54 }
0x1ac6   : > { %v2788_v6 = vpop.f32.mrb[16].mxu0 }
0x1ac7   : > { %v2792_v30 = vadd.f32 %v2788_v6, %v6155_v51  ;;  %v5077_v36 = vpop.f32.mrb[17].mxu0 }
0x1ac9   : > { %v4730_v39 = vmul.f32 -1.442695, %v2792_v30 }
0x1acb   : > { %5479 = vpow2.f32 %v4730_v39 }
0x1acc   : > { %5481 = vtanh.f32 %v2792_v30 }
0x1ad5   : > { %v5480_v13 = vpop.eup %5479 }
0x1ad6   : > { %v2797_v41 = vadd.f32 1.0, %v5480_v13  ;;  %v5482_v43 = vpop.eup %5481 }
0x1ad8   : > { %5483 = vrcp.f32 %v2797_v41 }
0x1ae2   : > { %v5484_v46 = vpop.eup %5483 }
0x1ae3   : > { %v2800_v48 = vsel %vm5692_vm8, %v5482_v43, %v5484_v46 }
0x1ae4   : > { %2802 = vrot.lane.b32.xlu1 %v2800_v48, %s5557_s16  ;;  %v2806_v50 = vmul.f32 0.0, %v2800_v48 }
0x1ae8   : > { %2808 = vrot.lane.b32.xlu1 %v2806_v50, %s5558_s17 }
0x1b56   : > { %v2803_v57 = vpop.permute.xlu1 %2802 }
0x1b57   : > { %v2805_v58 = vmul.f32 %v2803_v57, %v2800_v48 }
0x1b5a   : > { %v2809_v61 = vpop.permute.xlu1 %2808 }
0x1b5b   : > { %v2811_v62 = vadd.f32 %v2809_v61, %v2805_v58 }
0x1b5d   : > { %v4731_v52 = vclamps-f32 %v2811_v62, 3.0 }
0x1b5f   : > { %5485 = vtanh.f32 %v4731_v52  ;;  %v2899_v49 = vmul.f32 %v4731_v52, %v5736_v0 }
0x1b61   : > { %v2900_v40 = vadd.f32 %v2899_v49, %v5734_v63 }
0x1b63   : > { %v2992_v17 = vrot.slane %v2900_v40, 6  ;;  %v3095_v49 = vmul.f32 %v2900_v40, %v5769_v45 }
0x1b69   : > { %v5486_v15 = vpop.eup %5485 }
0x1b6a   : > { %2816 = vrot.lane.b32.xlu0 %v5486_v15, %s5558_s17 }
0x1b6e   : > { %2993 = vrot.lane.b32.xlu0 %v2992_v17, %s5561_s27 }
0x1bdc   : > { %v2817_v25 = vpop.permute.xlu0 %2816 }
0x1bdd   : > { %v2819_v29 = vmul.f32 %v2817_v25, %v2800_v48 }
0x1bdf   : > { %2821 = vrot.lane.b32.xlu1 %v2819_v29, %s5561_s27 }
0x1be0   : > { %v2994_v50 = vpop.permute.xlu0 %2993 }
0x1c51   : > { %v2822_v35 = vpop.permute.xlu1 %2821 }
0x1c52   : > { %5087 = vmatmul.mubr.msk.f32.vlgmr.msra.gmra.mrb[20].mxu1 %vm785_vm9, %v2822_v35 }
0x1c53   : > { %5315 = vmatpush3.bf16.msra.mxu1 %v6028_v26  ;;  %5111 = vmatprep.mubr.msk.f32.mxu1 %vm5555_vm3, %v5556_v10 }
0x1c54   : > { %5316 = vmatprep.subr.bf16.mxu1 %v5554_v9 }
0x1d25   : > { %v2891_v55 = vpop.f32.mrb[20].mxu1 }
0x1d26   : > { %v4733_v60 = vclamps-f32 %v2891_v55, 3.0  ;;  %v5088_v54 = vpop.f32.mrb[21].mxu1 }
0x1d28   : > { %v2897_v6 = vmul.f32 %v4733_v60, %v5736_v0 }
0x1d2a   : > { %v2898_v30 = vadd.f32 %v2897_v6, %v5734_v63  ;;  %v4257_v54 = vadd.f32 %v2897_v6, %v5742_v7 }
0x1d2c   : > { %5094 = vmatmul.mubr.msk.f32.vlgmr.msra.gmra.mrb[18].mxu0 %vm525_vm5, %v2898_v30 }
0x1d2d   : > { %5309 = vmatpush3.bf16.msra.mxu0 %v6165_v59  ;;  %5104 = vmatprep.mubr.msk.f32.mxu0 %vm5555_vm3, %v5556_v10 }
0x1d2e   : > { %5310 = vmatprep.subr.bf16.mxu0 %v5554_v9 }
0x1d31   : > { %5312 = vmatpush3.bf16.msra.mxu0 %v6169_v53 }
0x1d32   : > { %5322 = vmatprep.subr.bf16.mxu0 %v5554_v9 }
0x1dff   : > { %v2970_v36 = vpop.f32.mrb[18].mxu0 }
0x1e00   : > { %v2975_v39 = vrot.slane %v2970_v36, 6  ;;  %v5095_v13 = vpop.f32.mrb[19].mxu0 }
0x1e02   : > { %v2977_v0 = vadd.f32 %v2975_v39, %v6155_v51 }
0x1e04   : > { %v4735_v41 = vmul.f32 -1.442695, %v2977_v0 }
0x1e06   : > { %5487 = vpow2.f32 %v4735_v41  ;;  %v4272_v41 = vrot.slane %v4257_v54, %v5995_v27 }
0x1e07   : > { %5489 = vtanh.f32 %v2977_v0  ;;  %v3089_v0 = vmul.f32 %v2898_v30, %v5769_v45 }
0x1e08   : > { %v4273_v7 = vcombine.high %v4272_v41, %v4272_v41  ;;  %v6227_v6 = vrot.slane %v4272_v41, %v5995_v27 }
0x1e10   : > { %v5488_v63 = vpop.eup %5487 }
0x1e11   : > { %v2982_v43 = vadd.f32 1.0, %v5488_v63  ;;  %v5490_v46 = vpop.eup %5489 }
0x1e13   : > { %5491 = vrcp.f32 %v2982_v43 }
0x1e1d   : > { %v5492_v48 = vpop.eup %5491 }
0x1e1e   : > { %v2985_v57 = vsel %vm5692_vm8, %v5490_v46, %v5492_v48  ;;  %v6235_v48 = vrot.slane %v4273_v7, %v5995_v27 }
0x1e1f   : > { %2987 = vrot.lane.b32.xlu1 %v2985_v57, %s5557_s16  ;;  %v2996_v58 = vmul.f32 %v2994_v50, %v2985_v57 }
0x1e21   : > { %2998 = vrot.lane.b32.xlu0 %v2996_v58, %s5558_s17 }
0x1e91   : > { %v2988_v61 = vpop.permute.xlu1 %2987 }
0x1e92   : > { %v2990_v62 = vmul.f32 %v2988_v61, %v2985_v57 }
0x1e93   : > { %v2999_v52 = vpop.permute.xlu0 %2998 }
0x1e94   : > { %v3001_v1 = vadd.f32 %v2999_v52, %v2990_v62 }
0x1e96   : > { %v4736_v34 = vclamps-f32 %v3001_v1, 3.0 }
0x1e98   : > { %5493 = vtanh.f32 %v4736_v34  ;;  %v3092_v2 = vrot.slane %v4736_v34, 2 }
0x1e9a   : > { %v3094_v22 = vmul.f32 %v3092_v2, %v5772_v47 }
0x1e9c   : > { %v6200_v15 = vadd.f32 %v3095_v49, %v3094_v22 }
0x1e9e   : > { %v3188_v25 = vrot.slane %v6200_v15, 4 }
0x1ea2   : > { %v5494_v17 = vpop.eup %5493 }
0x1ea3   : > { %3006 = vrot.lane.b32.xlu1 %v5494_v17, %s5558_s17 }
0x1ea7   : > { %3189 = vrot.lane.b32.xlu1 %v3188_v25, %s5561_s27 }
0x1f15   : > { %v3007_v29 = vpop.permute.xlu1 %3006 }
0x1f16   : > { %v3009_v35 = vmul.f32 %v3007_v29, %v2985_v57 }
0x1f18   : > { %v3011_v55 = vrot.slane %v3009_v35, 2 }
0x1f19   : > { %v3190_v25 = vpop.permute.xlu1 %3189 }
0x1f1a   : > { %3012 = vrot.lane.b32.xlu0 %v3011_v55, %s5561_s27 }
0x1f8c   : > { %v3013_v60 = vpop.permute.xlu0 %3012 }
0x1f8d   : > { %5105 = vmatmul.mubr.msk.f32.vlgmr.msra.gmra.mrb[20].mxu0 %vm785_vm9, %v3013_v60 }
0x1f8e   : > { %5324 = vmatpush3.bf16.msra.mxu0 %v6028_v26  ;;  %5129 = vmatprep.mubr.msk.f32.mxu0 %vm5555_vm3, %v5556_v10 }
0x1f8f   : > { %5325 = vmatprep.subr.bf16.mxu0 %v5554_v9 }
0x2060   : > { %v3082_v40 = vpop.f32.mrb[20].mxu0 }
0x2061   : > { %v4738_v36 = vclamps-f32 %v3082_v40, 3.0  ;;  %v5106_v39 = vpop.f32.mrb[21].mxu0 }
0x2063   : > { %v3088_v13 = vmul.f32 %v4738_v36, %v5772_v47 }
0x2065   : > { %v6215_v63 = vadd.f32 %v3089_v0, %v3088_v13  ;;  %v4258_v43 = vadd.f32 %v3088_v13, %v5778_v56  ;;  %v3291_v0 = vmul.f32 %v6200_v15, %v5804_v31 }
0x2067   : > { %v4297_v46 = vrot.slane %v4258_v43, %v5995_v27  ;;  %5112 = vmatmul.mubr.msk.f32.vlgmr.msra.gmra.mrb[22].mxu1 %vm525_vm5, %v6215_v63 }
0x2068   : > { %5318 = vmatpush3.bf16.msra.mxu1 %v6165_v59  ;;  %5122 = vmatprep.mubr.msk.f32.mxu1 %vm5555_vm3, %v5556_v10 }
0x2069   : > { %v4298_v47 = vcombine.high %v4297_v46, %v4297_v46  ;;  %v4305_v45 = vrot.slane %v4297_v46, %v5995_v27  ;;  %5319 = vmatprep.subr.bf16.mxu1 %v5554_v9 }
0x206b   : > { %v4312_v56 = vrot.slane %v4298_v47, %v5995_v27  ;;  %v6231_v30 = vrot.slane %v4305_v45, %v6008_v12 }
0x206c   : > { %5321 = vmatpush3.bf16.msra.mxu1 %v6169_v53 }
0x206d   : > { %v6238_v50 = vrot.slane %v4312_v56, %v6008_v12  ;;  %v4523_v57 = vsel %vm488_vm10, %v6227_v6, %v6231_v30  ;;  %5331 = vmatprep.subr.bf16.mxu1 %v5554_v9 }
0x206f   : > { %v4524_v58 = vsel %vm488_vm10, %v6235_v48, %v6238_v50 }
0x213a   : > { %v3166_v61 = vpop.f32.mrb[22].mxu1 }
0x213b   : > { %v3171_v62 = vrot.slane %v3166_v61, 4  ;;  %v5113_v52 = vpop.f32.mrb[23].mxu1 }
0x213d   : > { %v3173_v1 = vadd.f32 %v3171_v62, %v6155_v51 }
0x213f   : > { %v4740_v34 = vmul.f32 -1.442695, %v3173_v1 }
0x2141   : > { %5495 = vpow2.f32 %v4740_v34 }
0x2142   : > { %5497 = vtanh.f32 %v3173_v1  ;;  %v3285_v1 = vmul.f32 %v6215_v63, %v5804_v31 }
0x214b   : > { %v5496_v2 = vpop.eup %5495 }
0x214c   : > { %v3178_v22 = vadd.f32 1.0, %v5496_v2  ;;  %v5498_v49 = vpop.eup %5497 }
0x214e   : > { %5499 = vrcp.f32 %v3178_v22 }
0x2158   : > { %v5500_v17 = vpop.eup %5499 }
0x2159   : > { %v3181_v29 = vsel %vm5692_vm8, %v5498_v49, %v5500_v17 }
0x215a   : > { %3183 = vrot.lane.b32.xlu0 %v3181_v29, %s5557_s16  ;;  %v3192_v35 = vmul.f32 %v3190_v25, %v3181_v29 }
0x215c   : > { %3194 = vrot.lane.b32.xlu1 %v3192_v35, %s5558_s17 }
0x21cc   : > { %v3184_v55 = vpop.permute.xlu0 %3183 }
0x21cd   : > { %v3186_v60 = vmul.f32 %v3184_v55, %v3181_v29 }
0x21ce   : > { %v3195_v40 = vpop.permute.xlu1 %3194 }
0x21cf   : > { %v3197_v54 = vadd.f32 %v3195_v40, %v3186_v60 }
0x21d1   : > { %v4741_v36 = vclamps-f32 %v3197_v54, 3.0 }
0x21d3   : > { %5501 = vtanh.f32 %v4741_v36  ;;  %v3288_v39 = vrot.slane %v4741_v36, 4 }
0x21d5   : > { %v3290_v13 = vmul.f32 %v3288_v39, %v5807_v33 }
0x21d7   : > { %v3292_v41 = vadd.f32 %v3291_v0, %v3290_v13 }
0x21d9   : > { %v3384_v46 = vrot.slane %v3292_v41, 2 }
0x21dd   : > { %v5502_v43 = vpop.eup %5501 }
0x21de   : > { %3202 = vrot.lane.b32.xlu0 %v5502_v43, %s5558_s17 }
0x21e2   : > { %3385 = vrot.lane.b32.xlu0 %v3384_v46, %s5561_s27 }
0x2250   : > { %v3203_v7 = vpop.permute.xlu0 %3202 }
0x2251   : > { %v3205_v47 = vmul.f32 %v3203_v7, %v3181_v29 }
0x2253   : > { %v3207_v45 = vrot.slane %v3205_v47, 4 }
0x2254   : > { %v3386_v0 = vpop.permute.xlu0 %3385 }
0x2255   : > { %3208 = vrot.lane.b32.xlu1 %v3207_v45, %s5561_s27 }
0x22c7   : > { %v3209_v56 = vpop.permute.xlu1 %3208 }
0x22c8   : > { %5123 = vmatmul.mubr.msk.f32.vlgmr.msra.gmra.mrb[24].mxu1 %vm785_vm9, %v3209_v56 }
0x22c9   : > { %5333 = vmatpush3.bf16.msra.mxu1 %v6028_v26  ;;  %5147 = vmatprep.mubr.msk.f32.mxu1 %vm5555_vm3, %v5556_v10 }
0x22ca   : > { %5334 = vmatprep.subr.bf16.mxu1 %v5554_v9 }
0x239b   : > { %v3278_v15 = vpop.f32.mrb[24].mxu1 }
0x239c   : > { %v4743_v61 = vclamps-f32 %v3278_v15, 3.0  ;;  %v5124_v62 = vpop.f32.mrb[25].mxu1 }
0x239e   : > { %v3284_v52 = vmul.f32 %v4743_v61, %v5807_v33  ;;  %v3487_v61 = vmul.f32 %v3292_v41, %v5839_v19 }
0x23a0   : > { %v3286_v34 = vadd.f32 %v3285_v1, %v3284_v52  ;;  %v4259_v2 = vadd.f32 %v3284_v52, %v5813_v44 }
0x23a2   : > { %v4320_v22 = vrot.slane %v4259_v2, %v5995_v27  ;;  %5130 = vmatmul.mubr.msk.f32.vlgmr.msra.gmra.mrb[22].mxu0 %vm525_vm5, %v3286_v34 }
0x23a3   : > { %5327 = vmatpush3.bf16.msra.mxu0 %v6165_v59  ;;  %5140 = vmatprep.mubr.msk.f32.mxu0 %vm5555_vm3, %v5556_v10 }
0x23a4   : > { %v4321_v49 = vcombine.high %v4320_v22, %v4320_v22  ;;  %v4328_v17 = vrot.slane %v4320_v22, %v5995_v27  ;;  %5328 = vmatprep.subr.bf16.mxu0 %v5554_v9 }
0x23a6   : > { %v4335_v33 = vrot.slane %v4321_v49, %v5995_v27  ;;  %v6276_v31 = vrot.slane %v4328_v17, %v6008_v12 }
0x23a7   : > { %5330 = vmatpush3.bf16.msra.mxu0 %v6169_v53 }
0x23a8   : > { %v6280_v44 = vrot.slane %v4335_v33, %v6008_v12  ;;  %v4525_v63 = vsel %vm491_vm0, %v4523_v57, %v6276_v31  ;;  %5340 = vmatprep.subr.bf16.mxu0 %v5554_v9 }
0x23aa   : > { %v4526_v25 = vsel %vm491_vm0, %v4524_v58, %v6280_v44 }
0x2475   : > { %v3362_v29 = vpop.f32.mrb[22].mxu0 }
0x2476   : > { %v3367_v35 = vrot.slane %v3362_v29, 2  ;;  %v5131_v55 = vpop.f32.mrb[23].mxu0  ;;  %v3481_v29 = vmul.f32 %v3286_v34, %v5839_v19 }
0x2478   : > { %v3369_v60 = vadd.f32 %v3367_v35, %v6155_v51 }
0x247a   : > { %v4745_v40 = vmul.f32 -1.442695, %v3369_v60 }
0x247c   : > { %5503 = vpow2.f32 %v4745_v40 }
0x247d   : > { %5505 = vtanh.f32 %v3369_v60 }
0x2486   : > { %v5504_v54 = vpop.eup %5503 }
0x2487   : > { %v3374_v36 = vadd.f32 1.0, %v5504_v54  ;;  %v5506_v39 = vpop.eup %5505 }
0x2489   : > { %5507 = vrcp.f32 %v3374_v36 }
0x2493   : > { %v5508_v13 = vpop.eup %5507 }
0x2494   : > { %v3377_v57 = vsel %vm5692_vm8, %v5506_v39, %v5508_v13 }
0x2495   : > { %3379 = vrot.lane.b32.xlu1 %v3377_v57, %s5557_s16  ;;  %v3388_v58 = vmul.f32 %v3386_v0, %v3377_v57 }
0x2497   : > { %3390 = vrot.lane.b32.xlu0 %v3388_v58, %s5558_s17 }
0x2507   : > { %v3380_v43 = vpop.permute.xlu1 %3379 }
0x2508   : > { %v3382_v46 = vmul.f32 %v3380_v43, %v3377_v57 }
0x2509   : > { %v3391_v51 = vpop.permute.xlu0 %3390 }
0x250a   : > { %v3393_v7 = vadd.f32 %v3391_v51, %v3382_v46 }
0x250c   : > { %v4746_v47 = vclamps-f32 %v3393_v7, 3.0 }
0x250e   : > { %5509 = vtanh.f32 %v4746_v47  ;;  %v3484_v45 = vrot.slane %v4746_v47, 6 }
0x2510   : > { %v3486_v56 = vmul.f32 %v3484_v45, %v5842_v21 }
0x2512   : > { %v3488_v62 = vadd.f32 %v3487_v61, %v3486_v56 }
0x2518   : > { %v5510_v15 = vpop.eup %5509 }
0x2519   : > { %3398 = vrot.lane.b32.xlu1 %v5510_v15, %s5558_s17 }
0x251d   : > { %3577 = vrot.lane.b32.xlu1 %v3488_v62, %s5561_s27 }
0x258b   : > { %v3399_v52 = vpop.permute.xlu1 %3398 }
0x258c   : > { %v3401_v1 = vmul.f32 %v3399_v52, %v3377_v57 }
0x258e   : > { %v3403_v2 = vrot.slane %v3401_v1, 6  ;;  %v3675_v1 = vmul.f32 %v3488_v62, %v5877_v8 }
0x258f   : > { %v3578_v7 = vpop.permute.xlu1 %3577 }
0x2590   : > { %3404 = vrot.lane.b32.xlu0 %v3403_v2, %s5561_s27 }
0x2602   : > { %v3405_v22 = vpop.permute.xlu0 %3404 }
0x2603   : > { %5141 = vmatmul.mubr.msk.f32.vlgmr.msra.gmra.mrb[24].mxu0 %vm785_vm9, %v3405_v22 }
0x2604   : > { %5342 = vmatpush3.bf16.msra.mxu0 %v6028_v26  ;;  %5165 = vmatprep.mubr.msk.f32.mxu0 %vm5555_vm3, %v5556_v10 }
0x2605   : > { %5343 = vmatprep.subr.bf16.mxu0 %v5554_v9 }
0x26d6   : > { %v3474_v49 = vpop.f32.mrb[24].mxu0 }
0x26d7   : > { %v4748_v41 = vclamps-f32 %v3474_v49, 3.0  ;;  %v5142_v17 = vpop.f32.mrb[25].mxu0 }
0x26d9   : > { %v3480_v33 = vmul.f32 %v4748_v41, %v5842_v21 }
0x26db   : > { %v3482_v35 = vadd.f32 %v3481_v29, %v3480_v33  ;;  %v4260_v55 = vadd.f32 %v3480_v33, %v5848_v32 }
0x26dd   : > { %v4343_v60 = vrot.slane %v4260_v55, %v5995_v27  ;;  %5148 = vmatmul.mubr.msk.f32.vlgmr.msra.gmra.mrb[26].mxu1 %vm525_vm5, %v3482_v35 }
0x26de   : > { %5336 = vmatpush3.bf16.msra.mxu1 %v6165_v59  ;;  %5158 = vmatprep.mubr.msk.f32.mxu1 %vm5555_vm3, %v5556_v10 }
0x26df   : > { %v4344_v40 = vcombine.high %v4343_v60, %v4343_v60  ;;  %v4351_v54 = vrot.slane %v4343_v60, %v5995_v27  ;;  %5337 = vmatprep.subr.bf16.mxu1 %v5554_v9 }
0x26e1   : > { %v4358_v21 = vrot.slane %v4344_v40, %v5995_v27  ;;  %v6314_v19 = vrot.slane %v4351_v54, %v6008_v12  ;;  %v3672_v40 = vmul.f32 %v3482_v35, %v5877_v8 }
0x26e2   : > { %5339 = vmatpush3.bf16.msra.mxu1 %v6169_v53 }
0x26e3   : > { %v6318_v32 = vrot.slane %v4358_v21, %v6008_v12  ;;  %v4527_v34 = vsel %vm494_vm11, %v4525_v63, %v6314_v19  ;;  %5349 = vmatprep.subr.bf16.mxu1 %v5554_v9 }
0x26e5   : > { %v4528_v36 = vsel %vm494_vm11, %v4526_v25, %v6318_v32 }
0x27b0   : > { %v3558_v39 = vpop.f32.mrb[26].mxu1 }
0x27b1   : > { %v3562_v13 = vadd.f32 %v3558_v39, %v6153_v23  ;;  %v5149_v0 = vpop.f32.mrb[27].mxu1 }
0x27b3   : > { %v4750_v57 = vmul.f32 -1.442695, %v3562_v13 }
0x27b5   : > { %5511 = vpow2.f32 %v4750_v57 }
0x27b6   : > { %5513 = vtanh.f32 %v3562_v13 }
0x27bf   : > { %v5512_v58 = vpop.eup %5511 }
0x27c0   : > { %v3567_v43 = vadd.f32 1.0, %v5512_v58  ;;  %v5514_v46 = vpop.eup %5513 }
0x27c2   : > { %5515 = vrcp.f32 %v3567_v43 }
0x27cc   : > { %v5516_v51 = vpop.eup %5515 }
0x27cd   : > { %v3570_v63 = vsel %vm5692_vm8, %v5514_v46, %v5516_v51 }
0x27ce   : > { %3572 = vrot.lane.b32.xlu0 %v3570_v63, %s5557_s16  ;;  %v3580_v47 = vmul.f32 %v3578_v7, %v3570_v63 }
0x27d0   : > { %3582 = vrot.lane.b32.xlu1 %v3580_v47, %s5558_s17 }
0x2840   : > { %v3573_v25 = vpop.permute.xlu0 %3572 }
0x2841   : > { %v3575_v45 = vmul.f32 %v3573_v25, %v3570_v63 }
0x2842   : > { %v3583_v56 = vpop.permute.xlu1 %3582 }
0x2843   : > { %v3585_v15 = vadd.f32 %v3583_v56, %v3575_v45 }
0x2845   : > { %v4751_v61 = vclamps-f32 %v3585_v15, 3.0 }
0x2847   : > { %5517 = vtanh.f32 %v4751_v61  ;;  %v3674_v52 = vmul.f32 %v4751_v61, %v5874_v5 }
0x2849   : > { %v3676_v2 = vadd.f32 %v3675_v1, %v3674_v52 }
0x284b   : > { %v3768_v49 = vrot.slane %v3676_v2, 6 }
0x2851   : > { %v5518_v22 = vpop.eup %5517 }
0x2852   : > { %3590 = vrot.lane.b32.xlu0 %v5518_v22, %s5558_s17 }
0x2856   : > { %3769 = vrot.lane.b32.xlu0 %v3768_v49, %s5561_s27 }
0x28c4   : > { %v3591_v41 = vpop.permute.xlu0 %3590 }
0x28c5   : > { %v3593_v17 = vmul.f32 %v3591_v41, %v3570_v63 }
0x28c7   : > { %3595 = vrot.lane.b32.xlu1 %v3593_v17, %s5561_s27  ;;  %v3871_v17 = vmul.f32 %v3676_v2, %v5909_v28 }
0x28c8   : > { %v3770_v56 = vpop.permute.xlu0 %3769 }
0x2939   : > { %v3596_v33 = vpop.permute.xlu1 %3595 }
0x293a   : > { %5159 = vmatmul.mubr.msk.f32.vlgmr.msra.gmra.mrb[28].mxu1 %vm785_vm9, %v3596_v33 }
0x293b   : > { %5351 = vmatpush3.bf16.msra.mxu1 %v6028_v26  ;;  %5183 = vmatprep.mubr.msk.f32.mxu1 %vm5555_vm3, %v5556_v10 }
0x293c   : > { %5352 = vmatprep.subr.bf16.mxu1 %v5554_v9 }
0x2a0d   : > { %v3665_v62 = vpop.f32.mrb[28].mxu1 }
0x2a0e   : > { %v4753_v29 = vclamps-f32 %v3665_v62, 3.0  ;;  %v5160_v55 = vpop.f32.mrb[29].mxu1 }
0x2a10   : > { %v3671_v60 = vmul.f32 %v4753_v29, %v5874_v5 }
0x2a12   : > { %v3673_v54 = vadd.f32 %v3672_v40, %v3671_v60  ;;  %v4261_v21 = vadd.f32 %v3671_v60, %v5883_v20 }
0x2a14   : > { %v4366_v39 = vrot.slane %v4261_v21, %v5995_v27  ;;  %5166 = vmatmul.mubr.msk.f32.vlgmr.msra.gmra.mrb[26].mxu0 %vm525_vm5, %v3673_v54 }
0x2a15   : > { %5345 = vmatpush3.bf16.msra.mxu0 %v6165_v59  ;;  %5176 = vmatprep.mubr.msk.f32.mxu0 %vm5555_vm3, %v5556_v10 }
0x2a16   : > { %v4367_v13 = vcombine.high %v4366_v39, %v4366_v39  ;;  %v4374_v0 = vrot.slane %v4366_v39, %v5995_v27  ;;  %5346 = vmatprep.subr.bf16.mxu0 %v5554_v9 }
0x2a18   : > { %v4381_v5 = vrot.slane %v4367_v13, %v5995_v27  ;;  %v6352_v8 = vrot.slane %v4374_v0, %v6008_v12 }
0x2a19   : > { %5348 = vmatpush3.bf16.msra.mxu0 %v6169_v53 }
0x2a1a   : > { %v6356_v20 = vrot.slane %v4381_v5, %v6008_v12  ;;  %v4529_v35 = vsel %vm497_vm1, %v4527_v34, %v6352_v8  ;;  %5358 = vmatprep.subr.bf16.mxu0 %v5554_v9  ;;  %v3865_v5 = vmul.f32 %v3673_v54, %v5909_v28 }
0x2a1c   : > { %v4530_v57 = vsel %vm497_vm1, %v4528_v36, %v6356_v20 }
0x2ae7   : > { %v3746_v58 = vpop.f32.mrb[26].mxu0 }
0x2ae8   : > { %v3751_v43 = vrot.slane %v3746_v58, 6  ;;  %v5167_v46 = vpop.f32.mrb[27].mxu0 }
0x2aea   : > { %v3753_v51 = vadd.f32 %v3751_v43, %v6153_v23 }
0x2aec   : > { %v4755_v7 = vmul.f32 -1.442695, %v3753_v51 }
0x2aee   : > { %5519 = vpow2.f32 %v4755_v7 }
0x2aef   : > { %5521 = vtanh.f32 %v3753_v51 }
0x2af8   : > { %v5520_v63 = vpop.eup %5519 }
0x2af9   : > { %v3758_v47 = vadd.f32 1.0, %v5520_v63  ;;  %v5522_v25 = vpop.eup %5521 }
0x2afb   : > { %5523 = vrcp.f32 %v3758_v47 }
0x2b05   : > { %v5524_v45 = vpop.eup %5523 }
0x2b06   : > { %v3761_v34 = vsel %vm5692_vm8, %v5522_v25, %v5524_v45 }
0x2b07   : > { %3763 = vrot.lane.b32.xlu1 %v3761_v34, %s5557_s16  ;;  %v3772_v36 = vmul.f32 %v3770_v56, %v3761_v34 }
0x2b09   : > { %3774 = vrot.lane.b32.xlu0 %v3772_v36, %s5558_s17 }
0x2b79   : > { %v3764_v15 = vpop.permute.xlu1 %3763 }
0x2b7a   : > { %v3766_v61 = vmul.f32 %v3764_v15, %v3761_v34 }
0x2b7b   : > { %v3775_v52 = vpop.permute.xlu0 %3774 }
0x2b7c   : > { %v3777_v1 = vadd.f32 %v3775_v52, %v3766_v61 }
0x2b7e   : > { %v4756_v22 = vclamps-f32 %v3777_v1, 3.0 }
0x2b80   : > { %5525 = vtanh.f32 %v4756_v22  ;;  %v3868_v49 = vrot.slane %v4756_v22, 2 }
0x2b82   : > { %v3870_v41 = vmul.f32 %v3868_v49, %v5912_v4 }
0x2b84   : > { %v3872_v33 = vadd.f32 %v3871_v17, %v3870_v41 }
0x2b86   : > { %v3964_v29 = vrot.slane %v3872_v33, 4 }
0x2b8a   : > { %v5526_v62 = vpop.eup %5525 }
0x2b8b   : > { %3782 = vrot.lane.b32.xlu1 %v5526_v62, %s5558_s17 }
0x2b8f   : > { %3965 = vrot.lane.b32.xlu1 %v3964_v29, %s5561_s27 }
0x2bfd   : > { %v3783_v55 = vpop.permute.xlu1 %3782 }
0x2bfe   : > { %v3785_v60 = vmul.f32 %v3783_v55, %v3761_v34  ;;  %v4067_v55 = vmul.f32 %v3872_v33, %v5953_v16 }
0x2c00   : > { %v3787_v40 = vrot.slane %v3785_v60, 2 }
0x2c01   : > { %v3966_v52 = vpop.permute.xlu1 %3965 }
0x2c02   : > { %3788 = vrot.lane.b32.xlu0 %v3787_v40, %s5561_s27 }
0x2c74   : > { %v3789_v21 = vpop.permute.xlu0 %3788 }
0x2c75   : > { %5177 = vmatmul.mubr.msk.f32.vlgmr.msra.gmra.mrb[28].mxu0 %vm785_vm9, %v3789_v21 }
0x2c76   : > { %5360 = vmatpush3.bf16.msra.mxu0 %v6028_v26  ;;  %5201 = vmatprep.mubr.msk.f32.mxu0 %vm5555_vm3, %v5556_v10 }
0x2c77   : > { %5361 = vmatprep.subr.bf16.mxu0 %v5554_v9 }
0x2d48   : > { %v3858_v2 = vpop.f32.mrb[28].mxu0 }
0x2d49   : > { %v4758_v39 = vclamps-f32 %v3858_v2, 3.0  ;;  %v5178_v13 = vpop.f32.mrb[29].mxu0 }
0x2d4b   : > { %v3864_v0 = vmul.f32 %v4758_v39, %v5912_v4 }
0x2d4d   : > { %v3866_v58 = vadd.f32 %v3865_v5, %v3864_v0  ;;  %v4262_v43 = vadd.f32 %v3864_v0, %v5921_v18 }
0x2d4f   : > { %v4389_v46 = vrot.slane %v4262_v43, %v5995_v27  ;;  %5184 = vmatmul.mubr.msk.f32.vlgmr.msra.gmra.mrb[30].mxu1 %vm525_vm5, %v3866_v58 }
0x2d50   : > { %5354 = vmatpush3.bf16.msra.mxu1 %v6165_v59  ;;  %5194 = vmatprep.mubr.msk.f32.mxu1 %vm5555_vm3, %v5556_v10 }
0x2d51   : > { %v4390_v26 = vcombine.high %v4389_v46, %v4389_v46  ;;  %v4397_v51 = vrot.slane %v4389_v46, %v5995_v27  ;;  %5355 = vmatprep.subr.bf16.mxu1 %v5554_v9 }
0x2d53   : > { %v4404_v4 = vrot.slane %v4390_v26, %v5995_v27  ;;  %v6390_v28 = vrot.slane %v4397_v51, %v6008_v12  ;;  %v4061_v26 = vmul.f32 %v3866_v58, %v5953_v16 }
0x2d54   : > { %5357 = vmatpush3.bf16.msra.mxu1 %v6169_v53 }
0x2d55   : > { %v6394_v18 = vrot.slane %v4404_v4, %v6008_v12  ;;  %v4531_v54 = vsel %vm500_vm12, %v4529_v35, %v6390_v28 }
0x2d57   : > { %v4532_v7 = vsel %vm500_vm12, %v4530_v57, %v6394_v18 }
0x2e22   : > { %v3942_v63 = vpop.f32.mrb[30].mxu1 }
0x2e23   : > { %v3947_v47 = vrot.slane %v3942_v63, 4  ;;  %v5185_v25 = vpop.f32.mrb[31].mxu1 }
0x2e25   : > { %v3949_v45 = vadd.f32 %v3947_v47, %v6153_v23 }
0x2e27   : > { %v4760_v56 = vmul.f32 -1.442695, %v3949_v45 }
0x2e29   : > { %5527 = vpow2.f32 %v4760_v56 }
0x2e2a   : > { %5529 = vtanh.f32 %v3949_v45 }
0x2e33   : > { %v5528_v34 = vpop.eup %5527 }
0x2e34   : > { %v3954_v36 = vadd.f32 1.0, %v5528_v34  ;;  %v5530_v15 = vpop.eup %5529 }
0x2e36   : > { %5531 = vrcp.f32 %v3954_v36 }
0x2e40   : > { %v5532_v61 = vpop.eup %5531 }
0x2e41   : > { %v3957_v35 = vsel %vm5692_vm8, %v5530_v15, %v5532_v61 }
0x2e42   : > { %3959 = vrot.lane.b32.xlu0 %v3957_v35, %s5557_s16  ;;  %v3968_v57 = vmul.f32 %v3966_v52, %v3957_v35 }
0x2e44   : > { %3970 = vrot.lane.b32.xlu1 %v3968_v57, %s5558_s17 }
0x2eb4   : > { %v3960_v1 = vpop.permute.xlu0 %3959 }
0x2eb5   : > { %v3962_v22 = vmul.f32 %v3960_v1, %v3957_v35 }
0x2eb6   : > { %v3971_v49 = vpop.permute.xlu1 %3970 }
0x2eb7   : > { %v3973_v41 = vadd.f32 %v3971_v49, %v3962_v22 }
0x2eb9   : > { %v4761_v17 = vclamps-f32 %v3973_v41, 3.0  ;;  %v5543_v41 = vld [vmem:[%s6553_s1] sm:$0x3] }
0x2eba   : > { %v512_v37 = vrot.slane %v5543_v41, %v6008_v12 }
0x2ebb   : > { %5533 = vtanh.f32 %v4761_v17  ;;  %v4064_v62 = vrot.slane %v4761_v17, 4 }
0x2ebd   : > { %v4066_v29 = vmul.f32 %v4064_v62, %v5957_v24 }
0x2ebf   : > { %v4068_v60 = vadd.f32 %v4067_v55, %v4066_v29  ;;  %v518_v29 = vsub.s32 1, %v5992_v42 }
0x2ec1   : > { %v4160_v21 = vrot.slane %v4068_v60, 2  ;;  %v519_v60 = vrot.slane %v5543_v41, %v518_v29 }
0x2ec5   : > { %v5534_v40 = vpop.eup %5533 }
0x2ec6   : > { %3978 = vrot.lane.b32.xlu0 %v5534_v40, %s5558_s17 }
0x2eca   : > { %4161 = vrot.lane.b32.xlu0 %v4160_v21, %s5561_s27  ;;  %v5544_v21 = vld [vmem:[%s6552_s0] sm:$0xff] }
0x2f38   : > { %v3979_v2 = vpop.permute.xlu0 %3978 }
0x2f39   : > { %v3981_v39 = vmul.f32 %v3979_v2, %v3957_v35  ;;  %v323_v2 = vrot.slane %v5544_v21, %v5995_v27 }
0x2f3b   : > { %v3983_v13 = vrot.slane %v3981_v39, 4  ;;  %v343_v39 = vcombine.high %v5544_v21, %v5544_v21 }
0x2f3c   : > { %v4162_v52 = vpop.permute.xlu0 %4161 }
0x2f3d   : > { %3984 = vrot.lane.b32.xlu1 %v3983_v13, %s5561_s27  ;;  %v324_v13 = vcombine.high %v323_v2, %v323_v2 }
0x2f3f   : > { %v338_v42 = vrot.slane %v324_v13, %v5995_v27 }
0x2faf   : > { %v3985_v0 = vpop.permute.xlu1 %3984 }
0x2fb0   : > { %5195 = vmatmul.mubr.msk.f32.vlgmr.msra.gmra.mrb[32].mxu1 %vm785_vm9, %v3985_v0  ;;  %v350_v0 = vrot.slane %v343_v39, %v5995_v27 }
0x3083   : > { %v4054_v5 = vpop.f32.mrb[32].mxu1 }
0x3084   : > { %v4763_v43 = vclamps-f32 %v4054_v5, 3.0  ;;  %v5196_v46 = vpop.f32.mrb[33].mxu1  ;;  %v331_v5 = vrot.slane %v323_v2, %v5995_v27 }
0x3085   : > { %v342_v46 = vcombine.high %v338_v42, %v338_v42 }
0x3086   : > { %v4060_v33 = vmul.f32 %v4763_v43, %v5957_v24  ;;  %v351_v43 = vcombine.high %v350_v0, %v350_v0 }
0x3088   : > { %v4062_v51 = vadd.f32 %v4061_v26, %v4060_v33  ;;  %v4263_v4 = vadd.f32 %v4060_v33, %v5964_v38  ;;  %v5545_v33 = vld [vmem:[%s6552_s0 + $0x8] sm:$0xff] }
0x3089   : > { %v375_v26 = vrot.slane %v5545_v33, %v5995_v27 }
0x308a   : > { %v4412_v63 = vrot.slane %v4263_v4, %v5995_v27  ;;  %5202 = vmatmul.mubr.msk.f32.vlgmr.msra.gmra.mrb[30].mxu0 %vm525_vm5, %v4062_v51  ;;  %v393_v51 = vcombine.high %v5545_v33, %v5545_v33  ;;  %v341_v4 = vcombine.high %v331_v5, %v331_v5 }
0x308b   : > { %5363 = vmatpush3.bf16.msra.mxu0 %v6165_v59  ;;  %5212 = vmatprep.mubr.msk.f32.mxu0 %vm5555_vm3, %v5556_v10 }
0x308c   : > { %v4413_v47 = vcombine.high %v4412_v63, %v4412_v63  ;;  %v4420_v25 = vrot.slane %v4412_v63, %v5995_v27  ;;  %5364 = vmatprep.subr.bf16.mxu0 %v5554_v9  ;;  %v358_v63 = vrot.slane %v350_v0, %v5995_v27 }
0x308e   : > { %v4427_v24 = vrot.slane %v4413_v47, %v5995_v27  ;;  %v6423_v16 = vrot.slane %v4420_v25, %v6008_v12  ;;  %v365_v47 = vrot.slane %v351_v43, %v5995_v27  ;;  %v376_v25 = vcombine.high %v375_v26, %v375_v26 }
0x308f   : > { %5366 = vmatpush3.bf16.msra.mxu0 %v6169_v53 }
0x3090   : > { %v6427_v38 = vrot.slane %v4427_v24, %v6008_v12  ;;  %v6431_v59 = vsel %vm503_vm2, %v4531_v54, %v6423_v16  ;;  %v400_v24 = vrot.slane %v393_v51, %v5995_v27 }
0x3092   : > { %v6435_v10 = vsel %vm503_vm2, %v4532_v7, %v6427_v38 }
0x315d   : > { %v4138_v58 = vpop.f32.mrb[30].mxu0 }
0x315e   : > { %v4143_v9 = vrot.slane %v4138_v58, 2  ;;  %v5203_v45 = vpop.f32.mrb[31].mxu0  ;;  %v367_v58 = vcombine.high %v365_v47, %v365_v47 }
0x315f   : > { %v401_v45 = vcombine.high %v400_v24, %v400_v24 }
0x3160   : > { %v4145_v56 = vadd.f32 %v4143_v9, %v6153_v23  ;;  %v390_v9 = vrot.slane %v376_v25, %v5995_v27 }
0x3162   : > { %v4765_v34 = vmul.f32 -1.442695, %v4145_v56 }
0x3164   : > { %5535 = vpow2.f32 %v4765_v34  ;;  %v421_v34 = vrot.slane %v341_v4, %v6008_v12 }
0x3165   : > { %5537 = vtanh.f32 %v4145_v56  ;;  %v425_v56 = vrot.slane %v342_v46, %v6008_v12 }
0x3166   : > { %v489_v13 = vsel %vm488_vm10, %v331_v5, %v421_v34 }
0x316e   : > { %v5536_v36 = vpop.eup %5535 }
0x316f   : > { %v4150_v53 = vadd.f32 1.0, %v5536_v36  ;;  %v5538_v15 = vpop.eup %5537  ;;  %v435_v36 = vrot.slane %v365_v47, %v6008_v12 }
0x3171   : > { %5539 = vrcp.f32 %v4150_v53  ;;  %v366_v53 = vcombine.high %v358_v63, %v358_v63 }
0x317b   : > { %v5540_v61 = vpop.eup %5539 }
0x317c   : > { %v4153_v54 = vsel %vm5692_vm8, %v5538_v15, %v5540_v61  ;;  %v383_v15 = vrot.slane %v375_v26, %v5995_v27  ;;  %v392_v61 = vcombine.high %v390_v9, %v390_v9 }
0x317d   : > { %4155 = vrot.lane.b32.xlu1 %v4153_v54, %s5557_s16  ;;  %v4164_v7 = vmul.f32 %v4162_v52, %v4153_v54  ;;  %v415_v52 = vrot.slane %v401_v45, %v5995_v27 }
0x317e   : > { %v451_v21 = vrot.slane %v383_v15, %v6008_v12 }
0x317f   : > { %4166 = vrot.lane.b32.xlu0 %v4164_v7, %s5558_s17  ;;  %v490_v7 = vsel %vm488_vm10, %v338_v42, %v425_v56 }
0x31ef   : > { %v4156_v35 = vpop.permute.xlu1 %4155 }
0x31f0   : > { %v4158_v57 = vmul.f32 %v4156_v35, %v4153_v54  ;;  %v455_v35 = vrot.slane %v390_v9, %v6008_v12 }
0x31f1   : > { %v4167_v23 = vpop.permute.xlu0 %4166 }
0x31f2   : > { %v4169_v1 = vadd.f32 %v4167_v23, %v4158_v57  ;;  %v493_v57 = vsel %vm491_vm0, %v490_v7, %v435_v36  ;;  %v391_v23 = vcombine.high %v383_v15, %v383_v15 }
0x31f4   : > { %v4766_v22 = vclamps-f32 %v4169_v1, 3.0  ;;  %v408_v1 = vrot.slane %v400_v24, %v5995_v27  ;;  %v461_v39 = vrot.slane %v391_v23, %v6008_v12 }
0x31f6   : > { %5541 = vtanh.f32 %v4766_v22  ;;  %v417_v22 = vcombine.high %v415_v52, %v415_v52  ;;  %v416_v29 = vcombine.high %v408_v1, %v408_v1  ;;  %v471_v43 = vrot.slane %v408_v1, %v6008_v12 }
0x31f8   : > { %v481_v26 = vrot.slane %v416_v29, %v6008_v12 }
0x3200   : > { %v5542_v49 = vpop.eup %5541 }
0x3201   : > { %4174 = vrot.lane.b32.xlu1 %v5542_v49, %s5558_s17  ;;  %v465_v49 = vrot.slane %v392_v61, %v6008_v12 }
0x3205   : > { %514 = vbcast.lane.b32.xlu1 %v512_v37, 256  ;;  %v431_v37 = vrot.slane %v358_v63, %v6008_v12 }
0x3207   : > { %v492_v46 = vsel %vm491_vm0, %v489_v13, %v431_v37 }
0x3273   : > { %v4175_v17 = vpop.permute.xlu1 %4174 }
0x3274   : > { %v4177_v62 = vmul.f32 %v4175_v17, %v4153_v54  ;;  %v445_v54 = vrot.slane %v367_v58, %v6008_v12  ;;  %v475_v17 = vrot.slane %v415_v52, %v6008_v12 }
0x3276   : > { %v4179_v55 = vrot.slane %v4177_v62, 6  ;;  %v496_v41 = vsel %vm494_vm11, %v493_v57, %v445_v54 }
0x3277   : > { %v499_v62 = vsel %vm497_vm1, %v496_v41, %v455_v35  ;;  %v515_v47 = vpop.permute.xlu1 %514 }
0x3278   : > { %4180 = vrot.lane.b32.xlu0 %v4179_v55, %s5561_s27  ;;  %v441_v55 = vrot.slane %v366_v53, %v6008_v12 }
0x327a   : > { %v495_v51 = vsel %vm494_vm11, %v492_v46, %v441_v55 }
0x327b   : > { %v498_v4 = vsel %vm497_vm1, %v495_v51, %v451_v21 }
0x327c   : > { %521 = vbcast.lane.b32.xlu0 %v519_v60, 256  ;;  %v485_v60 = vrot.slane %v417_v22, %v6008_v12  ;;  %v501_v63 = vsel %vm500_vm12, %v498_v4, %v461_v39 }
0x327d   : > { %v504_v5 = vsel %vm503_vm2, %v501_v63, %v471_v43 }
0x327e   : > { %v507_v25 = vsel %vm506_vm13, %v504_v5, %v481_v26 }
0x327f   : > { %v523_v24 = vmul.f32 %v515_v47, %v507_v25 }
0x3281   : > { %526 = vst.msk [vmem:[%s6130_s18] sm:$0xff] %vm525_vm5, %v523_v24 }
0x32ea   : > { %v4181_v40 = vpop.permute.xlu0 %4180 }
0x32eb   : > { %5213 = vmatmul.mubr.msk.f32.vlgmr.msra.gmra.mrb[32].mxu0 %vm785_vm9, %v4181_v40  ;;  %v502_v40 = vsel %vm500_vm12, %v499_v62, %v465_v49 }
0x32ec   : > { %v505_v2 = vsel %vm503_vm2, %v502_v40, %v475_v17 }
0x32ed   : > { %v508_v0 = vsel %vm506_vm13, %v505_v2, %v485_v60 }
0x32ee   : > { %v522_v42 = vpop.permute.xlu0 %521 }
0x32ef   : > { %v524_v33 = vmul.f32 %v522_v42, %v508_v0 }
0x32f1   : > { %527 = vst.msk [vmem:[%s6130_s18 + $0x8] sm:$0xff] %vm525_vm5, %v524_v33 }
0x33be   : > { %v4250_v58 = vpop.f32.mrb[32].mxu0 }
0x33bf   : > { %v4768_v9 = vclamps-f32 %v4250_v58, 3.0  ;;  %v5214_v45 = vpop.f32.mrb[33].mxu0 }
0x33c1   : > { %v4256_v56 = vmul.f32 %v4768_v9, %v6045_v3 }
0x33c3   : > { %v4264_v34 = vadd.f32 %v4256_v56, %v6058_v11 }
0x33c5   : > { %v4435_v36 = vrot.slane %v4264_v34, %v5995_v27 }
0x33c7   : > { %v4436_v53 = vcombine.high %v4435_v36, %v4435_v36  ;;  %v4443_v15 = vrot.slane %v4435_v36, %v5995_v27 }
0x33c9   : > { %v4450_v61 = vrot.slane %v4436_v53, %v5995_v27  ;;  %v4516_v52 = vrot.slane %v4443_v15, %v6008_v12  ;;  %v4547_v54 = vsel %vm488_vm10, %v4443_v15, %v6423_v16 }
0x33ca   : > { %v4549_v7 = vsel %vm491_vm0, %v4547_v54, %v6390_v28  ;;  %v4540_v28 = vrot.slane %v6227_v6, %v6008_v12 }
0x33cb   : > { %v4520_v35 = vrot.slane %v4450_v61, %v6008_v12  ;;  %v4535_v3 = vsel %vm506_vm13, %v6431_v59, %v4516_v52  ;;  %v4548_v11 = vsel %vm488_vm10, %v4450_v61, %v6427_v38  ;;  %v4551_v27 = vsel %vm494_vm11, %v4549_v7, %v6352_v8 }
0x33cc   : > { %v4550_v57 = vsel %vm491_vm0, %v4548_v11, %v6394_v18  ;;  %v4553_v16 = vsel %vm497_vm1, %v4551_v27, %v6314_v19  ;;  %v4544_v19 = vrot.slane %v6235_v48, %v6008_v12 }
0x33cd   : > { %v4536_v59 = vsel %vm506_vm13, %v6435_v10, %v4520_v35  ;;  %v4552_v38 = vsel %vm494_vm11, %v4550_v57, %v6356_v20  ;;  %v4555_v23 = vsel %vm500_vm12, %v4553_v16, %v6276_v31 }
0x33ce   : > { %v4554_v8 = vsel %vm497_vm1, %v4552_v38, %v6318_v32  ;;  %v4557_v18 = vsel %vm503_vm2, %v4555_v23, %v6231_v30 }
0x33cf   : > { %v4556_v6 = vsel %vm500_vm12, %v4554_v8, %v6280_v44  ;;  %v4559_v10 = vsel %vm506_vm13, %v4557_v18, %v4540_v28 }
0x33d0   : > { %v4558_v20 = vsel %vm503_vm2, %v4556_v6, %v6238_v50  ;;  %v4561_v31 = vsel %vm5652_vm4, %v4559_v10, %v4535_v3 }
0x33d1   : > { %v4560_v1 = vsel %vm506_vm13, %v4558_v20, %v4544_v19  ;;  %4769 = vst.msk [vmem:[%s6130_s18 + $0x20] sm:$0xff] %vm525_vm5, %v4561_v31 }
0x33d2   : > { %v4562_v30 = vsel %vm5652_vm4, %v4560_v1, %v4536_v59 }
0x33d3   : > { %4770 = vst.msk [vmem:[%s6130_s18 + $0x28] sm:$0xff] %vm525_vm5, %v4562_v30 }
0x33d4 PF: > { %s16_s21 = sadd.s32 1, %s5552_s21  }
0x33d5   : > { %p13_p6 = scmp.ge.s32.totalorder %s16_s21, 4  }
0x33d7   :  { %15 = sbr.rel (!%p13_p6) target bundleno = 1 (0x1), region = 89 }

</bundles_post_ra>
